<compile_context>
chip_gen: v6e
topology: v6e:2x2x1
jax: 0.10.0
libtpu: 0.0.40
codegen_flags: <defaults>
</compile_context>

<pallas_src>
import functools
import math

import jax
import jax.numpy as jnp
from jax.experimental import pallas as pl
from jax.experimental.pallas import tpu as pltpu


K_PAD = 16  # padded feature width for x and the small-K weight slab (bf16 tile)


# ----------------------------- parameter init ------------------------------ #

def init_params(key, *, num_layers, hidden_dim, geo_feat_dim, num_layers_color,
                input_ch, input_ch_views):
    """Weights stored as (in_dim, out_dim) = transpose of torch nn.Linear.weight."""
    keys = iter(jax.random.split(key, num_layers + num_layers_color))

    def linear(in_dim, out_dim):
        bound = 1.0 / math.sqrt(in_dim)
        return jax.random.uniform(next(keys), (in_dim, out_dim), jnp.float32,
                                  minval=-bound, maxval=bound)

    sigma = []
    for l in range(num_layers):
        in_dim = input_ch if l == 0 else hidden_dim
        out_dim = (1 + geo_feat_dim) if l == num_layers - 1 else hidden_dim
        sigma.append(linear(in_dim, out_dim))

    color = []
    for l in range(num_layers_color):
        in_dim = (input_ch_views + geo_feat_dim) if l == 0 else hidden_dim
        out_dim = 3 if l == num_layers_color - 1 else hidden_dim
        color.append(linear(in_dim, out_dim))

    return {"sigma": sigma, "color": color}


# ----------------------------- pure-JAX reference --------------------------- #

def nerfsmall_ref(x, params, *, num_layers, num_layers_color, input_ch,
                  input_ch_views, geo_feat_dim):
    """Mirrors the kernel's numeric recipe: every contraction is a bf16 x bf16
    MXU matmul with f32 accumulation; activations / adds stay in f32.
    (Validates kernel-vs-mirrored-recipe; bf16 weight/input rounding vs. the
    true fp32 PyTorch module is a separate, expected ~1e-2-relative effect.)"""
    bf16 = jnp.bfloat16
    dot = functools.partial(jnp.dot, preferred_element_type=jnp.float32)

    xq = x.astype(bf16)
    pts = xq[:, :input_ch]
    views = xq[:, input_ch:input_ch + input_ch_views]

    h = pts
    for l, w in enumerate(params["sigma"]):
        h = dot(h.astype(bf16), w.astype(bf16))
        if l != num_layers - 1:
            h = jnp.maximum(h, 0.0)
    sigma = h[:, 0:1]
    geo = h[:, 1:1 + geo_feat_dim]

    wc0 = params["color"][0].astype(bf16)
    hc = dot(views, wc0[:input_ch_views]) + dot(geo.astype(bf16), wc0[input_ch_views:])
    hc = jnp.maximum(hc, 0.0)
    for l in range(1, num_layers_color):
        hc = dot(hc.astype(bf16), params["color"][l].astype(bf16))
        if l != num_layers_color - 1:
            hc = jnp.maximum(hc, 0.0)

    return jnp.concatenate([hc, sigma], axis=-1)            # (N, 4)


# ----------------------------- weight packing ------------------------------- #

def pack_weights(params, *, num_layers, hidden_dim, geo_feat_dim,
                 num_layers_color, input_ch, input_ch_views,
                 dtype=jnp.bfloat16):
    """Pack weights into two bf16 slabs, both VMEM-resident across the grid.

    slab_k : (2, K_PAD, H)
      slot 0 : sigma_net[0]       rows 0..input_ch-1                (pts cols of x)
      slot 1 : color_net[0] views rows input_ch..input_ch+views-1   (view cols of x)
    slab_hh : (S, H, H), S = (num_layers-1) + 1 + (num_layers_color-1)
      slots 0..num_layers-2       : sigma_net[1..], zero-padded
      slot  num_layers-1          : color_net[0] geo half, rows shifted to
                                    1..geo_feat_dim (row 0 and rows >geo are
                                    zero, so the UNSLICED sigma-net output can
                                    feed the MXU directly)
      slots num_layers..          : color_net[1..], zero-padded
    """
    H = hidden_dim
    P = input_ch
    V = input_ch_views
    G = geo_feat_dim

    def pad_hh(w):
        i, o = w.shape
        return jnp.zeros((H, H), jnp.float32).at[:i, :o].set(w)

    wk0 = jnp.zeros((K_PAD, H), jnp.float32).at[:P, :].set(params["sigma"][0])
    wc0 = params["color"][0]                                  # (V + G, H)
    wk1 = jnp.zeros((K_PAD, H), jnp.float32).at[P:P + V, :].set(wc0[:V])
    slab_k = jnp.stack([wk0, wk1], axis=0).astype(dtype)      # (2, K_PAD, H)

    slots = [pad_hh(w) for w in params["sigma"][1:]]
    slots.append(jnp.zeros((H, H), jnp.float32).at[1:1 + G, :].set(wc0[V:]))
    slots.extend(pad_hh(w) for w in params["color"][1:])
    slab_hh = jnp.stack(slots, axis=0).astype(dtype)          # (S, H, H)

    return slab_k, slab_hh


# ------------------------------ Pallas kernel ------------------------------- #

def make_nerfsmall_kernel(*, num_layers, num_layers_color):
    ns = num_layers - 1  # index of the geo slot in the (S, H, H) slab

    def kernel(x_ref, wk_ref, w_ref, out_ref):
        dot = functools.partial(jnp.dot, preferred_element_type=jnp.float32)
        bf16 = jnp.bfloat16

        # ---------------- sigma net ----------------
        # layer 0 (K = input_ch, padded to K_PAD): one tiny MXU pass.
        h = dot(x_ref[...].astype(bf16), wk_ref[0])           # (tn, H) f32
        h = jnp.maximum(h, 0.0)
        for l in range(1, num_layers):
            h = dot(h.astype(bf16), w_ref[l - 1])             # bf16 MXU, f32 acc
            if l != num_layers - 1:
                h = jnp.maximum(h, 0.0)
        # h: col 0 = sigma, cols 1..geo_feat_dim = geo_feat (rest exact zero).
        # Retire sigma immediately -> short live range through the color net.
        out_ref[:, 3:4] = h[:, 0:1]

        # ---------------- color net ----------------
        # layer 0 on cat([views, geo_feat]) as a split matmul, both halves on
        # the MXU:
        #   views half: re-read the x block at point of use (no long-lived
        #   lane-sparse value), rows of wk_ref[1] align with x's view columns.
        #   geo half:   weight rows pre-shifted to 1..geo_feat_dim so the
        #   unsliced sigma-net output feeds the MXU directly (rows 0 and
        #   >geo_feat_dim of that slot are zero -> sigma / padding cannot leak).
        hc = (dot(x_ref[...].astype(bf16), wk_ref[1])
              + dot(h.astype(bf16), w_ref[ns]))
        hc = jnp.maximum(hc, 0.0)
        for l in range(1, num_layers_color):
            hc = dot(hc.astype(bf16), w_ref[ns + l])
            if l != num_layers_color - 1:
                hc = jnp.maximum(hc, 0.0)
        # hc: cols 0..2 = rgb (last-layer weight is zero-column-padded).
        out_ref[:, 0:3] = hc[:, 0:3]

    return kernel


# --------------------------------- wrapper ---------------------------------- #

def nerfsmall_pallas(x, params, *, num_layers=3, hidden_dim=64, geo_feat_dim=15,
                     num_layers_color=4, input_ch=3, input_ch_views=3,
                     tile_n=1024):
    N, C = x.shape
    H = hidden_dim
    assert C == input_ch + input_ch_views
    assert num_layers >= 2 and num_layers_color >= 2
    assert input_ch + input_ch_views <= K_PAD <= H
    assert (1 + geo_feat_dim) <= H
    assert tile_n % 8 == 0

    slab_k, slab_hh = pack_weights(
        params, num_layers=num_layers, hidden_dim=H, geo_feat_dim=geo_feat_dim,
        num_layers_color=num_layers_color, input_ch=input_ch,
        input_ch_views=input_ch_views, dtype=jnp.bfloat16)
    S = slab_hh.shape[0]

    # One pad covers ragged rows AND the feature-dim pad to K_PAD (single copy).
    n_tiles = int(pl.cdiv(N, tile_n))
    n_pad = n_tiles * tile_n
    x_p = jnp.pad(x, ((0, n_pad - N), (0, K_PAD - C)))

    kernel = make_nerfsmall_kernel(num_layers=num_layers,
                                   num_layers_color=num_layers_color)

    # Advisory cost estimate (true, unpadded contraction dims).
    contractions = sum(int(w.shape[0]) * int(w.shape[1])
                       for w in params["sigma"] + params["color"])
    flops = 2 * n_pad * contractions
    bytes_accessed = (n_pad * K_PAD * 4 + n_pad * 4 * 4
                      + int(slab_hh.size) * 2 + int(slab_k.size) * 2)

    out = pl.pallas_call(
        kernel,
        out_shape=jax.ShapeDtypeStruct((n_pad, 4), jnp.float32),
        grid=(n_tiles,),
        in_specs=[
            pl.BlockSpec((tile_n, K_PAD), lambda i: (i, 0)),
            pl.BlockSpec((2, K_PAD, H), lambda i: (0, 0, 0)),  # constant small slab
            pl.BlockSpec((S, H, H), lambda i: (0, 0, 0)),      # constant main slab
        ],
        out_specs=pl.BlockSpec((tile_n, 4), lambda i: (i, 0)),
        compiler_params=pltpu.CompilerParams(
            dimension_semantics=("parallel",)),
        cost_estimate=pl.CostEstimate(flops=flops, transcendentals=0,
                                      bytes_accessed=bytes_accessed),
    )(x_p, slab_k, slab_hh)

    return out[:N]


# ----------------------------------- main ------------------------------------ #

if __name__ == "__main__":
    # Module defaults: num_layers=3, hidden_dim=64, geo_feat_dim=15,
    # num_layers_color=4, input_ch=3, input_ch_views=3 -> output (N, 4).
    cfg = dict(num_layers=3, hidden_dim=64, geo_feat_dim=15, num_layers_color=4,
               input_ch=3, input_ch_views=3)
    tile_n = 1024
    N = 4000          # ragged (exercises padding); 4 tiles -> even split on v7x.

    key = jax.random.PRNGKey(0)
    k_x, k_p = jax.random.split(key)
    x = jax.random.normal(
        k_x, (N, cfg["input_ch"] + cfg["input_ch_views"]), jnp.float32)
    params = init_params(k_p, **cfg)

    out = nerfsmall_pallas(x, params, tile_n=tile_n, **cfg)
    out = jax.block_until_ready(out)

    ref = nerfsmall_ref(x, params, num_layers=cfg["num_layers"],
                        num_layers_color=cfg["num_layers_color"],
                        input_ch=cfg["input_ch"],
                        input_ch_views=cfg["input_ch_views"],
                        geo_feat_dim=cfg["geo_feat_dim"])
    ref = jax.block_until_ready(ref)

    err = float(jnp.max(jnp.abs(out - ref)))
    scale = float(jnp.max(jnp.abs(ref)))
    if err <= 1e-2 * max(1.0, scale):
        print("KERNEL_OK")
    else:
        print(f"mismatch: max abs err = {err}, ref scale = {scale}")
</pallas_src>

<mosaic_0001>
module attributes {stable_mosaic.version = 11 : i64} {
  func.func @kernel(%arg0: i32, %arg1: memref<1024x16xf32, #tpu.memory_space<vmem>>, %arg2: memref<2x16x64xbf16, #tpu.memory_space<vmem>>, %arg3: memref<6x64x64xbf16, #tpu.memory_space<vmem>>, %arg4: memref<1024x4xf32, #tpu.memory_space<vmem>>) attributes {dimension_semantics = [#tpu.dimension_semantics<parallel>], iteration_bounds = array<i64: 4>, scalar_prefetch = 0 : i64, scratch_operands = 0 : i64, tpu.core_type = #tpu.core_type<tc>, window_params = [{transform_indices = @transform_0, window_bounds = array<i64: 1024, 16>}, {pipeline_mode = #tpu.pipeline_mode<synchronous>, transform_indices = @transform_1, window_bounds = array<i64: 2, 16, 64>}, {pipeline_mode = #tpu.pipeline_mode<synchronous>, transform_indices = @transform_2, window_bounds = array<i64: 6, 64, 64>}, {transform_indices = @transform_3, window_bounds = array<i64: 1024, 4>}]} {
    %c0 = arith.constant 0 : index
    %c0_0 = arith.constant 0 : index
    %0 = vector.load %arg1[%c0, %c0_0] : memref<1024x16xf32, #tpu.memory_space<vmem>>, vector<1024x16xf32>
    %1 = arith.truncf %0 : vector<1024x16xf32> to vector<1024x16xbf16>
    %c0_1 = arith.constant 0 : index
    %c0_2 = arith.constant 0 : index
    %c0_3 = arith.constant 0 : index
    %2 = vector.load %arg2[%c0_1, %c0_2, %c0_3] : memref<2x16x64xbf16, #tpu.memory_space<vmem>>, vector<1x16x64xbf16>
    %3 = vector.shape_cast %2 : vector<1x16x64xbf16> to vector<16x64xbf16>
    %cst = arith.constant dense<0.000000e+00> : vector<1024x64xf32>
    %4 = tpu.matmul %1, %3, %cst {dimension_numbers = #tpu.dot_dimension_numbers<[1], [0], [0], [1], [0, 0, 1, 1], [], []>} : vector<1024x16xbf16>, vector<16x64xbf16>, vector<1024x64xf32> -> vector<1024x64xf32>
    %cst_4 = arith.constant 0.000000e+00 : f32
    %5 = vector.broadcast %cst_4 : f32 to vector<1024x64xf32>
    %6 = arith.maximumf %4, %5 : vector<1024x64xf32>
    %7 = arith.truncf %6 : vector<1024x64xf32> to vector<1024x64xbf16>
    %c0_5 = arith.constant 0 : index
    %c0_6 = arith.constant 0 : index
    %c0_7 = arith.constant 0 : index
    %8 = vector.load %arg3[%c0_5, %c0_6, %c0_7] : memref<6x64x64xbf16, #tpu.memory_space<vmem>>, vector<1x64x64xbf16>
    %9 = vector.shape_cast %8 : vector<1x64x64xbf16> to vector<64x64xbf16>
    %cst_8 = arith.constant dense<0.000000e+00> : vector<1024x64xf32>
    %10 = tpu.matmul %7, %9, %cst_8 {dimension_numbers = #tpu.dot_dimension_numbers<[1], [0], [0], [1], [0, 0, 1, 1], [], []>} : vector<1024x64xbf16>, vector<64x64xbf16>, vector<1024x64xf32> -> vector<1024x64xf32>
    %cst_9 = arith.constant 0.000000e+00 : f32
    %11 = vector.broadcast %cst_9 : f32 to vector<1024x64xf32>
    %12 = arith.maximumf %10, %11 : vector<1024x64xf32>
    %13 = arith.truncf %12 : vector<1024x64xf32> to vector<1024x64xbf16>
    %c1 = arith.constant 1 : index
    %c0_10 = arith.constant 0 : index
    %c0_11 = arith.constant 0 : index
    %14 = vector.load %arg3[%c1, %c0_10, %c0_11] : memref<6x64x64xbf16, #tpu.memory_space<vmem>>, vector<1x64x64xbf16>
    %15 = vector.shape_cast %14 : vector<1x64x64xbf16> to vector<64x64xbf16>
    %cst_12 = arith.constant dense<0.000000e+00> : vector<1024x64xf32>
    %16 = tpu.matmul %13, %15, %cst_12 {dimension_numbers = #tpu.dot_dimension_numbers<[1], [0], [0], [1], [0, 0, 1, 1], [], []>} : vector<1024x64xbf16>, vector<64x64xbf16>, vector<1024x64xf32> -> vector<1024x64xf32>
    %17 = vector.extract_strided_slice %16 {offsets = [0, 0], sizes = [1024, 1], strides = [1, 1]} : vector<1024x64xf32> to vector<1024x1xf32>
    %c0_13 = arith.constant 0 : index
    %c3 = arith.constant 3 : index
    %18 = vector.load %arg4[%c0_13, %c3] : memref<1024x4xf32, #tpu.memory_space<vmem>>, vector<1024x1xf32>
    tpu.vector_store %arg4[%c0_13, %c3], %17 {strides = array<i32>} : memref<1024x4xf32, #tpu.memory_space<vmem>>, vector<1024x1xf32>,
    %c0_14 = arith.constant 0 : index
    %c0_15 = arith.constant 0 : index
    %19 = vector.load %arg1[%c0_14, %c0_15] : memref<1024x16xf32, #tpu.memory_space<vmem>>, vector<1024x16xf32>
    %20 = arith.truncf %19 : vector<1024x16xf32> to vector<1024x16xbf16>
    %c1_16 = arith.constant 1 : index
    %c0_17 = arith.constant 0 : index
    %c0_18 = arith.constant 0 : index
    %21 = vector.load %arg2[%c1_16, %c0_17, %c0_18] : memref<2x16x64xbf16, #tpu.memory_space<vmem>>, vector<1x16x64xbf16>
    %22 = vector.shape_cast %21 : vector<1x16x64xbf16> to vector<16x64xbf16>
    %cst_19 = arith.constant dense<0.000000e+00> : vector<1024x64xf32>
    %23 = tpu.matmul %20, %22, %cst_19 {dimension_numbers = #tpu.dot_dimension_numbers<[1], [0], [0], [1], [0, 0, 1, 1], [], []>} : vector<1024x16xbf16>, vector<16x64xbf16>, vector<1024x64xf32> -> vector<1024x64xf32>
    %24 = arith.truncf %16 : vector<1024x64xf32> to vector<1024x64xbf16>
    %c2 = arith.constant 2 : index
    %c0_20 = arith.constant 0 : index
    %c0_21 = arith.constant 0 : index
    %25 = vector.load %arg3[%c2, %c0_20, %c0_21] : memref<6x64x64xbf16, #tpu.memory_space<vmem>>, vector<1x64x64xbf16>
    %26 = vector.shape_cast %25 : vector<1x64x64xbf16> to vector<64x64xbf16>
    %cst_22 = arith.constant dense<0.000000e+00> : vector<1024x64xf32>
    %27 = tpu.matmul %24, %26, %cst_22 {dimension_numbers = #tpu.dot_dimension_numbers<[1], [0], [0], [1], [0, 0, 1, 1], [], []>} : vector<1024x64xbf16>, vector<64x64xbf16>, vector<1024x64xf32> -> vector<1024x64xf32>
    %28 = arith.addf %23, %27 : vector<1024x64xf32>
    %cst_23 = arith.constant 0.000000e+00 : f32
    %29 = vector.broadcast %cst_23 : f32 to vector<1024x64xf32>
    %30 = arith.maximumf %28, %29 : vector<1024x64xf32>
    %31 = arith.truncf %30 : vector<1024x64xf32> to vector<1024x64xbf16>
    %c3_24 = arith.constant 3 : index
    %c0_25 = arith.constant 0 : index
    %c0_26 = arith.constant 0 : index
    %32 = vector.load %arg3[%c3_24, %c0_25, %c0_26] : memref<6x64x64xbf16, #tpu.memory_space<vmem>>, vector<1x64x64xbf16>
    %33 = vector.shape_cast %32 : vector<1x64x64xbf16> to vector<64x64xbf16>
    %cst_27 = arith.constant dense<0.000000e+00> : vector<1024x64xf32>
    %34 = tpu.matmul %31, %33, %cst_27 {dimension_numbers = #tpu.dot_dimension_numbers<[1], [0], [0], [1], [0, 0, 1, 1], [], []>} : vector<1024x64xbf16>, vector<64x64xbf16>, vector<1024x64xf32> -> vector<1024x64xf32>
    %cst_28 = arith.constant 0.000000e+00 : f32
    %35 = vector.broadcast %cst_28 : f32 to vector<1024x64xf32>
    %36 = arith.maximumf %34, %35 : vector<1024x64xf32>
    %37 = arith.truncf %36 : vector<1024x64xf32> to vector<1024x64xbf16>
    %c4 = arith.constant 4 : index
    %c0_29 = arith.constant 0 : index
    %c0_30 = arith.constant 0 : index
    %38 = vector.load %arg3[%c4, %c0_29, %c0_30] : memref<6x64x64xbf16, #tpu.memory_space<vmem>>, vector<1x64x64xbf16>
    %39 = vector.shape_cast %38 : vector<1x64x64xbf16> to vector<64x64xbf16>
    %cst_31 = arith.constant dense<0.000000e+00> : vector<1024x64xf32>
    %40 = tpu.matmul %37, %39, %cst_31 {dimension_numbers = #tpu.dot_dimension_numbers<[1], [0], [0], [1], [0, 0, 1, 1], [], []>} : vector<1024x64xbf16>, vector<64x64xbf16>, vector<1024x64xf32> -> vector<1024x64xf32>
    %cst_32 = arith.constant 0.000000e+00 : f32
    %41 = vector.broadcast %cst_32 : f32 to vector<1024x64xf32>
    %42 = arith.maximumf %40, %41 : vector<1024x64xf32>
    %43 = arith.truncf %42 : vector<1024x64xf32> to vector<1024x64xbf16>
    %c5 = arith.constant 5 : index
    %c0_33 = arith.constant 0 : index
    %c0_34 = arith.constant 0 : index
    %44 = vector.load %arg3[%c5, %c0_33, %c0_34] : memref<6x64x64xbf16, #tpu.memory_space<vmem>>, vector<1x64x64xbf16>
    %45 = vector.shape_cast %44 : vector<1x64x64xbf16> to vector<64x64xbf16>
    %cst_35 = arith.constant dense<0.000000e+00> : vector<1024x64xf32>
    %46 = tpu.matmul %43, %45, %cst_35 {dimension_numbers = #tpu.dot_dimension_numbers<[1], [0], [0], [1], [0, 0, 1, 1], [], []>} : vector<1024x64xbf16>, vector<64x64xbf16>, vector<1024x64xf32> -> vector<1024x64xf32>
    %47 = vector.extract_strided_slice %46 {offsets = [0, 0], sizes = [1024, 3], strides = [1, 1]} : vector<1024x64xf32> to vector<1024x3xf32>
    %c0_36 = arith.constant 0 : index
    %c0_37 = arith.constant 0 : index
    %48 = vector.load %arg4[%c0_36, %c0_37] : memref<1024x4xf32, #tpu.memory_space<vmem>>, vector<1024x3xf32>
    tpu.vector_store %arg4[%c0_36, %c0_37], %47 {strides = array<i32>} : memref<1024x4xf32, #tpu.memory_space<vmem>>, vector<1024x3xf32>,
    return
  }
  func.func @transform_0(%arg0: i32) -> (i32, i32) {
    %c0_i32 = arith.constant 0 : i32
    %c0_i32_0 = arith.constant 0 : i32
    return %arg0, %c0_i32 : i32, i32
  }
  func.func @transform_1(%arg0: i32) -> (i32, i32, i32) {
    %c0_i32 = arith.constant 0 : i32
    %c0_i32_0 = arith.constant 0 : i32
    %c0_i32_1 = arith.constant 0 : i32
    %c0_i32_2 = arith.constant 0 : i32
    return %c0_i32, %c0_i32_0, %c0_i32_1 : i32, i32, i32
  }
  func.func @transform_2(%arg0: i32) -> (i32, i32, i32) {
    %c0_i32 = arith.constant 0 : i32
    %c0_i32_0 = arith.constant 0 : i32
    %c0_i32_1 = arith.constant 0 : i32
    %c0_i32_2 = arith.constant 0 : i32
    return %c0_i32, %c0_i32_0, %c0_i32_1 : i32, i32, i32
  }
  func.func @transform_3(%arg0: i32) -> (i32, i32) {
    %c0_i32 = arith.constant 0 : i32
    %c0_i32_0 = arith.constant 0 : i32
    return %arg0, %c0_i32 : i32, i32
  }
}

</mosaic_0001>

<bundles_post_ra>
// kernel: tpu_custom_call.1
= control target key start
LH: loop header
LB: loop body
LE: loop exit
PB: predicated region body
PF: predicated region fallthrough
CT: control target
= control target key end

     0   :  { %s10790_s12 = smov 0   ;;  %s12696_s0 = inlined_call_operand.vmem [shape: f32[4096,16], index: 0, kind: input, shape index: {}]   ;;  %s12697_s1 = inlined_call_operand.vmem [shape: bf16[2,16,64], index: 1, kind: input, shape index: {}]   ;;  %s12698_s2 = inlined_call_operand.vmem [shape: bf16[6,64,64], index: 2, kind: input, shape index: {}]   ;;  %s12699_s3 = inlined_call_operand.vmem [shape: f32[4096,4], index: 3, kind: output, shape index: {}]  }
   0x1 LB: > { %s8521_s13 = sadd.s32 4294967295, %s10767_s12   ;;  %p8525_p0 = scmp.ge.s32.totalorder %s10767_s12, 1  ;;  %s10767_s12 = sphi %s10790_s12, %s13_s12  }
   0x2   : > { %p138_p1 = scmp.lt.s32.totalorder %s10767_s12, 5 }
   0x4   : > { %p139_p2 = pnand %p8525_p0, %p138_p1 }
   0x5   : > { %s8526_s16 = sshll.u32 (!%p139_p2), %s8521_s13, 7  ;;  %s10769_s26 = smov (!%p139_p2), 3  }
   0x6   : > { %142 = sbr.rel (%p139_p2) target bundleno = 1744 (0x6d0), region = 32  ;;  %p163_p3 = scmp.lt.s32.totalorder (!%p139_p2), %s8526_s16, 511 }
   0xb   : > { %v10735_v0 = vld [vmem:[%s12697_s1] sm:$0xff]   ;;  %s12701_s16 = smov (!%p163_p3, %s8526_s16), 511  ;;  %vm375_vm0 = vcmask 130048   ;;  %v10736_v28 = vld [vmem:[%s12698_s2 + $0x38] sm:$0xff]   ;;  %v10738_v60 = vld [vmem:[%s12698_s2 + $0x10] sm:$0xff]   ;;  %vm1337_vm1 = vcmask 523264  }
   0xc   : > { %9650 = vmatprep.subr.bf16.mxu0 %v10735_v0  ;;  %s8527_s17 = sshll.u32 %s12701_s16, 3  ;;  %v10737_v53 = vld [vmem:[%s12698_s2 + $0x18] sm:$0xff]   ;;  %vm3549_vm2 = vcmask 31768   ;;  %vm8336_vm3 = vcmask 23552  }
   0xd   : > { %9651 = vmatpush3.bf16.msra.mxu0 %v10735_v0  ;;  %s10809_s20 = scalar_lea.vmem %s12696_s0, %s8527_s17  ;;  %9780 = vmatprep.subr.bf16.mxu1 %v10737_v53  ;;  %s11325_s10 = scalar_lea.vmem %s12699_s3, %s8527_s17 }
   0xe   : > { %v175_v1 = vld [vmem:[%s10809_s20] sm:$0xff]  ;;  %v176_v2 = vld [vmem:[%s10809_s20 + $0x8] sm:$0xff]  ;;  %v177_v3 = vld [vmem:[%s10809_s20 + $0x10] sm:$0xff]  ;;  %9916 = vmatprep.subr.bf16.mxu0 %v10736_v28  ;;  %9781 = vmatpush3.bf16.msra.mxu1 %v10737_v53 }
   0xf   : > { %v303_v4 = vpack.c.bf16 %v176_v2, %v175_v1  ;;  %v178_v5 = vld [vmem:[%s10809_s20 + $0x18] sm:$0xff]  ;;  %v179_v6 = vld [vmem:[%s10809_s20 + $0x20] sm:$0xff]  ;;  %v180_v7 = vld [vmem:[%s10809_s20 + $0x28] sm:$0xff]  ;;  %9782 = vmatprep.subr.bf16.mxu1 %v10738_v60 }
  0x10   : > { %v304_v8 = vpack.c.bf16 %v178_v5, %v177_v3  ;;  %v305_v9 = vpack.c.bf16 %v180_v7, %v179_v6  ;;  %v181_v10 = vld [vmem:[%s10809_s20 + $0x30] sm:$0xff]  ;;  %v182_v11 = vld [vmem:[%s10809_s20 + $0x38] sm:$0xff]  ;;  %v183_v12 = vld [vmem:[%s10809_s20 + $0x40] sm:$0xff] }
  0x11   : > { %9652 = vmatprep.mubr.msk.bf16.mxu0 %vm375_vm0, %v303_v4  ;;  %v184_v13 = vld [vmem:[%s10809_s20 + $0x48] sm:$0xff]  ;;  %v306_v14 = vpack.c.bf16 %v182_v11, %v181_v10  ;;  %v185_v16 = vld [vmem:[%s10809_s20 + $0x50] sm:$0xff]  ;;  %v186_v17 = vld [vmem:[%s10809_s20 + $0x58] sm:$0xff] }
  0x12   : > { %9653 = vmatmul.mubr.msk.bf16.vlgmr.msra.gmra.mxu0 %vm375_vm0, %v304_v8  ;;  %v307_v15 = vpack.c.bf16 %v184_v13, %v183_v12  ;;  %v187_v18 = vld [vmem:[%s10809_s20 + $0x60] sm:$0xff]  ;;  %v188_v19 = vld [vmem:[%s10809_s20 + $0x68] sm:$0xff]  ;;  %v308_v20 = vpack.c.bf16 %v186_v17, %v185_v16  ;;  %v189_v22 = vld [vmem:[%s10809_s20 + $0x70] sm:$0xff]  ;;  %9783 = vmatpush3.bf16.msra.mxu1 %v10738_v60 }
  0x13   : > { %9656 = vmatprep.mubr.msk.bf16.mxu0 %vm375_vm0, %v305_v9  ;;  %v309_v21 = vpack.c.bf16 %v188_v19, %v187_v18  ;;  %v190_v23 = vld [vmem:[%s10809_s20 + $0x78] sm:$0xff]  ;;  %v191_v24 = vld [vmem:[%s10809_s20 + $0x80] sm:$0xff]  ;;  %v192_v25 = vld [vmem:[%s10809_s20 + $0x88] sm:$0xff]  ;;  %9917 = vmatpush3.bf16.msra.mxu0 %v10736_v28 }
  0x14   : > { %v310_v26 = vpack.c.bf16 %v190_v23, %v189_v22  ;;  %v311_v27 = vpack.c.bf16 %v192_v25, %v191_v24  ;;  %v193_v29 = vld [vmem:[%s10809_s20 + $0x90] sm:$0xff]  ;;  %v194_v30 = vld [vmem:[%s10809_s20 + $0x98] sm:$0xff]  ;;  %v195_v31 = vld [vmem:[%s10809_s20 + $0xa0] sm:$0xff] }
  0x15   : > { %v196_v32 = vld [vmem:[%s10809_s20 + $0xa8] sm:$0xff]  ;;  %v312_v33 = vpack.c.bf16 %v194_v30, %v193_v29  ;;  %v197_v35 = vld [vmem:[%s10809_s20 + $0xb0] sm:$0xff]  ;;  %v198_v36 = vld [vmem:[%s10809_s20 + $0xb8] sm:$0xff] }
  0x16   : > { %v313_v34 = vpack.c.bf16 %v196_v32, %v195_v31  ;;  %v199_v37 = vld [vmem:[%s10809_s20 + $0xc0] sm:$0xff]  ;;  %v200_v38 = vld [vmem:[%s10809_s20 + $0xc8] sm:$0xff]  ;;  %v314_v39 = vpack.c.bf16 %v198_v36, %v197_v35  ;;  %v201_v41 = vld [vmem:[%s10809_s20 + $0xd0] sm:$0xff] }
  0x17   : > { %v315_v40 = vpack.c.bf16 %v200_v38, %v199_v37  ;;  %v202_v42 = vld [vmem:[%s10809_s20 + $0xd8] sm:$0xff]  ;;  %v203_v43 = vld [vmem:[%s10809_s20 + $0xe0] sm:$0xff]  ;;  %v204_v44 = vld [vmem:[%s10809_s20 + $0xe8] sm:$0xff] }
  0x18   : > { %v316_v45 = vpack.c.bf16 %v202_v42, %v201_v41  ;;  %v317_v46 = vpack.c.bf16 %v204_v44, %v203_v43  ;;  %v205_v47 = vld [vmem:[%s10809_s20 + $0xf0] sm:$0xff]  ;;  %v206_v48 = vld [vmem:[%s10809_s20 + $0xf8] sm:$0xff]  ;;  %v207_v49 = vld [vmem:[%s10809_s20 + $0x100] sm:$0xff] }
  0x19   : > { %v208_v50 = vld [vmem:[%s10809_s20 + $0x108] sm:$0xff]  ;;  %v318_v51 = vpack.c.bf16 %v206_v48, %v205_v47  ;;  %v209_v54 = vld [vmem:[%s10809_s20 + $0x110] sm:$0xff]  ;;  %v210_v55 = vld [vmem:[%s10809_s20 + $0x118] sm:$0xff] }
  0x1a   : > { %9657 = vmatmul.mubr.msk.bf16.gmra.mxu0 %vm375_vm0, %v306_v14  ;;  %v319_v52 = vpack.c.bf16 %v208_v50, %v207_v49  ;;  %v211_v56 = vld [vmem:[%s10809_s20 + $0x120] sm:$0xff]  ;;  %v212_v57 = vld [vmem:[%s10809_s20 + $0x128] sm:$0xff]  ;;  %v320_v58 = vpack.c.bf16 %v210_v55, %v209_v54  ;;  %v213_v61 = vld [vmem:[%s10809_s20 + $0x130] sm:$0xff] }
  0x1b   : > { %9660 = vmatprep.mubr.msk.bf16.mxu0 %vm375_vm0, %v307_v15  ;;  %v321_v59 = vpack.c.bf16 %v212_v57, %v211_v56  ;;  %v214_v62 = vld [vmem:[%s10809_s20 + $0x138] sm:$0xff]  ;;  %v215_v63 = vld [vmem:[%s10809_s20 + $0x140] sm:$0xff]  ;;  %v216_v0 = vld [vmem:[%s10809_s20 + $0x148] sm:$0xff] }
  0x1c   : > { %v10739_v1 = vld [vmem:[%s12698_s2 + $0x8] sm:$0xff]   ;;  %v322_v2 = vpack.c.bf16 %v214_v62, %v213_v61  ;;  %v323_v3 = vpack.c.bf16 %v216_v0, %v215_v63  ;;  %v10740_v4 = vld [vmem:[%s12698_s2] sm:$0xff]   ;;  %v217_v5 = vld [vmem:[%s10809_s20 + $0x150] sm:$0xff] }
  0x1d   : > { %9784 = vmatprep.subr.bf16.mxu1 %v10739_v1  ;;  %v218_v6 = vld [vmem:[%s10809_s20 + $0x158] sm:$0xff]  ;;  %v219_v7 = vld [vmem:[%s10809_s20 + $0x160] sm:$0xff]  ;;  %v220_v8 = vld [vmem:[%s10809_s20 + $0x168] sm:$0xff] }
  0x1e   : > { %9785 = vmatpush3.bf16.msra.mxu1 %v10739_v1  ;;  %v324_v9 = vpack.c.bf16 %v218_v6, %v217_v5  ;;  %v325_v10 = vpack.c.bf16 %v220_v8, %v219_v7  ;;  %v221_v11 = vld [vmem:[%s10809_s20 + $0x170] sm:$0xff]  ;;  %v222_v12 = vld [vmem:[%s10809_s20 + $0x178] sm:$0xff]  ;;  %v223_v13 = vld [vmem:[%s10809_s20 + $0x180] sm:$0xff] }
  0x1f   : > { %9786 = vmatprep.subr.bf16.mxu1 %v10740_v4  ;;  %v224_v14 = vld [vmem:[%s10809_s20 + $0x188] sm:$0xff]  ;;  %v326_v15 = vpack.c.bf16 %v222_v12, %v221_v11  ;;  %v225_v17 = vld [vmem:[%s10809_s20 + $0x190] sm:$0xff]  ;;  %v226_v18 = vld [vmem:[%s10809_s20 + $0x198] sm:$0xff] }
  0x20   : > { %v327_v16 = vpack.c.bf16 %v224_v14, %v223_v13  ;;  %v10741_v19 = vld [vmem:[%s12698_s2 + $0x30] sm:$0xff]   ;;  %v328_v22 = vpack.c.bf16 %v226_v18, %v225_v17  ;;  %v230_v25 = vld [vmem:[%s10809_s20 + $0x1b8] sm:$0xff]  ;;  %v235_v32 = vld [vmem:[%s10809_s20 + $0x1e0] sm:$0xff] }
  0x21   : > { %9918 = vmatprep.subr.bf16.mxu0 %v10741_v19  ;;  %v229_v24 = vld [vmem:[%s10809_s20 + $0x1b0] sm:$0xff]  ;;  %v234_v31 = vld [vmem:[%s10809_s20 + $0x1d8] sm:$0xff]  ;;  %v239_v38 = vld [vmem:[%s10809_s20 + $0x200] sm:$0xff] }
  0x22   : > { %9661 = vmatmul.mubr.msk.bf16.gmra.mxu0 %vm375_vm0, %v308_v20  ;;  %9787 = vmatpush3.bf16.msra.mxu1 %v10740_v4  ;;  %v227_v20 = vld [vmem:[%s10809_s20 + $0x1a0] sm:$0xff]  ;;  %v330_v28 = vpack.c.bf16 %v230_v25, %v229_v24  ;;  %v233_v30 = vld [vmem:[%s10809_s20 + $0x1d0] sm:$0xff]  ;;  %v238_v37 = vld [vmem:[%s10809_s20 + $0x1f8] sm:$0xff] }
  0x23   : > { %9664 = vmatprep.mubr.msk.bf16.mxu0 %vm375_vm0, %v309_v21  ;;  %v228_v21 = vld [vmem:[%s10809_s20 + $0x1a8] sm:$0xff]  ;;  %9919 = vmatpush3.bf16.msra.mxu0 %v10741_v19  ;;  %v237_v36 = vld [vmem:[%s10809_s20 + $0x1f0] sm:$0xff]  ;;  %v242_v43 = vld [vmem:[%s10809_s20 + $0x218] sm:$0xff] }
  0x24   : > { %v329_v23 = vpack.c.bf16 %v228_v21, %v227_v20  ;;  %v241_v42 = vld [vmem:[%s10809_s20 + $0x210] sm:$0xff]  ;;  %v243_v44 = vld [vmem:[%s10809_s20 + $0x220] sm:$0xff]  ;;  %v246_v49 = vld [vmem:[%s10809_s20 + $0x238] sm:$0xff] }
  0x25   : > { %v245_v48 = vld [vmem:[%s10809_s20 + $0x230] sm:$0xff]  ;;  %v247_v50 = vld [vmem:[%s10809_s20 + $0x240] sm:$0xff]  ;;  %v250_v55 = vld [vmem:[%s10809_s20 + $0x258] sm:$0xff] }
  0x26   : > { %v249_v54 = vld [vmem:[%s10809_s20 + $0x250] sm:$0xff]  ;;  %v251_v56 = vld [vmem:[%s10809_s20 + $0x260] sm:$0xff]  ;;  %v252_v57 = vld [vmem:[%s10809_s20 + $0x268] sm:$0xff] }
  0x27   : > { %v253_v60 = vld [vmem:[%s10809_s20 + $0x270] sm:$0xff]  ;;  %v254_v61 = vld [vmem:[%s10809_s20 + $0x278] sm:$0xff]  ;;  %v255_v62 = vld [vmem:[%s10809_s20 + $0x280] sm:$0xff] }
  0x28   : > { %v256_v63 = vld [vmem:[%s10809_s20 + $0x288] sm:$0xff]  ;;  %v342_v0 = vpack.c.bf16 %v254_v61, %v253_v60  ;;  %v259_v5 = vld [vmem:[%s10809_s20 + $0x2a0] sm:$0xff]  ;;  %v269_v21 = vld [vmem:[%s10809_s20 + $0x2f0] sm:$0xff] }
  0x29   : > { %v343_v1 = vpack.c.bf16 %v256_v63, %v255_v62  ;;  %v10742_v4 = vld [vmem:[%s12698_s2 + $0x28] sm:$0xff]   ;;  %v263_v11 = vld [vmem:[%s10809_s20 + $0x2c0] sm:$0xff] }
  0x2a   : > { %9665 = vmatmul.mubr.msk.bf16.gmra.mxu0 %vm375_vm0, %v310_v26  ;;  %v231_v26 = vld [vmem:[%s10809_s20 + $0x1c0] sm:$0xff]  ;;  %v260_v6 = vld [vmem:[%s10809_s20 + $0x2a8] sm:$0xff]  ;;  %9920 = vmatprep.subr.bf16.mxu0 %v10742_v4 }
  0x2b   : > { %9668 = vmatprep.mubr.msk.bf16.mxu0 %vm375_vm0, %v311_v27  ;;  %v232_v27 = vld [vmem:[%s10809_s20 + $0x1c8] sm:$0xff]  ;;  %9921 = vmatpush3.bf16.msra.mxu0 %v10742_v4  ;;  %v345_v8 = vpack.c.bf16 %v260_v6, %v259_v5  ;;  %v267_v17 = vld [vmem:[%s10809_s20 + $0x2e0] sm:$0xff] }
  0x2c   : > { %v331_v29 = vpack.c.bf16 %v232_v27, %v231_v26  ;;  %v264_v12 = vld [vmem:[%s10809_s20 + $0x2c8] sm:$0xff]  ;;  %v273_v27 = vld [vmem:[%s10809_s20 + $0x310] sm:$0xff]  ;;  %v287_v5 = vld [vmem:[%s10809_s20 + $0x380] sm:$0xff] }
  0x2d   : > { %v347_v14 = vpack.c.bf16 %v264_v12, %v263_v11  ;;  %v268_v18 = vld [vmem:[%s10809_s20 + $0x2e8] sm:$0xff] }
  0x2e   : > { %v349_v20 = vpack.c.bf16 %v268_v18, %v267_v17  ;;  %v272_v24 = vld [vmem:[%s10809_s20 + $0x308] sm:$0xff]  ;;  %v289_v17 = vld [vmem:[%s10809_s20 + $0x390] sm:$0xff]  ;;  %v290_v18 = vld [vmem:[%s10809_s20 + $0x398] sm:$0xff] }
  0x2f   : > { %v288_v6 = vld [vmem:[%s10809_s20 + $0x388] sm:$0xff] }
  0x32   : > { %9669 = vmatmul.mubr.msk.bf16.gmra.mxu0 %vm375_vm0, %v312_v33  ;;  %v236_v33 = vld [vmem:[%s10809_s20 + $0x1e8] sm:$0xff] }
  0x33   : > { %9672 = vmatprep.mubr.msk.bf16.mxu0 %vm375_vm0, %v313_v34  ;;  %v332_v34 = vpack.c.bf16 %v234_v31, %v233_v30  ;;  %v333_v35 = vpack.c.bf16 %v236_v33, %v235_v32  ;;  %v276_v30 = vld [vmem:[%s10809_s20 + $0x328] sm:$0xff] }
  0x3a   : > { %9673 = vmatmul.mubr.msk.bf16.gmra.mxu0 %vm375_vm0, %v314_v39  ;;  %v240_v39 = vld [vmem:[%s10809_s20 + $0x208] sm:$0xff] }
  0x3b   : > { %9676 = vmatprep.mubr.msk.bf16.mxu0 %vm375_vm0, %v315_v40  ;;  %v334_v40 = vpack.c.bf16 %v238_v37, %v237_v36  ;;  %v335_v41 = vpack.c.bf16 %v240_v39, %v239_v38  ;;  %v279_v37 = vld [vmem:[%s10809_s20 + $0x340] sm:$0xff]  ;;  %v280_v38 = vld [vmem:[%s10809_s20 + $0x348] sm:$0xff] }
  0x42   : > { %9677 = vmatmul.mubr.msk.bf16.gmra.mxu0 %vm375_vm0, %v316_v45  ;;  %v244_v45 = vld [vmem:[%s10809_s20 + $0x228] sm:$0xff] }
  0x43   : > { %9680 = vmatprep.mubr.msk.bf16.mxu0 %vm375_vm0, %v317_v46  ;;  %v336_v46 = vpack.c.bf16 %v242_v43, %v241_v42  ;;  %v337_v47 = vpack.c.bf16 %v244_v45, %v243_v44 }
  0x4a   : > { %9681 = vmatmul.mubr.msk.bf16.gmra.mxu0 %vm375_vm0, %v318_v51  ;;  %v248_v51 = vld [vmem:[%s10809_s20 + $0x248] sm:$0xff] }
  0x4b   : > { %9684 = vmatprep.mubr.msk.bf16.mxu0 %vm375_vm0, %v319_v52  ;;  %v338_v52 = vpack.c.bf16 %v246_v49, %v245_v48  ;;  %v339_v53 = vpack.c.bf16 %v248_v51, %v247_v50  ;;  %v281_v49 = vld [vmem:[%s10809_s20 + $0x350] sm:$0xff]  ;;  %v282_v50 = vld [vmem:[%s10809_s20 + $0x358] sm:$0xff] }
  0x52   : > { %9685 = vmatmul.mubr.msk.bf16.gmra.mxu0 %vm375_vm0, %v320_v58  ;;  %v340_v58 = vpack.c.bf16 %v250_v55, %v249_v54  ;;  %v284_v54 = vld [vmem:[%s10809_s20 + $0x368] sm:$0xff] }
  0x53   : > { %9688 = vmatprep.mubr.msk.bf16.mxu0 %vm375_vm0, %v321_v59  ;;  %v341_v59 = vpack.c.bf16 %v252_v57, %v251_v56  ;;  %v356_v56 = vpack.c.bf16 %v282_v50, %v281_v49 }
  0x5a   : > { %9689 = vmatmul.mubr.msk.bf16.gmra.mxu0 %vm375_vm0, %v322_v2  ;;  %v257_v2 = vld [vmem:[%s10809_s20 + $0x290] sm:$0xff] }
  0x5b   : > { %9692 = vmatprep.mubr.msk.bf16.mxu0 %vm375_vm0, %v323_v3  ;;  %v258_v3 = vld [vmem:[%s10809_s20 + $0x298] sm:$0xff] }
  0x5c   : > { %v344_v7 = vpack.c.bf16 %v258_v3, %v257_v2  ;;  %v286_v2 = vld [vmem:[%s10809_s20 + $0x378] sm:$0xff] }
  0x62   : > { %9693 = vmatmul.mubr.msk.bf16.gmra.mxu0 %vm375_vm0, %v324_v9  ;;  %v261_v9 = vld [vmem:[%s10809_s20 + $0x2b0] sm:$0xff] }
  0x63   : > { %9696 = vmatprep.mubr.msk.bf16.mxu0 %vm375_vm0, %v325_v10  ;;  %v262_v10 = vld [vmem:[%s10809_s20 + $0x2b8] sm:$0xff] }
  0x64   : > { %v346_v13 = vpack.c.bf16 %v262_v10, %v261_v9  ;;  %v359_v9 = vpack.c.bf16 %v288_v6, %v287_v5 }
  0x6a   : > { %9697 = vmatmul.mubr.msk.bf16.gmra.mxu0 %vm375_vm0, %v326_v15  ;;  %v265_v15 = vld [vmem:[%s10809_s20 + $0x2d0] sm:$0xff] }
  0x6b   : > { %9700 = vmatprep.mubr.msk.bf16.mxu0 %vm375_vm0, %v327_v16  ;;  %v266_v16 = vld [vmem:[%s10809_s20 + $0x2d8] sm:$0xff] }
  0x6c   : > { %v348_v19 = vpack.c.bf16 %v266_v16, %v265_v15 }
  0x72   : > { %9701 = vmatmul.mubr.msk.bf16.gmra.mxu0 %vm375_vm0, %v328_v22  ;;  %v270_v22 = vld [vmem:[%s10809_s20 + $0x2f8] sm:$0xff] }
  0x73   : > { %9704 = vmatprep.mubr.msk.bf16.mxu0 %vm375_vm0, %v329_v23  ;;  %v271_v23 = vld [vmem:[%s10809_s20 + $0x300] sm:$0xff]  ;;  %v350_v25 = vpack.c.bf16 %v270_v22, %v269_v21 }
  0x74   : > { %v351_v26 = vpack.c.bf16 %v272_v24, %v271_v23  ;;  %v291_v22 = vld [vmem:[%s10809_s20 + $0x3a0] sm:$0xff]  ;;  %v292_v23 = vld [vmem:[%s10809_s20 + $0x3a8] sm:$0xff] }
  0x7a   : > { %9705 = vmatmul.mubr.msk.bf16.gmra.mxu0 %vm375_vm0, %v330_v28  ;;  %v274_v28 = vld [vmem:[%s10809_s20 + $0x318] sm:$0xff] }
  0x7b   : > { %9708 = vmatprep.mubr.msk.bf16.mxu0 %vm375_vm0, %v331_v29  ;;  %v275_v29 = vld [vmem:[%s10809_s20 + $0x320] sm:$0xff]  ;;  %v352_v31 = vpack.c.bf16 %v274_v28, %v273_v27 }
  0x7c   : > { %v353_v32 = vpack.c.bf16 %v276_v30, %v275_v29 }
  0x82   : > { %9709 = vmatmul.mubr.msk.bf16.gmra.mxu0 %vm375_vm0, %v332_v34  ;;  %v277_v34 = vld [vmem:[%s10809_s20 + $0x330] sm:$0xff] }
  0x83   : > { %9712 = vmatprep.mubr.msk.bf16.mxu0 %vm375_vm0, %v333_v35  ;;  %v278_v35 = vld [vmem:[%s10809_s20 + $0x338] sm:$0xff] }
  0x8a   : > { %9713 = vmatmul.mubr.msk.bf16.gmra.mxu0 %vm375_vm0, %v334_v40  ;;  %v354_v40 = vpack.c.bf16 %v278_v35, %v277_v34  ;;  %v293_v34 = vld [vmem:[%s10809_s20 + $0x3b0] sm:$0xff]  ;;  %v294_v35 = vld [vmem:[%s10809_s20 + $0x3b8] sm:$0xff] }
  0x8b   : > { %9716 = vmatprep.mubr.msk.bf16.mxu0 %vm375_vm0, %v335_v41  ;;  %v355_v41 = vpack.c.bf16 %v280_v38, %v279_v37  ;;  %v295_v38 = vld [vmem:[%s10809_s20 + $0x3c0] sm:$0xff] }
  0x92   : > { %9717 = vmatmul.mubr.msk.bf16.gmra.mxu0 %vm375_vm0, %v336_v46 }
  0x93   : > { %9720 = vmatprep.mubr.msk.bf16.mxu0 %vm375_vm0, %v337_v47 }
  0x9a   : > { %9721 = vmatmul.mubr.msk.bf16.gmra.mxu0 %vm375_vm0, %v338_v52 }
  0x9b   : > { %9724 = vmatprep.mubr.msk.bf16.mxu0 %vm375_vm0, %v339_v53  ;;  %v283_v53 = vld [vmem:[%s10809_s20 + $0x360] sm:$0xff] }
  0x9c   : > { %v357_v57 = vpack.c.bf16 %v284_v54, %v283_v53 }
  0xa2   : > { %9725 = vmatmul.mubr.msk.bf16.gmra.mxu0 %vm375_vm0, %v340_v58 }
  0xa3   : > { %9728 = vmatprep.mubr.msk.bf16.mxu0 %vm375_vm0, %v341_v59 }
  0xaa   : > { %9729 = vmatmul.mubr.msk.bf16.gmra.mxu0 %vm375_vm0, %v342_v0 }
  0xab   : > { %9732 = vmatprep.mubr.msk.bf16.mxu0 %vm375_vm0, %v343_v1  ;;  %v285_v1 = vld [vmem:[%s10809_s20 + $0x370] sm:$0xff] }
  0xb2   : > { %9733 = vmatmul.mubr.msk.bf16.gmra.mxu0 %vm375_vm0, %v344_v7 }
  0xb3   : > { %9736 = vmatprep.mubr.msk.bf16.mxu0 %vm375_vm0, %v345_v8  ;;  %v358_v8 = vpack.c.bf16 %v286_v2, %v285_v1 }
  0xba   : > { %9737 = vmatmul.mubr.msk.bf16.gmra.mxu0 %vm375_vm0, %v346_v13 }
  0xbb   : > { %9740 = vmatprep.mubr.msk.bf16.mxu0 %vm375_vm0, %v347_v14 }
  0xc2   : > { %9741 = vmatmul.mubr.msk.bf16.gmra.mxu0 %vm375_vm0, %v348_v19  ;;  %v10743_v19 = vld [vmem:[%s12698_s2 + $0x20] sm:$0xff]  }
  0xc3   : > { %9744 = vmatprep.mubr.msk.bf16.mxu0 %vm375_vm0, %v349_v20  ;;  %9922 = vmatprep.subr.bf16.mxu0 %v10743_v19 }
  0xc4   : > { %9923 = vmatpush3.bf16.msra.mxu0 %v10743_v19 }
  0xca   : > { %9745 = vmatmul.mubr.msk.bf16.gmra.mxu0 %vm375_vm0, %v350_v25  ;;  %v360_v25 = vpack.c.bf16 %v290_v18, %v289_v17 }
  0xcb   : > { %9748 = vmatprep.mubr.msk.bf16.mxu0 %vm375_vm0, %v351_v26  ;;  %v361_v26 = vpack.c.bf16 %v292_v23, %v291_v22 }
  0xd2   : > { %v9654_v33 = vpop.f32.mrf.mxu0  ;;  %9749 = vmatmul.mubr.msk.bf16.gmra.mxu0 %vm375_vm0, %v352_v31 }
  0xd3   : > { %9752 = vmatprep.mubr.msk.bf16.mxu0 %vm375_vm0, %v353_v32  ;;  %v1115_v46 = vmax.f32 %v9654_v33, 0.0 }
  0xd4   : > { %v602_v36 = vpop.f32.mrf.mxu0 }
  0xd5   : > { %v1113_v44 = vmax.f32 %v602_v36, 0.0 }
  0xd6   : > { %v9655_v39 = vpop.f32.mrf.mxu0 }
  0xd7   : > { %v1116_v42 = vmax.f32 %v9655_v39, 0.0  ;;  %v296_v39 = vld [vmem:[%s10809_s20 + $0x3c8] sm:$0xff] }
  0xd8   : > { %v605_v43 = vpop.f32.mrf.mxu0 }
  0xd9   : > { %v1114_v45 = vmax.f32 %v605_v43, 0.0  ;;  %v1242_v51 = vpack.c.bf16 %v1116_v42, %v1115_v46  ;;  %v363_v42 = vpack.c.bf16 %v296_v39, %v295_v38 }
  0xda   : > { %v9658_v47 = vpop.f32.mrf.mxu0  ;;  %9753 = vmatmul.mubr.msk.bf16.gmra.mxu0 %vm375_vm0, %v354_v40 }
  0xdb   : > { %v1241_v48 = vpack.c.bf16 %v1114_v45, %v1113_v44  ;;  %9756 = vmatprep.mubr.msk.bf16.mxu0 %vm375_vm0, %v355_v41  ;;  %v1119_v62 = vmax.f32 %v9658_v47, 0.0  ;;  %v362_v41 = vpack.c.bf16 %v294_v35, %v293_v34  ;;  %v10744_v47 = vld [vmem:[%s12698_s2 + $0x58] sm:$0xff]  }
  0xdc   : > { %v618_v52 = vpop.f32.mrf.mxu0  ;;  %10052 = vmatprep.subr.bf16.mxu1 %v10744_v47 }
  0xdd   : > { %9788 = vmatprep.mubr.msk.bf16.mxu1 %vm1337_vm1, %v1241_v48  ;;  %v1117_v60 = vmax.f32 %v618_v52, 0.0  ;;  %v298_v52 = vld [vmem:[%s10809_s20 + $0x3d8] sm:$0xff] }
  0xde   : > { %v9659_v55 = vpop.f32.mrf.mxu0  ;;  %9789 = vmatmul.mubr.msk.bf16.vlgmr.msra.gmra.mxu1 %vm1337_vm1, %v1242_v51  ;;  %v297_v51 = vld [vmem:[%s10809_s20 + $0x3d0] sm:$0xff] }
  0xdf   : > { %v1120_v58 = vmax.f32 %v9659_v55, 0.0  ;;  %v299_v55 = vld [vmem:[%s10809_s20 + $0x3e0] sm:$0xff]  ;;  %10053 = vmatpush3.bf16.msra.mxu1 %v10744_v47 }
  0xe0   : > { %v621_v59 = vpop.f32.mrf.mxu0 }
  0xe1   : > { %v1118_v61 = vmax.f32 %v621_v59, 0.0  ;;  %v1244_v3 = vpack.c.bf16 %v1120_v58, %v1119_v62  ;;  %v364_v58 = vpack.c.bf16 %v298_v52, %v297_v51 }
  0xe2   : > { %v9662_v63 = vpop.f32.mrf.mxu0  ;;  %9757 = vmatmul.mubr.msk.bf16.gmra.mxu0 %vm375_vm0, %v356_v56  ;;  %v300_v56 = vld [vmem:[%s10809_s20 + $0x3e8] sm:$0xff] }
  0xe3   : > { %v1243_v0 = vpack.c.bf16 %v1118_v61, %v1117_v60  ;;  %9760 = vmatprep.mubr.msk.bf16.mxu0 %vm375_vm0, %v357_v57  ;;  %v1123_v14 = vmax.f32 %v9662_v63, 0.0  ;;  %v365_v59 = vpack.c.bf16 %v300_v56, %v299_v55  ;;  %v11053_v56 = vld [vmem:[%s12697_s1 + $0x8] sm:$0xff]  }
  0xe4   : > { %v634_v4 = vpop.f32.mrf.mxu0  ;;  %10188 = vmatprep.subr.bf16.mxu0 %v11053_v56 }
  0xe5   : > { %9792 = vmatprep.mubr.msk.bf16.mxu1 %vm1337_vm1, %v1243_v0  ;;  %v1121_v12 = vmax.f32 %v634_v4, 0.0  ;;  %v302_v4 = vld [vmem:[%s10809_s20 + $0x3f8] sm:$0xff] }
  0xe6   : > { %v9663_v7 = vpop.f32.mrf.mxu0  ;;  %9793 = vmatmul.mubr.msk.bf16.gmra.mxu1 %vm1337_vm1, %v1244_v3  ;;  %v301_v3 = vld [vmem:[%s10809_s20 + $0x3f0] sm:$0xff] }
  0xe7   : > { %v1124_v10 = vmax.f32 %v9663_v7, 0.0 }
  0xe8   : > { %v637_v11 = vpop.f32.mrf.mxu0 }
  0xe9   : > { %v1122_v13 = vmax.f32 %v637_v11, 0.0  ;;  %v1246_v20 = vpack.c.bf16 %v1124_v10, %v1123_v14 }
  0xea   : > { %v9666_v15 = vpop.f32.mrf.mxu0  ;;  %9761 = vmatmul.mubr.msk.bf16.gmra.mxu0 %vm375_vm0, %v358_v8  ;;  %v366_v8 = vpack.c.bf16 %v302_v4, %v301_v3 }
  0xeb   : > { %v1245_v16 = vpack.c.bf16 %v1122_v13, %v1121_v12  ;;  %9764 = vmatprep.mubr.msk.bf16.mxu0 %vm375_vm0, %v359_v9  ;;  %v1127_v31 = vmax.f32 %v9666_v15, 0.0 }
  0xec   : > { %v650_v21 = vpop.f32.mrf.mxu0 }
  0xed   : > { %9796 = vmatprep.mubr.msk.bf16.mxu1 %vm1337_vm1, %v1245_v16  ;;  %v1125_v29 = vmax.f32 %v650_v21, 0.0 }
  0xee   : > { %v9667_v24 = vpop.f32.mrf.mxu0  ;;  %9797 = vmatmul.mubr.msk.bf16.gmra.mxu1 %vm1337_vm1, %v1246_v20 }
  0xef   : > { %v1128_v27 = vmax.f32 %v9667_v24, 0.0 }
  0xf0   : > { %v653_v28 = vpop.f32.mrf.mxu0 }
  0xf1   : > { %v1126_v30 = vmax.f32 %v653_v28, 0.0  ;;  %v1248_v36 = vpack.c.bf16 %v1128_v27, %v1127_v31 }
  0xf2   : > { %v9670_v32 = vpop.f32.mrf.mxu0  ;;  %9765 = vmatmul.mubr.msk.bf16.gmra.mxu0 %vm375_vm0, %v360_v25 }
  0xf3   : > { %v1247_v33 = vpack.c.bf16 %v1126_v30, %v1125_v29  ;;  %9768 = vmatprep.mubr.msk.bf16.mxu0 %vm375_vm0, %v361_v26  ;;  %v1131_v48 = vmax.f32 %v9670_v32, 0.0 }
  0xf4   : > { %v666_v37 = vpop.f32.mrf.mxu0 }
  0xf5   : > { %9800 = vmatprep.mubr.msk.bf16.mxu1 %vm1337_vm1, %v1247_v33  ;;  %v1129_v45 = vmax.f32 %v666_v37, 0.0 }
  0xf6   : > { %v9671_v40 = vpop.f32.mrf.mxu0  ;;  %9801 = vmatmul.mubr.msk.bf16.gmra.mxu1 %vm1337_vm1, %v1248_v36 }
  0xf7   : > { %v1132_v43 = vmax.f32 %v9671_v40, 0.0 }
  0xf8   : > { %v669_v44 = vpop.f32.mrf.mxu0 }
  0xf9   : > { %v1130_v46 = vmax.f32 %v669_v44, 0.0  ;;  %v1250_v53 = vpack.c.bf16 %v1132_v43, %v1131_v48 }
  0xfa   : > { %v9674_v49 = vpop.f32.mrf.mxu0  ;;  %9769 = vmatmul.mubr.msk.bf16.gmra.mxu0 %vm375_vm0, %v362_v41 }
  0xfb   : > { %v1249_v50 = vpack.c.bf16 %v1130_v46, %v1129_v45  ;;  %9772 = vmatprep.mubr.msk.bf16.mxu0 %vm375_vm0, %v363_v42  ;;  %v1135_v0 = vmax.f32 %v9674_v49, 0.0 }
  0xfc   : > { %v682_v54 = vpop.f32.mrf.mxu0 }
  0xfd   : > { %9804 = vmatprep.mubr.msk.bf16.mxu1 %vm1337_vm1, %v1249_v50  ;;  %v1133_v62 = vmax.f32 %v682_v54, 0.0 }
  0xfe   : > { %v9675_v57 = vpop.f32.mrf.mxu0  ;;  %9805 = vmatmul.mubr.msk.bf16.gmra.mxu1 %vm1337_vm1, %v1250_v53 }
  0xff   : > { %v1136_v60 = vmax.f32 %v9675_v57, 0.0 }
 0x100   : > { %v685_v61 = vpop.f32.mrf.mxu0 }
 0x101   : > { %v1134_v63 = vmax.f32 %v685_v61, 0.0  ;;  %v1252_v5 = vpack.c.bf16 %v1136_v60, %v1135_v0 }
 0x102   : > { %v9678_v1 = vpop.f32.mrf.mxu0  ;;  %9773 = vmatmul.mubr.msk.bf16.gmra.mxu0 %vm375_vm0, %v364_v58 }
 0x103   : > { %v1251_v2 = vpack.c.bf16 %v1134_v63, %v1133_v62  ;;  %9776 = vmatprep.mubr.msk.bf16.mxu0 %vm375_vm0, %v365_v59  ;;  %v1139_v13 = vmax.f32 %v9678_v1, 0.0 }
 0x104   : > { %v698_v6 = vpop.f32.mrf.mxu0 }
 0x105   : > { %9808 = vmatprep.mubr.msk.bf16.mxu1 %vm1337_vm1, %v1251_v2  ;;  %v1137_v11 = vmax.f32 %v698_v6, 0.0 }
 0x106   : > { %v9679_v7 = vpop.f32.mrf.mxu0  ;;  %9809 = vmatmul.mubr.msk.bf16.gmra.mxu1 %vm1337_vm1, %v1252_v5 }
 0x107   : > { %v1140_v9 = vmax.f32 %v9679_v7, 0.0 }
 0x108   : > { %v701_v10 = vpop.f32.mrf.mxu0 }
 0x109   : > { %v1138_v12 = vmax.f32 %v701_v10, 0.0  ;;  %v1254_v16 = vpack.c.bf16 %v1140_v9, %v1139_v13  ;;  %v10746_v10 = vld [vmem:[%s12698_s2 + $0x50] sm:$0xff]  }
 0x10a   : > { %v9682_v14 = vpop.f32.mrf.mxu0  ;;  %9777 = vmatmul.mubr.msk.bf16.gmra.mxu0 %vm375_vm0, %v366_v8  ;;  %10054 = vmatprep.subr.bf16.mxu1 %v10746_v10 }
 0x10b   : > { %v1253_v15 = vpack.c.bf16 %v1138_v12, %v1137_v11  ;;  %v1143_v23 = vmax.f32 %v9682_v14, 0.0  ;;  %10055 = vmatpush3.bf16.msra.mxu1 %v10746_v10 }
 0x10c   : > { %v714_v17 = vpop.f32.mrf.mxu0 }
 0x10d   : > { %9812 = vmatprep.mubr.msk.bf16.mxu1 %vm1337_vm1, %v1253_v15  ;;  %v1141_v21 = vmax.f32 %v714_v17, 0.0 }
 0x10e   : > { %v9683_v18 = vpop.f32.mrf.mxu0  ;;  %9813 = vmatmul.mubr.msk.bf16.gmra.mxu1 %vm1337_vm1, %v1254_v16 }
 0x10f   : > { %v1144_v19 = vmax.f32 %v9683_v18, 0.0 }
 0x110   : > { %v717_v20 = vpop.f32.mrf.mxu0 }
 0x111   : > { %v1142_v22 = vmax.f32 %v717_v20, 0.0  ;;  %v1256_v26 = vpack.c.bf16 %v1144_v19, %v1143_v23 }
 0x112   : > { %v9686_v24 = vpop.f32.mrf.mxu0 }
 0x113   : > { %v1255_v25 = vpack.c.bf16 %v1142_v22, %v1141_v21  ;;  %v1147_v33 = vmax.f32 %v9686_v24, 0.0 }
 0x114   : > { %v730_v27 = vpop.f32.mrf.mxu0 }
 0x115   : > { %9816 = vmatprep.mubr.msk.bf16.mxu1 %vm1337_vm1, %v1255_v25  ;;  %v1145_v31 = vmax.f32 %v730_v27, 0.0 }
 0x116   : > { %v9687_v28 = vpop.f32.mrf.mxu0  ;;  %9817 = vmatmul.mubr.msk.bf16.gmra.mxu1 %vm1337_vm1, %v1256_v26 }
 0x117   : > { %v1148_v29 = vmax.f32 %v9687_v28, 0.0 }
 0x118   : > { %v733_v30 = vpop.f32.mrf.mxu0 }
 0x119   : > { %v1146_v32 = vmax.f32 %v733_v30, 0.0  ;;  %v1258_v36 = vpack.c.bf16 %v1148_v29, %v1147_v33 }
 0x11a   : > { %v9690_v34 = vpop.f32.mrf.mxu0 }
 0x11b   : > { %v1257_v35 = vpack.c.bf16 %v1146_v32, %v1145_v31  ;;  %v1151_v43 = vmax.f32 %v9690_v34, 0.0 }
 0x11c   : > { %v746_v37 = vpop.f32.mrf.mxu0 }
 0x11d   : > { %9820 = vmatprep.mubr.msk.bf16.mxu1 %vm1337_vm1, %v1257_v35  ;;  %v1149_v41 = vmax.f32 %v746_v37, 0.0 }
 0x11e   : > { %v9691_v38 = vpop.f32.mrf.mxu0  ;;  %9821 = vmatmul.mubr.msk.bf16.gmra.mxu1 %vm1337_vm1, %v1258_v36 }
 0x11f   : > { %v1152_v39 = vmax.f32 %v9691_v38, 0.0 }
 0x120   : > { %v749_v40 = vpop.f32.mrf.mxu0 }
 0x121   : > { %v1150_v42 = vmax.f32 %v749_v40, 0.0  ;;  %v1260_v46 = vpack.c.bf16 %v1152_v39, %v1151_v43 }
 0x122   : > { %v9694_v44 = vpop.f32.mrf.mxu0 }
 0x123   : > { %v1259_v45 = vpack.c.bf16 %v1150_v42, %v1149_v41  ;;  %v1155_v53 = vmax.f32 %v9694_v44, 0.0 }
 0x124   : > { %v762_v47 = vpop.f32.mrf.mxu0 }
 0x125   : > { %9824 = vmatprep.mubr.msk.bf16.mxu1 %vm1337_vm1, %v1259_v45  ;;  %v1153_v51 = vmax.f32 %v762_v47, 0.0 }
 0x126   : > { %v9695_v48 = vpop.f32.mrf.mxu0  ;;  %9825 = vmatmul.mubr.msk.bf16.gmra.mxu1 %vm1337_vm1, %v1260_v46 }
 0x127   : > { %v1156_v49 = vmax.f32 %v9695_v48, 0.0 }
 0x128   : > { %v765_v50 = vpop.f32.mrf.mxu0 }
 0x129   : > { %v1154_v52 = vmax.f32 %v765_v50, 0.0  ;;  %v1262_v57 = vpack.c.bf16 %v1156_v49, %v1155_v53 }
 0x12a   : > { %v9698_v54 = vpop.f32.mrf.mxu0 }
 0x12b   : > { %v1261_v55 = vpack.c.bf16 %v1154_v52, %v1153_v51  ;;  %v1159_v0 = vmax.f32 %v9698_v54, 0.0 }
 0x12c   : > { %v778_v58 = vpop.f32.mrf.mxu0 }
 0x12d   : > { %9828 = vmatprep.mubr.msk.bf16.mxu1 %vm1337_vm1, %v1261_v55  ;;  %v1157_v62 = vmax.f32 %v778_v58, 0.0 }
 0x12e   : > { %v9699_v59 = vpop.f32.mrf.mxu0  ;;  %9829 = vmatmul.mubr.msk.bf16.gmra.mxu1 %vm1337_vm1, %v1262_v57 }
 0x12f   : > { %v1160_v60 = vmax.f32 %v9699_v59, 0.0 }
 0x130   : > { %v781_v61 = vpop.f32.mrf.mxu0 }
 0x131   : > { %v1158_v63 = vmax.f32 %v781_v61, 0.0  ;;  %v1264_v3 = vpack.c.bf16 %v1160_v60, %v1159_v0 }
 0x132   : > { %v9702_v1 = vpop.f32.mrf.mxu0 }
 0x133   : > { %v1263_v2 = vpack.c.bf16 %v1158_v63, %v1157_v62  ;;  %v1163_v11 = vmax.f32 %v9702_v1, 0.0 }
 0x134   : > { %v794_v4 = vpop.f32.mrf.mxu0 }
 0x135   : > { %9832 = vmatprep.mubr.msk.bf16.mxu1 %vm1337_vm1, %v1263_v2  ;;  %v1161_v8 = vmax.f32 %v794_v4, 0.0 }
 0x136   : > { %v9703_v5 = vpop.f32.mrf.mxu0  ;;  %9833 = vmatmul.mubr.msk.bf16.gmra.mxu1 %vm1337_vm1, %v1264_v3 }
 0x137   : > { %v1164_v6 = vmax.f32 %v9703_v5, 0.0 }
 0x138   : > { %v797_v7 = vpop.f32.mrf.mxu0 }
 0x139   : > { %v1162_v9 = vmax.f32 %v797_v7, 0.0  ;;  %v1266_v14 = vpack.c.bf16 %v1164_v6, %v1163_v11 }
 0x13a   : > { %v9706_v12 = vpop.f32.mrf.mxu0 }
 0x13b   : > { %v1265_v13 = vpack.c.bf16 %v1162_v9, %v1161_v8  ;;  %v1167_v21 = vmax.f32 %v9706_v12, 0.0 }
 0x13c   : > { %v810_v15 = vpop.f32.mrf.mxu0 }
 0x13d   : > { %9836 = vmatprep.mubr.msk.bf16.mxu1 %vm1337_vm1, %v1265_v13  ;;  %v1165_v19 = vmax.f32 %v810_v15, 0.0 }
 0x13e   : > { %v9707_v16 = vpop.f32.mrf.mxu0  ;;  %9837 = vmatmul.mubr.msk.bf16.gmra.mxu1 %vm1337_vm1, %v1266_v14 }
 0x13f   : > { %v1168_v17 = vmax.f32 %v9707_v16, 0.0 }
 0x140   : > { %v813_v18 = vpop.f32.mrf.mxu0 }
 0x141   : > { %v1166_v20 = vmax.f32 %v813_v18, 0.0  ;;  %v1268_v24 = vpack.c.bf16 %v1168_v17, %v1167_v21 }
 0x142   : > { %v9710_v22 = vpop.f32.mrf.mxu0 }
 0x143   : > { %v1267_v23 = vpack.c.bf16 %v1166_v20, %v1165_v19  ;;  %v1171_v31 = vmax.f32 %v9710_v22, 0.0 }
 0x144   : > { %v826_v25 = vpop.f32.mrf.mxu0 }
 0x145   : > { %9840 = vmatprep.mubr.msk.bf16.mxu1 %vm1337_vm1, %v1267_v23  ;;  %v1169_v29 = vmax.f32 %v826_v25, 0.0 }
 0x146   : > { %v9711_v26 = vpop.f32.mrf.mxu0  ;;  %9841 = vmatmul.mubr.msk.bf16.gmra.mxu1 %vm1337_vm1, %v1268_v24  ;;  %v10747_v24 = vld [vmem:[%s12698_s2 + $0x48] sm:$0xff]  }
 0x147   : > { %v1172_v27 = vmax.f32 %v9711_v26, 0.0  ;;  %10056 = vmatprep.subr.bf16.mxu1 %v10747_v24 }
 0x148   : > { %v829_v28 = vpop.f32.mrf.mxu0  ;;  %10057 = vmatpush3.bf16.msra.mxu1 %v10747_v24 }
 0x149   : > { %v1170_v30 = vmax.f32 %v829_v28, 0.0  ;;  %v1270_v34 = vpack.c.bf16 %v1172_v27, %v1171_v31 }
 0x14a   : > { %v9714_v32 = vpop.f32.mrf.mxu0 }
 0x14b   : > { %v1269_v33 = vpack.c.bf16 %v1170_v30, %v1169_v29  ;;  %v1175_v41 = vmax.f32 %v9714_v32, 0.0 }
 0x14c   : > { %v842_v35 = vpop.f32.mrf.mxu0 }
 0x14d   : > { %9844 = vmatprep.mubr.msk.bf16.mxu1 %vm1337_vm1, %v1269_v33  ;;  %v1173_v39 = vmax.f32 %v842_v35, 0.0 }
 0x14e   : > { %v9715_v36 = vpop.f32.mrf.mxu0  ;;  %9845 = vmatmul.mubr.msk.bf16.gmra.mxu1 %vm1337_vm1, %v1270_v34 }
 0x14f   : > { %v1176_v37 = vmax.f32 %v9715_v36, 0.0 }
 0x150   : > { %v845_v38 = vpop.f32.mrf.mxu0 }
 0x151   : > { %v1174_v40 = vmax.f32 %v845_v38, 0.0  ;;  %v1272_v44 = vpack.c.bf16 %v1176_v37, %v1175_v41 }
 0x152   : > { %v9718_v42 = vpop.f32.mrf.mxu0 }
 0x153   : > { %v1271_v43 = vpack.c.bf16 %v1174_v40, %v1173_v39  ;;  %v1179_v51 = vmax.f32 %v9718_v42, 0.0 }
 0x154   : > { %v858_v45 = vpop.f32.mrf.mxu0 }
 0x155   : > { %9848 = vmatprep.mubr.msk.bf16.mxu1 %vm1337_vm1, %v1271_v43  ;;  %v1177_v49 = vmax.f32 %v858_v45, 0.0 }
 0x156   : > { %v9719_v46 = vpop.f32.mrf.mxu0  ;;  %9849 = vmatmul.mubr.msk.bf16.gmra.mxu1 %vm1337_vm1, %v1272_v44 }
 0x157   : > { %v1180_v47 = vmax.f32 %v9719_v46, 0.0 }
 0x158   : > { %v861_v48 = vpop.f32.mrf.mxu0 }
 0x159   : > { %v1178_v50 = vmax.f32 %v861_v48, 0.0  ;;  %v1274_v54 = vpack.c.bf16 %v1180_v47, %v1179_v51 }
 0x15a   : > { %v9722_v52 = vpop.f32.mrf.mxu0 }
 0x15b   : > { %v1273_v53 = vpack.c.bf16 %v1178_v50, %v1177_v49  ;;  %v1183_v62 = vmax.f32 %v9722_v52, 0.0 }
 0x15c   : > { %v874_v55 = vpop.f32.mrf.mxu0 }
 0x15d   : > { %9852 = vmatprep.mubr.msk.bf16.mxu1 %vm1337_vm1, %v1273_v53  ;;  %v1181_v60 = vmax.f32 %v874_v55, 0.0 }
 0x15e   : > { %v9723_v57 = vpop.f32.mrf.mxu0  ;;  %9853 = vmatmul.mubr.msk.bf16.gmra.mxu1 %vm1337_vm1, %v1274_v54 }
 0x15f   : > { %v1184_v58 = vmax.f32 %v9723_v57, 0.0 }
 0x160   : > { %v877_v59 = vpop.f32.mrf.mxu0 }
 0x161   : > { %v1182_v61 = vmax.f32 %v877_v59, 0.0  ;;  %v1276_v1 = vpack.c.bf16 %v1184_v58, %v1183_v62 }
 0x162   : > { %v9726_v63 = vpop.f32.mrf.mxu0 }
 0x163   : > { %v1275_v0 = vpack.c.bf16 %v1182_v61, %v1181_v60  ;;  %v1187_v8 = vmax.f32 %v9726_v63, 0.0 }
 0x164   : > { %v890_v2 = vpop.f32.mrf.mxu0 }
 0x165   : > { %9856 = vmatprep.mubr.msk.bf16.mxu1 %vm1337_vm1, %v1275_v0  ;;  %v1185_v6 = vmax.f32 %v890_v2, 0.0 }
 0x166   : > { %v9727_v3 = vpop.f32.mrf.mxu0  ;;  %9857 = vmatmul.mubr.msk.bf16.gmra.mxu1 %vm1337_vm1, %v1276_v1 }
 0x167   : > { %v1188_v4 = vmax.f32 %v9727_v3, 0.0 }
 0x168   : > { %v893_v5 = vpop.f32.mrf.mxu0 }
 0x169   : > { %v1186_v7 = vmax.f32 %v893_v5, 0.0  ;;  %v1278_v11 = vpack.c.bf16 %v1188_v4, %v1187_v8 }
 0x16a   : > { %v9730_v9 = vpop.f32.mrf.mxu0 }
 0x16b   : > { %v1277_v10 = vpack.c.bf16 %v1186_v7, %v1185_v6  ;;  %v1191_v18 = vmax.f32 %v9730_v9, 0.0 }
 0x16c   : > { %v906_v12 = vpop.f32.mrf.mxu0 }
 0x16d   : > { %9860 = vmatprep.mubr.msk.bf16.mxu1 %vm1337_vm1, %v1277_v10  ;;  %v1189_v16 = vmax.f32 %v906_v12, 0.0 }
 0x16e   : > { %v9731_v13 = vpop.f32.mrf.mxu0  ;;  %9861 = vmatmul.mubr.msk.bf16.gmra.mxu1 %vm1337_vm1, %v1278_v11 }
 0x16f   : > { %v1192_v14 = vmax.f32 %v9731_v13, 0.0 }
 0x170   : > { %v909_v15 = vpop.f32.mrf.mxu0 }
 0x171   : > { %v1190_v17 = vmax.f32 %v909_v15, 0.0  ;;  %v1280_v21 = vpack.c.bf16 %v1192_v14, %v1191_v18 }
 0x172   : > { %v9734_v19 = vpop.f32.mrf.mxu0 }
 0x173   : > { %v1279_v20 = vpack.c.bf16 %v1190_v17, %v1189_v16  ;;  %v1195_v29 = vmax.f32 %v9734_v19, 0.0 }
 0x174   : > { %v922_v22 = vpop.f32.mrf.mxu0 }
 0x175   : > { %9864 = vmatprep.mubr.msk.bf16.mxu1 %vm1337_vm1, %v1279_v20  ;;  %v1193_v27 = vmax.f32 %v922_v22, 0.0 }
 0x176   : > { %v9735_v23 = vpop.f32.mrf.mxu0  ;;  %9865 = vmatmul.mubr.msk.bf16.gmra.mxu1 %vm1337_vm1, %v1280_v21 }
 0x177   : > { %v1196_v25 = vmax.f32 %v9735_v23, 0.0 }
 0x178   : > { %v925_v26 = vpop.f32.mrf.mxu0 }
 0x179   : > { %v1194_v28 = vmax.f32 %v925_v26, 0.0  ;;  %v1282_v32 = vpack.c.bf16 %v1196_v25, %v1195_v29 }
 0x17a   : > { %v9738_v30 = vpop.f32.mrf.mxu0 }
 0x17b   : > { %v1281_v31 = vpack.c.bf16 %v1194_v28, %v1193_v27  ;;  %v1199_v39 = vmax.f32 %v9738_v30, 0.0 }
 0x17c   : > { %v938_v33 = vpop.f32.mrf.mxu0 }
 0x17d   : > { %9868 = vmatprep.mubr.msk.bf16.mxu1 %vm1337_vm1, %v1281_v31  ;;  %v1197_v37 = vmax.f32 %v938_v33, 0.0 }
 0x17e   : > { %v9739_v34 = vpop.f32.mrf.mxu0  ;;  %9869 = vmatmul.mubr.msk.bf16.gmra.mxu1 %vm1337_vm1, %v1282_v32 }
 0x17f   : > { %v1200_v35 = vmax.f32 %v9739_v34, 0.0 }
 0x180   : > { %v941_v36 = vpop.f32.mrf.mxu0 }
 0x181   : > { %v1198_v38 = vmax.f32 %v941_v36, 0.0  ;;  %v1284_v42 = vpack.c.bf16 %v1200_v35, %v1199_v39 }
 0x182   : > { %v9742_v40 = vpop.f32.mrf.mxu0 }
 0x183   : > { %v1283_v41 = vpack.c.bf16 %v1198_v38, %v1197_v37  ;;  %v1203_v49 = vmax.f32 %v9742_v40, 0.0 }
 0x184   : > { %v954_v43 = vpop.f32.mrf.mxu0 }
 0x185   : > { %9872 = vmatprep.mubr.msk.bf16.mxu1 %vm1337_vm1, %v1283_v41  ;;  %v1201_v47 = vmax.f32 %v954_v43, 0.0 }
 0x186   : > { %v9743_v44 = vpop.f32.mrf.mxu0  ;;  %9873 = vmatmul.mubr.msk.bf16.gmra.mxu1 %vm1337_vm1, %v1284_v42 }
 0x187   : > { %v1204_v45 = vmax.f32 %v9743_v44, 0.0 }
 0x188   : > { %v957_v46 = vpop.f32.mrf.mxu0 }
 0x189   : > { %v1202_v48 = vmax.f32 %v957_v46, 0.0  ;;  %v1286_v52 = vpack.c.bf16 %v1204_v45, %v1203_v49 }
 0x18a   : > { %v9746_v50 = vpop.f32.mrf.mxu0 }
 0x18b   : > { %v1285_v51 = vpack.c.bf16 %v1202_v48, %v1201_v47  ;;  %v1207_v60 = vmax.f32 %v9746_v50, 0.0 }
 0x18c   : > { %v970_v53 = vpop.f32.mrf.mxu0 }
 0x18d   : > { %9876 = vmatprep.mubr.msk.bf16.mxu1 %vm1337_vm1, %v1285_v51  ;;  %v1205_v58 = vmax.f32 %v970_v53, 0.0 }
 0x18e   : > { %v9747_v54 = vpop.f32.mrf.mxu0  ;;  %9877 = vmatmul.mubr.msk.bf16.gmra.mxu1 %vm1337_vm1, %v1286_v52 }
 0x18f   : > { %v1208_v55 = vmax.f32 %v9747_v54, 0.0 }
 0x190   : > { %v973_v57 = vpop.f32.mrf.mxu0 }
 0x191   : > { %v1206_v59 = vmax.f32 %v973_v57, 0.0  ;;  %v1288_v63 = vpack.c.bf16 %v1208_v55, %v1207_v60 }
 0x192   : > { %v9750_v61 = vpop.f32.mrf.mxu0 }
 0x193   : > { %v1287_v62 = vpack.c.bf16 %v1206_v59, %v1205_v58  ;;  %v1211_v6 = vmax.f32 %v9750_v61, 0.0 }
 0x194   : > { %v986_v0 = vpop.f32.mrf.mxu0 }
 0x195   : > { %9880 = vmatprep.mubr.msk.bf16.mxu1 %vm1337_vm1, %v1287_v62  ;;  %v1209_v4 = vmax.f32 %v986_v0, 0.0 }
 0x196   : > { %v9751_v1 = vpop.f32.mrf.mxu0  ;;  %9881 = vmatmul.mubr.msk.bf16.gmra.mxu1 %vm1337_vm1, %v1288_v63 }
 0x197   : > { %v1212_v2 = vmax.f32 %v9751_v1, 0.0 }
 0x198   : > { %v989_v3 = vpop.f32.mrf.mxu0 }
 0x199   : > { %v1210_v5 = vmax.f32 %v989_v3, 0.0  ;;  %v1290_v9 = vpack.c.bf16 %v1212_v2, %v1211_v6 }
 0x19a   : > { %v9754_v7 = vpop.f32.mrf.mxu0 }
 0x19b   : > { %v1289_v8 = vpack.c.bf16 %v1210_v5, %v1209_v4  ;;  %v1215_v18 = vmax.f32 %v9754_v7, 0.0 }
 0x19c   : > { %v1002_v10 = vpop.f32.mrf.mxu0 }
 0x19d   : > { %9884 = vmatprep.mubr.msk.bf16.mxu1 %vm1337_vm1, %v1289_v8  ;;  %v1213_v16 = vmax.f32 %v1002_v10, 0.0  ;;  %v10748_v8 = vld [vmem:[%s12698_s2 + $0x40] sm:$0xff]  }
 0x19e   : > { %v9755_v11 = vpop.f32.mrf.mxu0  ;;  %v9790_v12 = vpop.f32.mrf.mxu1  ;;  %9885 = vmatmul.mubr.msk.bf16.gmra.mxu1 %vm1337_vm1, %v1290_v9  ;;  %10058 = vmatprep.subr.bf16.mxu1 %v10748_v8 }
 0x19f   : > { %v1216_v13 = vmax.f32 %v9755_v11, 0.0  ;;  %v2077_v28 = vmax.f32 %v9790_v12, 0.0  ;;  %10059 = vmatpush3.bf16.msra.mxu1 %v10748_v8 }
 0x1a0   : > { %v1005_v14 = vpop.f32.mrf.mxu0  ;;  %v1564_v15 = vpop.f32.mrf.mxu1 }
 0x1a1   : > { %v1214_v17 = vmax.f32 %v1005_v14, 0.0  ;;  %v1292_v22 = vpack.c.bf16 %v1216_v13, %v1215_v18  ;;  %v2075_v26 = vmax.f32 %v1564_v15, 0.0 }
 0x1a2   : > { %v9758_v19 = vpop.f32.mrf.mxu0  ;;  %v9791_v20 = vpop.f32.mrf.mxu1 }
 0x1a3   : > { %v1291_v21 = vpack.c.bf16 %v1214_v17, %v1213_v16  ;;  %v2078_v23 = vmax.f32 %v9791_v20, 0.0  ;;  %v1219_v38 = vmax.f32 %v9758_v19, 0.0 }
 0x1a4   : > { %v1018_v24 = vpop.f32.mrf.mxu0  ;;  %v1567_v25 = vpop.f32.mrf.mxu1 }
 0x1a5   : > { %v2076_v27 = vmax.f32 %v1567_v25, 0.0  ;;  %9888 = vmatprep.mubr.msk.bf16.mxu1 %vm1337_vm1, %v1291_v21  ;;  %v2204_v32 = vpack.c.bf16 %v2078_v23, %v2077_v28  ;;  %v1217_v36 = vmax.f32 %v1018_v24, 0.0 }
 0x1a6   : > { %v9759_v29 = vpop.f32.mrf.mxu0  ;;  %v9794_v30 = vpop.f32.mrf.mxu1  ;;  %9889 = vmatmul.mubr.msk.bf16.gmra.mxu1 %vm1337_vm1, %v1292_v22 }
 0x1a7   : > { %v2203_v31 = vpack.c.bf16 %v2076_v27, %v2075_v26  ;;  %v1220_v33 = vmax.f32 %v9759_v29, 0.0  ;;  %v2081_v48 = vmax.f32 %v9794_v30, 0.0 }
 0x1a8   : > { %v1021_v34 = vpop.f32.mrf.mxu0  ;;  %v1580_v35 = vpop.f32.mrf.mxu1 }
 0x1a9   : > { %v1218_v37 = vmax.f32 %v1021_v34, 0.0  ;;  %9924 = vmatprep.mubr.msk.bf16.mxu0 %vm1337_vm1, %v2203_v31  ;;  %v1294_v42 = vpack.c.bf16 %v1220_v33, %v1219_v38  ;;  %v2079_v46 = vmax.f32 %v1580_v35, 0.0 }
 0x1aa   : > { %v9762_v39 = vpop.f32.mrf.mxu0  ;;  %v9795_v40 = vpop.f32.mrf.mxu1  ;;  %9925 = vmatmul.mubr.msk.bf16.vlgmr.msra.gmra.mxu0 %vm1337_vm1, %v2204_v32 }
 0x1ab   : > { %v1293_v41 = vpack.c.bf16 %v1218_v37, %v1217_v36  ;;  %10189 = vmatpush3.bf16.msra.mxu0 %v11053_v56  ;;  %v2082_v43 = vmax.f32 %v9795_v40, 0.0  ;;  %v1223_v58 = vmax.f32 %v9762_v39, 0.0 }
 0x1ac   : > { %v1034_v44 = vpop.f32.mrf.mxu0  ;;  %v1583_v45 = vpop.f32.mrf.mxu1 }
 0x1ad   : > { %v2080_v47 = vmax.f32 %v1583_v45, 0.0  ;;  %9892 = vmatprep.mubr.msk.bf16.mxu1 %vm1337_vm1, %v1293_v41  ;;  %v2206_v52 = vpack.c.bf16 %v2082_v43, %v2081_v48  ;;  %v1221_v57 = vmax.f32 %v1034_v44, 0.0 }
 0x1ae   : > { %v9763_v49 = vpop.f32.mrf.mxu0  ;;  %v9798_v50 = vpop.f32.mrf.mxu1  ;;  %9893 = vmatmul.mubr.msk.bf16.gmra.mxu1 %vm1337_vm1, %v1294_v42 }
 0x1af   : > { %v2205_v51 = vpack.c.bf16 %v2080_v47, %v2079_v46  ;;  %v1224_v53 = vmax.f32 %v9763_v49, 0.0  ;;  %v2085_v4 = vmax.f32 %v9798_v50, 0.0 }
 0x1b0   : > { %v1037_v54 = vpop.f32.mrf.mxu0  ;;  %v1596_v55 = vpop.f32.mrf.mxu1 }
 0x1b1   : > { %v1222_v56 = vmax.f32 %v1037_v54, 0.0  ;;  %9928 = vmatprep.mubr.msk.bf16.mxu0 %vm1337_vm1, %v2205_v51  ;;  %v1296_v62 = vpack.c.bf16 %v1224_v53, %v1223_v58  ;;  %v2083_v2 = vmax.f32 %v1596_v55, 0.0 }
 0x1b2   : > { %v9766_v59 = vpop.f32.mrf.mxu0  ;;  %v9799_v60 = vpop.f32.mrf.mxu1  ;;  %9929 = vmatmul.mubr.msk.bf16.gmra.mxu0 %vm1337_vm1, %v2206_v52 }
 0x1b3   : > { %v1295_v61 = vpack.c.bf16 %v1222_v56, %v1221_v57  ;;  %v2086_v63 = vmax.f32 %v9799_v60, 0.0  ;;  %v1227_v15 = vmax.f32 %v9766_v59, 0.0 }
 0x1b4   : > { %v1050_v0 = vpop.f32.mrf.mxu0  ;;  %v1599_v1 = vpop.f32.mrf.mxu1 }
 0x1b5   : > { %v2084_v3 = vmax.f32 %v1599_v1, 0.0  ;;  %9896 = vmatprep.mubr.msk.bf16.mxu1 %vm1337_vm1, %v1295_v61  ;;  %v2208_v9 = vpack.c.bf16 %v2086_v63, %v2085_v4  ;;  %v1225_v13 = vmax.f32 %v1050_v0, 0.0 }
 0x1b6   : > { %v9767_v5 = vpop.f32.mrf.mxu0  ;;  %v9802_v6 = vpop.f32.mrf.mxu1  ;;  %9897 = vmatmul.mubr.msk.bf16.gmra.mxu1 %vm1337_vm1, %v1296_v62 }
 0x1b7   : > { %v2207_v7 = vpack.c.bf16 %v2084_v3, %v2083_v2  ;;  %v1228_v10 = vmax.f32 %v9767_v5, 0.0  ;;  %v2089_v25 = vmax.f32 %v9802_v6, 0.0 }
 0x1b8   : > { %v1053_v11 = vpop.f32.mrf.mxu0  ;;  %v1612_v12 = vpop.f32.mrf.mxu1 }
 0x1b9   : > { %v1226_v14 = vmax.f32 %v1053_v11, 0.0  ;;  %9932 = vmatprep.mubr.msk.bf16.mxu0 %vm1337_vm1, %v2207_v7  ;;  %v1298_v19 = vpack.c.bf16 %v1228_v10, %v1227_v15  ;;  %v2087_v23 = vmax.f32 %v1612_v12, 0.0 }
 0x1ba   : > { %v9770_v16 = vpop.f32.mrf.mxu0  ;;  %v9803_v17 = vpop.f32.mrf.mxu1  ;;  %9933 = vmatmul.mubr.msk.bf16.gmra.mxu0 %vm1337_vm1, %v2208_v9 }
 0x1bb   : > { %v1297_v18 = vpack.c.bf16 %v1226_v14, %v1225_v13  ;;  %v2090_v20 = vmax.f32 %v9803_v17, 0.0  ;;  %v1231_v35 = vmax.f32 %v9770_v16, 0.0 }
 0x1bc   : > { %v1066_v21 = vpop.f32.mrf.mxu0  ;;  %v1615_v22 = vpop.f32.mrf.mxu1 }
 0x1bd   : > { %v2088_v24 = vmax.f32 %v1615_v22, 0.0  ;;  %9900 = vmatprep.mubr.msk.bf16.mxu1 %vm1337_vm1, %v1297_v18  ;;  %v2210_v29 = vpack.c.bf16 %v2090_v20, %v2089_v25  ;;  %v1229_v33 = vmax.f32 %v1066_v21, 0.0 }
 0x1be   : > { %v9771_v26 = vpop.f32.mrf.mxu0  ;;  %v9806_v27 = vpop.f32.mrf.mxu1  ;;  %9901 = vmatmul.mubr.msk.bf16.gmra.mxu1 %vm1337_vm1, %v1298_v19 }
 0x1bf   : > { %v2209_v28 = vpack.c.bf16 %v2088_v24, %v2087_v23  ;;  %v1232_v30 = vmax.f32 %v9771_v26, 0.0  ;;  %v2093_v45 = vmax.f32 %v9806_v27, 0.0 }
 0x1c0   : > { %v1069_v31 = vpop.f32.mrf.mxu0  ;;  %v1628_v32 = vpop.f32.mrf.mxu1 }
 0x1c1   : > { %v1230_v34 = vmax.f32 %v1069_v31, 0.0  ;;  %9936 = vmatprep.mubr.msk.bf16.mxu0 %vm1337_vm1, %v2209_v28  ;;  %v1300_v39 = vpack.c.bf16 %v1232_v30, %v1231_v35  ;;  %v2091_v43 = vmax.f32 %v1628_v32, 0.0 }
 0x1c2   : > { %v9774_v36 = vpop.f32.mrf.mxu0  ;;  %v9807_v37 = vpop.f32.mrf.mxu1  ;;  %9937 = vmatmul.mubr.msk.bf16.gmra.mxu0 %vm1337_vm1, %v2210_v29 }
 0x1c3   : > { %v1299_v38 = vpack.c.bf16 %v1230_v34, %v1229_v33  ;;  %v2094_v40 = vmax.f32 %v9807_v37, 0.0  ;;  %v1235_v55 = vmax.f32 %v9774_v36, 0.0 }
 0x1c4   : > { %v1082_v41 = vpop.f32.mrf.mxu0  ;;  %v1631_v42 = vpop.f32.mrf.mxu1 }
 0x1c5   : > { %v2092_v44 = vmax.f32 %v1631_v42, 0.0  ;;  %9904 = vmatprep.mubr.msk.bf16.mxu1 %vm1337_vm1, %v1299_v38  ;;  %v2212_v49 = vpack.c.bf16 %v2094_v40, %v2093_v45  ;;  %v1233_v53 = vmax.f32 %v1082_v41, 0.0 }
 0x1c6   : > { %v9775_v46 = vpop.f32.mrf.mxu0  ;;  %v9810_v47 = vpop.f32.mrf.mxu1  ;;  %9905 = vmatmul.mubr.msk.bf16.gmra.mxu1 %vm1337_vm1, %v1300_v39 }
 0x1c7   : > { %v2211_v48 = vpack.c.bf16 %v2092_v44, %v2091_v43  ;;  %v1236_v50 = vmax.f32 %v9775_v46, 0.0  ;;  %v2097_v1 = vmax.f32 %v9810_v47, 0.0 }
 0x1c8   : > { %v1085_v51 = vpop.f32.mrf.mxu0  ;;  %v1644_v52 = vpop.f32.mrf.mxu1 }
 0x1c9   : > { %v1234_v54 = vmax.f32 %v1085_v51, 0.0  ;;  %9940 = vmatprep.mubr.msk.bf16.mxu0 %vm1337_vm1, %v2211_v48  ;;  %v1302_v59 = vpack.c.bf16 %v1236_v50, %v1235_v55  ;;  %v2095_v63 = vmax.f32 %v1644_v52, 0.0 }
 0x1ca   : > { %v9778_v57 = vpop.f32.mrf.mxu0  ;;  %v9811_v56 = vpop.f32.mrf.mxu1  ;;  %9941 = vmatmul.mubr.msk.bf16.gmra.mxu0 %vm1337_vm1, %v2212_v49 }
 0x1cb   : > { %v1301_v58 = vpack.c.bf16 %v1234_v54, %v1233_v53  ;;  %v2098_v60 = vmax.f32 %v9811_v56, 0.0  ;;  %v1239_v11 = vmax.f32 %v9778_v57, 0.0 }
 0x1cc   : > { %v1098_v61 = vpop.f32.mrf.mxu0  ;;  %v1647_v62 = vpop.f32.mrf.mxu1 }
 0x1cd   : > { %v2096_v0 = vmax.f32 %v1647_v62, 0.0  ;;  %9908 = vmatprep.mubr.msk.bf16.mxu1 %vm1337_vm1, %v1301_v58  ;;  %v2214_v5 = vpack.c.bf16 %v2098_v60, %v2097_v1  ;;  %v1237_v9 = vmax.f32 %v1098_v61, 0.0  ;;  %v11133_v62 = vld [vmem:[%s12698_s2 + $0x78] sm:$0xff]  }
 0x1ce   : > { %v9779_v2 = vpop.f32.mrf.mxu0  ;;  %v9814_v3 = vpop.f32.mrf.mxu1  ;;  %9909 = vmatmul.mubr.msk.bf16.gmra.mxu1 %vm1337_vm1, %v1302_v59  ;;  %10318 = vmatprep.subr.bf16.mxu1 %v11133_v62 }
 0x1cf   : > { %v2213_v4 = vpack.c.bf16 %v2096_v0, %v2095_v63  ;;  %v1240_v6 = vmax.f32 %v9779_v2, 0.0  ;;  %v2101_v19 = vmax.f32 %v9814_v3, 0.0 }
 0x1d0   : > { %v1101_v7 = vpop.f32.mrf.mxu0  ;;  %v1660_v8 = vpop.f32.mrf.mxu1 }
 0x1d1   : > { %v1238_v10 = vmax.f32 %v1101_v7, 0.0  ;;  %9944 = vmatprep.mubr.msk.bf16.mxu0 %vm1337_vm1, %v2213_v4  ;;  %v1304_v14 = vpack.c.bf16 %v1240_v6, %v1239_v11  ;;  %v2099_v17 = vmax.f32 %v1660_v8, 0.0 }
 0x1d2   : > { %v9815_v12 = vpop.f32.mrf.mxu1  ;;  %9945 = vmatmul.mubr.msk.bf16.gmra.mxu0 %vm1337_vm1, %v2214_v5 }
 0x1d3   : > { %v1303_v13 = vpack.c.bf16 %v1238_v10, %v1237_v9  ;;  %v2102_v15 = vmax.f32 %v9815_v12, 0.0 }
 0x1d4   : > { %v1663_v16 = vpop.f32.mrf.mxu1 }
 0x1d5   : > { %v2100_v18 = vmax.f32 %v1663_v16, 0.0  ;;  %9912 = vmatprep.mubr.msk.bf16.mxu1 %vm1337_vm1, %v1303_v13  ;;  %v2216_v22 = vpack.c.bf16 %v2102_v15, %v2101_v19 }
 0x1d6   : > { %v9818_v20 = vpop.f32.mrf.mxu1  ;;  %9913 = vmatmul.mubr.msk.bf16.gmra.mxu1 %vm1337_vm1, %v1304_v14 }
 0x1d7   : > { %v2215_v21 = vpack.c.bf16 %v2100_v18, %v2099_v17  ;;  %v2105_v29 = vmax.f32 %v9818_v20, 0.0 }
 0x1d8   : > { %v1676_v23 = vpop.f32.mrf.mxu1 }
 0x1d9   : > { %9948 = vmatprep.mubr.msk.bf16.mxu0 %vm1337_vm1, %v2215_v21  ;;  %v2103_v27 = vmax.f32 %v1676_v23, 0.0 }
 0x1da   : > { %v9819_v24 = vpop.f32.mrf.mxu1  ;;  %9949 = vmatmul.mubr.msk.bf16.gmra.mxu0 %vm1337_vm1, %v2216_v22 }
 0x1db   : > { %v2106_v25 = vmax.f32 %v9819_v24, 0.0 }
 0x1dc   : > { %v1679_v26 = vpop.f32.mrf.mxu1 }
 0x1dd   : > { %v2104_v28 = vmax.f32 %v1679_v26, 0.0  ;;  %v2218_v32 = vpack.c.bf16 %v2106_v25, %v2105_v29 }
 0x1de   : > { %v9822_v30 = vpop.f32.mrf.mxu1 }
 0x1df   : > { %v2217_v31 = vpack.c.bf16 %v2104_v28, %v2103_v27  ;;  %v2109_v39 = vmax.f32 %v9822_v30, 0.0 }
 0x1e0   : > { %v1692_v33 = vpop.f32.mrf.mxu1 }
 0x1e1   : > { %9952 = vmatprep.mubr.msk.bf16.mxu0 %vm1337_vm1, %v2217_v31  ;;  %v2107_v37 = vmax.f32 %v1692_v33, 0.0 }
 0x1e2   : > { %v9823_v34 = vpop.f32.mrf.mxu1  ;;  %9953 = vmatmul.mubr.msk.bf16.gmra.mxu0 %vm1337_vm1, %v2218_v32 }
 0x1e3   : > { %v2110_v35 = vmax.f32 %v9823_v34, 0.0 }
 0x1e4   : > { %v1695_v36 = vpop.f32.mrf.mxu1 }
 0x1e5   : > { %v2108_v38 = vmax.f32 %v1695_v36, 0.0  ;;  %v2220_v42 = vpack.c.bf16 %v2110_v35, %v2109_v39 }
 0x1e6   : > { %v9826_v40 = vpop.f32.mrf.mxu1 }
 0x1e7   : > { %v2219_v41 = vpack.c.bf16 %v2108_v38, %v2107_v37  ;;  %v2113_v49 = vmax.f32 %v9826_v40, 0.0 }
 0x1e8   : > { %v1708_v43 = vpop.f32.mrf.mxu1 }
 0x1e9   : > { %9956 = vmatprep.mubr.msk.bf16.mxu0 %vm1337_vm1, %v2219_v41  ;;  %v2111_v47 = vmax.f32 %v1708_v43, 0.0 }
 0x1ea   : > { %v9827_v44 = vpop.f32.mrf.mxu1  ;;  %9957 = vmatmul.mubr.msk.bf16.gmra.mxu0 %vm1337_vm1, %v2220_v42 }
 0x1eb   : > { %v2114_v45 = vmax.f32 %v9827_v44, 0.0 }
 0x1ec   : > { %v1711_v46 = vpop.f32.mrf.mxu1 }
 0x1ed   : > { %v2112_v48 = vmax.f32 %v1711_v46, 0.0  ;;  %v2222_v52 = vpack.c.bf16 %v2114_v45, %v2113_v49 }
 0x1ee   : > { %v9830_v50 = vpop.f32.mrf.mxu1 }
 0x1ef   : > { %v2221_v51 = vpack.c.bf16 %v2112_v48, %v2111_v47  ;;  %v2117_v59 = vmax.f32 %v9830_v50, 0.0 }
 0x1f0   : > { %v1724_v53 = vpop.f32.mrf.mxu1 }
 0x1f1   : > { %9960 = vmatprep.mubr.msk.bf16.mxu0 %vm1337_vm1, %v2221_v51  ;;  %v2115_v56 = vmax.f32 %v1724_v53, 0.0 }
 0x1f2   : > { %v9831_v54 = vpop.f32.mrf.mxu1  ;;  %9961 = vmatmul.mubr.msk.bf16.gmra.mxu0 %vm1337_vm1, %v2222_v52 }
 0x1f3   : > { %v2118_v55 = vmax.f32 %v9831_v54, 0.0 }
 0x1f4   : > { %v1727_v57 = vpop.f32.mrf.mxu1 }
 0x1f5   : > { %v2116_v58 = vmax.f32 %v1727_v57, 0.0  ;;  %v2224_v63 = vpack.c.bf16 %v2118_v55, %v2117_v59 }
 0x1f6   : > { %v9834_v60 = vpop.f32.mrf.mxu1 }
 0x1f7   : > { %v2223_v61 = vpack.c.bf16 %v2116_v58, %v2115_v56  ;;  %v2121_v6 = vmax.f32 %v9834_v60, 0.0 }
 0x1f8   : > { %v1740_v0 = vpop.f32.mrf.mxu1 }
 0x1f9   : > { %9964 = vmatprep.mubr.msk.bf16.mxu0 %vm1337_vm1, %v2223_v61  ;;  %v2119_v4 = vmax.f32 %v1740_v0, 0.0 }
 0x1fa   : > { %v9835_v1 = vpop.f32.mrf.mxu1  ;;  %9965 = vmatmul.mubr.msk.bf16.gmra.mxu0 %vm1337_vm1, %v2224_v63 }
 0x1fb   : > { %v2122_v2 = vmax.f32 %v9835_v1, 0.0 }
 0x1fc   : > { %v1743_v3 = vpop.f32.mrf.mxu1 }
 0x1fd   : > { %v2120_v5 = vmax.f32 %v1743_v3, 0.0  ;;  %v2226_v9 = vpack.c.bf16 %v2122_v2, %v2121_v6 }
 0x1fe   : > { %v9838_v7 = vpop.f32.mrf.mxu1 }
 0x1ff   : > { %v2225_v8 = vpack.c.bf16 %v2120_v5, %v2119_v4  ;;  %v2125_v16 = vmax.f32 %v9838_v7, 0.0 }
 0x200   : > { %v1756_v10 = vpop.f32.mrf.mxu1 }
 0x201   : > { %9968 = vmatprep.mubr.msk.bf16.mxu0 %vm1337_vm1, %v2225_v8  ;;  %v2123_v14 = vmax.f32 %v1756_v10, 0.0 }
 0x202   : > { %v9839_v11 = vpop.f32.mrf.mxu1  ;;  %9969 = vmatmul.mubr.msk.bf16.gmra.mxu0 %vm1337_vm1, %v2226_v9 }
 0x203   : > { %v2126_v12 = vmax.f32 %v9839_v11, 0.0 }
 0x204   : > { %v1759_v13 = vpop.f32.mrf.mxu1 }
 0x205   : > { %v2124_v15 = vmax.f32 %v1759_v13, 0.0  ;;  %v2228_v19 = vpack.c.bf16 %v2126_v12, %v2125_v16 }
 0x206   : > { %v9842_v17 = vpop.f32.mrf.mxu1 }
 0x207   : > { %v2227_v18 = vpack.c.bf16 %v2124_v15, %v2123_v14  ;;  %v2129_v26 = vmax.f32 %v9842_v17, 0.0 }
 0x208   : > { %v1772_v20 = vpop.f32.mrf.mxu1 }
 0x209   : > { %9972 = vmatprep.mubr.msk.bf16.mxu0 %vm1337_vm1, %v2227_v18  ;;  %v2127_v24 = vmax.f32 %v1772_v20, 0.0 }
 0x20a   : > { %v9843_v21 = vpop.f32.mrf.mxu1  ;;  %9973 = vmatmul.mubr.msk.bf16.gmra.mxu0 %vm1337_vm1, %v2228_v19 }
 0x20b   : > { %v2130_v22 = vmax.f32 %v9843_v21, 0.0 }
 0x20c   : > { %v1775_v23 = vpop.f32.mrf.mxu1 }
 0x20d   : > { %v2128_v25 = vmax.f32 %v1775_v23, 0.0  ;;  %v2230_v29 = vpack.c.bf16 %v2130_v22, %v2129_v26 }
 0x20e   : > { %v9846_v27 = vpop.f32.mrf.mxu1 }
 0x20f   : > { %v2229_v28 = vpack.c.bf16 %v2128_v25, %v2127_v24  ;;  %v2133_v36 = vmax.f32 %v9846_v27, 0.0 }
 0x210   : > { %v1788_v30 = vpop.f32.mrf.mxu1 }
 0x211   : > { %9976 = vmatprep.mubr.msk.bf16.mxu0 %vm1337_vm1, %v2229_v28  ;;  %v2131_v34 = vmax.f32 %v1788_v30, 0.0 }
 0x212   : > { %v9847_v31 = vpop.f32.mrf.mxu1  ;;  %9977 = vmatmul.mubr.msk.bf16.gmra.mxu0 %vm1337_vm1, %v2230_v29 }
 0x213   : > { %v2134_v32 = vmax.f32 %v9847_v31, 0.0 }
 0x214   : > { %v1791_v33 = vpop.f32.mrf.mxu1 }
 0x215   : > { %v2132_v35 = vmax.f32 %v1791_v33, 0.0  ;;  %v2232_v39 = vpack.c.bf16 %v2134_v32, %v2133_v36 }
 0x216   : > { %v9850_v37 = vpop.f32.mrf.mxu1 }
 0x217   : > { %v2231_v38 = vpack.c.bf16 %v2132_v35, %v2131_v34  ;;  %v2137_v46 = vmax.f32 %v9850_v37, 0.0 }
 0x218   : > { %v1804_v40 = vpop.f32.mrf.mxu1 }
 0x219   : > { %9980 = vmatprep.mubr.msk.bf16.mxu0 %vm1337_vm1, %v2231_v38  ;;  %v2135_v44 = vmax.f32 %v1804_v40, 0.0 }
 0x21a   : > { %v9851_v41 = vpop.f32.mrf.mxu1  ;;  %9981 = vmatmul.mubr.msk.bf16.gmra.mxu0 %vm1337_vm1, %v2232_v39 }
 0x21b   : > { %v2138_v42 = vmax.f32 %v9851_v41, 0.0 }
 0x21c   : > { %v1807_v43 = vpop.f32.mrf.mxu1 }
 0x21d   : > { %v2136_v45 = vmax.f32 %v1807_v43, 0.0  ;;  %v2234_v49 = vpack.c.bf16 %v2138_v42, %v2137_v46 }
 0x21e   : > { %v9854_v47 = vpop.f32.mrf.mxu1 }
 0x21f   : > { %v2233_v48 = vpack.c.bf16 %v2136_v45, %v2135_v44  ;;  %v2141_v57 = vmax.f32 %v9854_v47, 0.0 }
 0x220   : > { %v1820_v50 = vpop.f32.mrf.mxu1 }
 0x221   : > { %9984 = vmatprep.mubr.msk.bf16.mxu0 %vm1337_vm1, %v2233_v48  ;;  %v2139_v54 = vmax.f32 %v1820_v50, 0.0 }
 0x222   : > { %v9855_v51 = vpop.f32.mrf.mxu1  ;;  %9985 = vmatmul.mubr.msk.bf16.gmra.mxu0 %vm1337_vm1, %v2234_v49 }
 0x223   : > { %v2142_v52 = vmax.f32 %v9855_v51, 0.0 }
 0x224   : > { %v1823_v53 = vpop.f32.mrf.mxu1 }
 0x225   : > { %v2140_v55 = vmax.f32 %v1823_v53, 0.0  ;;  %v2236_v59 = vpack.c.bf16 %v2142_v52, %v2141_v57 }
 0x226   : > { %v9858_v56 = vpop.f32.mrf.mxu1 }
 0x227   : > { %v2235_v58 = vpack.c.bf16 %v2140_v55, %v2139_v54  ;;  %v2145_v3 = vmax.f32 %v9858_v56, 0.0 }
 0x228   : > { %v1836_v60 = vpop.f32.mrf.mxu1 }
 0x229   : > { %9988 = vmatprep.mubr.msk.bf16.mxu0 %vm1337_vm1, %v2235_v58  ;;  %v2143_v1 = vmax.f32 %v1836_v60, 0.0 }
 0x22a   : > { %v9859_v61 = vpop.f32.mrf.mxu1  ;;  %9989 = vmatmul.mubr.msk.bf16.gmra.mxu0 %vm1337_vm1, %v2236_v59 }
 0x22b   : > { %v2146_v63 = vmax.f32 %v9859_v61, 0.0 }
 0x22c   : > { %v1839_v0 = vpop.f32.mrf.mxu1 }
 0x22d   : > { %v2144_v2 = vmax.f32 %v1839_v0, 0.0  ;;  %v2238_v6 = vpack.c.bf16 %v2146_v63, %v2145_v3 }
 0x22e   : > { %v9862_v4 = vpop.f32.mrf.mxu1 }
 0x22f   : > { %v2237_v5 = vpack.c.bf16 %v2144_v2, %v2143_v1  ;;  %v2149_v13 = vmax.f32 %v9862_v4, 0.0 }
 0x230   : > { %v1852_v7 = vpop.f32.mrf.mxu1 }
 0x231   : > { %9992 = vmatprep.mubr.msk.bf16.mxu0 %vm1337_vm1, %v2237_v5  ;;  %v2147_v11 = vmax.f32 %v1852_v7, 0.0 }
 0x232   : > { %v9863_v8 = vpop.f32.mrf.mxu1  ;;  %9993 = vmatmul.mubr.msk.bf16.gmra.mxu0 %vm1337_vm1, %v2238_v6 }
 0x233   : > { %v2150_v9 = vmax.f32 %v9863_v8, 0.0 }
 0x234   : > { %v1855_v10 = vpop.f32.mrf.mxu1 }
 0x235   : > { %v2148_v12 = vmax.f32 %v1855_v10, 0.0  ;;  %v2240_v16 = vpack.c.bf16 %v2150_v9, %v2149_v13 }
 0x236   : > { %v9866_v14 = vpop.f32.mrf.mxu1 }
 0x237   : > { %v2239_v15 = vpack.c.bf16 %v2148_v12, %v2147_v11  ;;  %v2153_v23 = vmax.f32 %v9866_v14, 0.0 }
 0x238   : > { %v1868_v17 = vpop.f32.mrf.mxu1 }
 0x239   : > { %9996 = vmatprep.mubr.msk.bf16.mxu0 %vm1337_vm1, %v2239_v15  ;;  %v2151_v21 = vmax.f32 %v1868_v17, 0.0 }
 0x23a   : > { %v9867_v18 = vpop.f32.mrf.mxu1  ;;  %9997 = vmatmul.mubr.msk.bf16.gmra.mxu0 %vm1337_vm1, %v2240_v16 }
 0x23b   : > { %v2154_v19 = vmax.f32 %v9867_v18, 0.0 }
 0x23c   : > { %v1871_v20 = vpop.f32.mrf.mxu1 }
 0x23d   : > { %v2152_v22 = vmax.f32 %v1871_v20, 0.0  ;;  %v2242_v26 = vpack.c.bf16 %v2154_v19, %v2153_v23 }
 0x23e   : > { %v9870_v24 = vpop.f32.mrf.mxu1 }
 0x23f   : > { %v2241_v25 = vpack.c.bf16 %v2152_v22, %v2151_v21  ;;  %v2157_v33 = vmax.f32 %v9870_v24, 0.0 }
 0x240   : > { %v1884_v27 = vpop.f32.mrf.mxu1 }
 0x241   : > { %10000 = vmatprep.mubr.msk.bf16.mxu0 %vm1337_vm1, %v2241_v25  ;;  %v2155_v31 = vmax.f32 %v1884_v27, 0.0 }
 0x242   : > { %v9871_v28 = vpop.f32.mrf.mxu1  ;;  %10001 = vmatmul.mubr.msk.bf16.gmra.mxu0 %vm1337_vm1, %v2242_v26 }
 0x243   : > { %v2158_v29 = vmax.f32 %v9871_v28, 0.0 }
 0x244   : > { %v1887_v30 = vpop.f32.mrf.mxu1 }
 0x245   : > { %v2156_v32 = vmax.f32 %v1887_v30, 0.0  ;;  %v2244_v36 = vpack.c.bf16 %v2158_v29, %v2157_v33  ;;  %v10750_v33 = vld [vmem:[%s12698_s2 + $0x70] sm:$0xff]  }
 0x246   : > { %v9874_v34 = vpop.f32.mrf.mxu1 }
 0x247   : > { %v2243_v35 = vpack.c.bf16 %v2156_v32, %v2155_v31  ;;  %v2161_v43 = vmax.f32 %v9874_v34, 0.0 }
 0x248   : > { %v1900_v37 = vpop.f32.mrf.mxu1 }
 0x249   : > { %10004 = vmatprep.mubr.msk.bf16.mxu0 %vm1337_vm1, %v2243_v35  ;;  %v2159_v41 = vmax.f32 %v1900_v37, 0.0 }
 0x24a   : > { %v9875_v38 = vpop.f32.mrf.mxu1  ;;  %10005 = vmatmul.mubr.msk.bf16.gmra.mxu0 %vm1337_vm1, %v2244_v36 }
 0x24b   : > { %v2162_v39 = vmax.f32 %v9875_v38, 0.0 }
 0x24c   : > { %v1903_v40 = vpop.f32.mrf.mxu1 }
 0x24d   : > { %v2160_v42 = vmax.f32 %v1903_v40, 0.0  ;;  %v2246_v46 = vpack.c.bf16 %v2162_v39, %v2161_v43 }
 0x24e   : > { %v9878_v44 = vpop.f32.mrf.mxu1 }
 0x24f   : > { %v2245_v45 = vpack.c.bf16 %v2160_v42, %v2159_v41  ;;  %v2165_v53 = vmax.f32 %v9878_v44, 0.0 }
 0x250   : > { %v1916_v47 = vpop.f32.mrf.mxu1 }
 0x251   : > { %10008 = vmatprep.mubr.msk.bf16.mxu0 %vm1337_vm1, %v2245_v45  ;;  %v2163_v51 = vmax.f32 %v1916_v47, 0.0 }
 0x252   : > { %v9879_v48 = vpop.f32.mrf.mxu1  ;;  %10009 = vmatmul.mubr.msk.bf16.gmra.mxu0 %vm1337_vm1, %v2246_v46  ;;  %v10751_v46 = vld [vmem:[%s12698_s2 + $0x68] sm:$0xff]  }
 0x253   : > { %v2166_v49 = vmax.f32 %v9879_v48, 0.0 }
 0x254   : > { %v1919_v50 = vpop.f32.mrf.mxu1 }
 0x255   : > { %v2164_v52 = vmax.f32 %v1919_v50, 0.0  ;;  %v2248_v57 = vpack.c.bf16 %v2166_v49, %v2165_v53 }
 0x256   : > { %v9882_v54 = vpop.f32.mrf.mxu1 }
 0x257   : > { %v2247_v55 = vpack.c.bf16 %v2164_v52, %v2163_v51  ;;  %v2169_v0 = vmax.f32 %v9882_v54, 0.0 }
 0x258   : > { %v1932_v56 = vpop.f32.mrf.mxu1 }
 0x259   : > { %10012 = vmatprep.mubr.msk.bf16.mxu0 %vm1337_vm1, %v2247_v55  ;;  %v2167_v61 = vmax.f32 %v1932_v56, 0.0 }
 0x25a   : > { %v9883_v58 = vpop.f32.mrf.mxu1  ;;  %10013 = vmatmul.mubr.msk.bf16.gmra.mxu0 %vm1337_vm1, %v2248_v57 }
 0x25b   : > { %v2170_v59 = vmax.f32 %v9883_v58, 0.0 }
 0x25c   : > { %v1935_v60 = vpop.f32.mrf.mxu1 }
 0x25d   : > { %v2168_v63 = vmax.f32 %v1935_v60, 0.0  ;;  %v2250_v3 = vpack.c.bf16 %v2170_v59, %v2169_v0 }
 0x25e   : > { %v9886_v1 = vpop.f32.mrf.mxu1 }
 0x25f   : > { %v2249_v2 = vpack.c.bf16 %v2168_v63, %v2167_v61  ;;  %v2173_v10 = vmax.f32 %v9886_v1, 0.0 }
 0x260   : > { %v1948_v4 = vpop.f32.mrf.mxu1 }
 0x261   : > { %10016 = vmatprep.mubr.msk.bf16.mxu0 %vm1337_vm1, %v2249_v2  ;;  %v2171_v8 = vmax.f32 %v1948_v4, 0.0 }
 0x262   : > { %v9887_v5 = vpop.f32.mrf.mxu1  ;;  %10017 = vmatmul.mubr.msk.bf16.gmra.mxu0 %vm1337_vm1, %v2250_v3 }
 0x263   : > { %v2174_v6 = vmax.f32 %v9887_v5, 0.0 }
 0x264   : > { %v1951_v7 = vpop.f32.mrf.mxu1 }
 0x265   : > { %v2172_v9 = vmax.f32 %v1951_v7, 0.0  ;;  %v2252_v13 = vpack.c.bf16 %v2174_v6, %v2173_v10 }
 0x266   : > { %v9890_v11 = vpop.f32.mrf.mxu1 }
 0x267   : > { %v2251_v12 = vpack.c.bf16 %v2172_v9, %v2171_v8  ;;  %v2177_v22 = vmax.f32 %v9890_v11, 0.0 }
 0x268   : > { %v1964_v14 = vpop.f32.mrf.mxu1 }
 0x269   : > { %10020 = vmatprep.mubr.msk.bf16.mxu0 %vm1337_vm1, %v2251_v12  ;;  %v2175_v20 = vmax.f32 %v1964_v14, 0.0 }
 0x26a   : > { %v9891_v15 = vpop.f32.mrf.mxu1  ;;  %v9926_v16 = vpop.f32.mrf.mxu0  ;;  %10021 = vmatmul.mubr.msk.bf16.gmra.mxu0 %vm1337_vm1, %v2252_v13 }
 0x26b   : > { %3169 = vrot.lane.b32.xlu1 %v9926_v16, %s10769_s26  ;;  %v2178_v17 = vmax.f32 %v9891_v15, 0.0 }
 0x26c   : > { %v1967_v18 = vpop.f32.mrf.mxu1  ;;  %v2526_v19 = vpop.f32.mrf.mxu0 }
 0x26d   : > { %v2176_v21 = vmax.f32 %v1967_v18, 0.0  ;;  %3165 = vrot.lane.b32.xlu0 %v2526_v19, %s10769_s26  ;;  %v2254_v26 = vpack.c.bf16 %v2178_v17, %v2177_v22 }
 0x26e   : > { %v9894_v23 = vpop.f32.mrf.mxu1  ;;  %v9927_v24 = vpop.f32.mrf.mxu0 }
 0x26f   : > { %v2253_v25 = vpack.c.bf16 %v2176_v21, %v2175_v20  ;;  %3171 = vrot.lane.b32.xlu1 %v9927_v24, %s10769_s26  ;;  %v3874_v30 = vpack.c.bf16 %v9927_v24, %v9926_v16  ;;  %v2181_v39 = vmax.f32 %v9894_v23, 0.0 }
 0x270   : > { %v1980_v27 = vpop.f32.mrf.mxu1  ;;  %v2529_v28 = vpop.f32.mrf.mxu0 }
 0x271   : > { %v3873_v29 = vpack.c.bf16 %v2529_v28, %v2526_v19  ;;  %10024 = vmatprep.mubr.msk.bf16.mxu0 %vm1337_vm1, %v2253_v25  ;;  %3167 = vrot.lane.b32.xlu0 %v2529_v28, %s10769_s26  ;;  %v2179_v37 = vmax.f32 %v1980_v27, 0.0 }
 0x272   : > { %v9895_v31 = vpop.f32.mrf.mxu1  ;;  %v9930_v32 = vpop.f32.mrf.mxu0  ;;  %10025 = vmatmul.mubr.msk.bf16.gmra.mxu0 %vm1337_vm1, %v2254_v26 }
 0x273   : > { %10060 = vmatprep.mubr.msk.bf16.mxu1 %vm1337_vm1, %v3873_v29  ;;  %v2182_v34 = vmax.f32 %v9895_v31, 0.0 }
 0x274   : > { %v1983_v35 = vpop.f32.mrf.mxu1  ;;  %v2542_v36 = vpop.f32.mrf.mxu0  ;;  %10061 = vmatmul.mubr.msk.bf16.vlgmr.msra.gmra.mxu1 %vm1337_vm1, %v3874_v30 }
 0x275   : > { %v2180_v38 = vmax.f32 %v1983_v35, 0.0  ;;  %3177 = vrot.lane.b32.xlu0 %v9930_v32, %s10769_s26  ;;  %10319 = vmatpush3.bf16.msra.mxu1 %v11133_v62  ;;  %v2256_v43 = vpack.c.bf16 %v2182_v34, %v2181_v39 }
 0x276   : > { %v9898_v40 = vpop.f32.mrf.mxu1  ;;  %v9931_v41 = vpop.f32.mrf.mxu0  ;;  %10320 = vmatprep.subr.bf16.mxu1 %v10750_v33 }
 0x277   : > { %v2255_v42 = vpack.c.bf16 %v2180_v38, %v2179_v37  ;;  %3179 = vrot.lane.b32.xlu1 %v9931_v41, %s10769_s26  ;;  %v3876_v62 = vpack.c.bf16 %v9931_v41, %v9930_v32  ;;  %v2185_v55 = vmax.f32 %v9898_v40, 0.0 }
 0x278   : > { %v1996_v44 = vpop.f32.mrf.mxu1  ;;  %v2545_v45 = vpop.f32.mrf.mxu0 }
 0x279   : > { %v3875_v47 = vpack.c.bf16 %v2545_v45, %v2542_v36  ;;  %10028 = vmatprep.mubr.msk.bf16.mxu0 %vm1337_vm1, %v2255_v42  ;;  %3173 = vrot.lane.b32.xlu0 %v2542_v36, %s10769_s26  ;;  %v2183_v53 = vmax.f32 %v1996_v44, 0.0 }
 0x27a   : > { %v9899_v48 = vpop.f32.mrf.mxu1  ;;  %v9934_v49 = vpop.f32.mrf.mxu0  ;;  %10029 = vmatmul.mubr.msk.bf16.gmra.mxu0 %vm1337_vm1, %v2256_v43  ;;  %10321 = vmatpush3.bf16.msra.mxu1 %v10750_v33 }
 0x27b   : > { %3175 = vrot.lane.b32.xlu1 %v2545_v45, %s10769_s26  ;;  %10064 = vmatprep.mubr.msk.bf16.mxu1 %vm1337_vm1, %v3875_v47  ;;  %v2186_v50 = vmax.f32 %v9899_v48, 0.0 }
 0x27c   : > { %v1999_v51 = vpop.f32.mrf.mxu1  ;;  %v2558_v52 = vpop.f32.mrf.mxu0  ;;  %10065 = vmatmul.mubr.msk.bf16.gmra.mxu1 %vm1337_vm1, %v3876_v62  ;;  %10322 = vmatprep.subr.bf16.mxu1 %v10751_v46 }
 0x27d   : > { %v2184_v54 = vmax.f32 %v1999_v51, 0.0  ;;  %3185 = vrot.lane.b32.xlu0 %v9934_v49, %s10769_s26  ;;  %v2258_v59 = vpack.c.bf16 %v2186_v50, %v2185_v55  ;;  %v3678_v55 = vld [vmem:[%s10809_s20] sm:$0xff] }
 0x27e   : > { %v9902_v57 = vpop.f32.mrf.mxu1  ;;  %v9935_v56 = vpop.f32.mrf.mxu0  ;;  %10323 = vmatpush3.bf16.msra.mxu1 %v10751_v46 }
 0x27f   : > { %v2257_v58 = vpack.c.bf16 %v2184_v54, %v2183_v53  ;;  %3187 = vrot.lane.b32.xlu1 %v9935_v56, %s10769_s26  ;;  %v3878_v0 = vpack.c.bf16 %v9935_v56, %v9934_v49  ;;  %v2189_v8 = vmax.f32 %v9902_v57, 0.0  ;;  %v3679_v57 = vld [vmem:[%s10809_s20 + $0x8] sm:$0xff] }
 0x280   : > { %v2012_v60 = vpop.f32.mrf.mxu1  ;;  %v2561_v61 = vpop.f32.mrf.mxu0 }
 0x281   : > { %v3877_v63 = vpack.c.bf16 %v2561_v61, %v2558_v52  ;;  %10032 = vmatprep.mubr.msk.bf16.mxu0 %vm1337_vm1, %v2257_v58  ;;  %3181 = vrot.lane.b32.xlu0 %v2558_v52, %s10769_s26  ;;  %v2187_v6 = vmax.f32 %v2012_v60, 0.0 }
 0x282   : > { %v9903_v1 = vpop.f32.mrf.mxu1  ;;  %v9938_v2 = vpop.f32.mrf.mxu0  ;;  %10033 = vmatmul.mubr.msk.bf16.gmra.mxu0 %vm1337_vm1, %v2258_v59 }
 0x283   : > { %3183 = vrot.lane.b32.xlu1 %v2561_v61, %s10769_s26  ;;  %10068 = vmatprep.mubr.msk.bf16.mxu1 %vm1337_vm1, %v3877_v63  ;;  %v2190_v3 = vmax.f32 %v9903_v1, 0.0  ;;  %v3806_v63 = vpack.c.bf16 %v3679_v57, %v3678_v55  ;;  %v3698_v55 = vld [vmem:[%s10809_s20 + $0xa0] sm:$0xff]  ;;  %v3699_v57 = vld [vmem:[%s10809_s20 + $0xa8] sm:$0xff] }
 0x284   : > { %v2015_v4 = vpop.f32.mrf.mxu1  ;;  %v2574_v5 = vpop.f32.mrf.mxu0  ;;  %10069 = vmatmul.mubr.msk.bf16.gmra.mxu1 %vm1337_vm1, %v3878_v0 }
 0x285   : > { %v2188_v7 = vmax.f32 %v2015_v4, 0.0  ;;  %3193 = vrot.lane.b32.xlu0 %v9938_v2, %s10769_s26  ;;  %v2260_v12 = vpack.c.bf16 %v2190_v3, %v2189_v8  ;;  %v3680_v3 = vld [vmem:[%s10809_s20 + $0x10] sm:$0xff]  ;;  %v3681_v4 = vld [vmem:[%s10809_s20 + $0x18] sm:$0xff] }
 0x286   : > { %v9906_v9 = vpop.f32.mrf.mxu1  ;;  %v9939_v10 = vpop.f32.mrf.mxu0 }
 0x287   : > { %v2259_v11 = vpack.c.bf16 %v2188_v7, %v2187_v6  ;;  %3195 = vrot.lane.b32.xlu1 %v9939_v10, %s10769_s26  ;;  %v3880_v16 = vpack.c.bf16 %v9939_v10, %v9938_v2  ;;  %v2193_v24 = vmax.f32 %v9906_v9, 0.0  ;;  %v3682_v6 = vld [vmem:[%s10809_s20 + $0x20] sm:$0xff]  ;;  %v3683_v7 = vld [vmem:[%s10809_s20 + $0x28] sm:$0xff]  ;;  %v3807_v9 = vpack.c.bf16 %v3681_v4, %v3680_v3 }
 0x288   : > { %v2028_v13 = vpop.f32.mrf.mxu1  ;;  %v2577_v14 = vpop.f32.mrf.mxu0  ;;  %v3702_v4 = vld [vmem:[%s10809_s20 + $0xc0] sm:$0xff] }
 0x289   : > { %v3879_v15 = vpack.c.bf16 %v2577_v14, %v2574_v5  ;;  %10036 = vmatprep.mubr.msk.bf16.mxu0 %vm1337_vm1, %v2259_v11  ;;  %3189 = vrot.lane.b32.xlu0 %v2574_v5, %s10769_s26  ;;  %v2191_v22 = vmax.f32 %v2028_v13, 0.0  ;;  %v3808_v11 = vpack.c.bf16 %v3683_v7, %v3682_v6 }
 0x28a   : > { %v9907_v17 = vpop.f32.mrf.mxu1  ;;  %v9942_v18 = vpop.f32.mrf.mxu0  ;;  %10037 = vmatmul.mubr.msk.bf16.gmra.mxu0 %vm1337_vm1, %v2260_v12 }
 0x28b   : > { %3191 = vrot.lane.b32.xlu1 %v2577_v14, %s10769_s26  ;;  %10072 = vmatprep.mubr.msk.bf16.mxu1 %vm1337_vm1, %v3879_v15  ;;  %v2194_v19 = vmax.f32 %v9907_v17, 0.0  ;;  %v3684_v15 = vld [vmem:[%s10809_s20 + $0x30] sm:$0xff] }
 0x28c   : > { %v2031_v20 = vpop.f32.mrf.mxu1  ;;  %v2590_v21 = vpop.f32.mrf.mxu0  ;;  %10073 = vmatmul.mubr.msk.bf16.gmra.mxu1 %vm1337_vm1, %v3880_v16  ;;  %v3685_v16 = vld [vmem:[%s10809_s20 + $0x38] sm:$0xff] }
 0x28d   : > { %v2192_v23 = vmax.f32 %v2031_v20, 0.0  ;;  %3201 = vrot.lane.b32.xlu0 %v9942_v18, %s10769_s26  ;;  %v2262_v28 = vpack.c.bf16 %v2194_v19, %v2193_v24  ;;  %v3687_v19 = vld [vmem:[%s10809_s20 + $0x48] sm:$0xff] }
 0x28e   : > { %v9910_v25 = vpop.f32.mrf.mxu1  ;;  %v9943_v26 = vpop.f32.mrf.mxu0 }
 0x28f   : > { %v2261_v27 = vpack.c.bf16 %v2192_v23, %v2191_v22  ;;  %3203 = vrot.lane.b32.xlu1 %v9943_v26, %s10769_s26  ;;  %v3882_v32 = vpack.c.bf16 %v9943_v26, %v9942_v18  ;;  %v2197_v40 = vmax.f32 %v9910_v25, 0.0  ;;  %v3686_v18 = vld [vmem:[%s10809_s20 + $0x40] sm:$0xff] }
 0x290   : > { %v2044_v29 = vpop.f32.mrf.mxu1  ;;  %v2593_v30 = vpop.f32.mrf.mxu0  ;;  %v3810_v23 = vpack.c.bf16 %v3687_v19, %v3686_v18 }
 0x291   : > { %v3881_v31 = vpack.c.bf16 %v2593_v30, %v2590_v21  ;;  %10040 = vmatprep.mubr.msk.bf16.mxu0 %vm1337_vm1, %v2261_v27  ;;  %3197 = vrot.lane.b32.xlu0 %v2590_v21, %s10769_s26  ;;  %v2195_v38 = vmax.f32 %v2044_v29, 0.0  ;;  %v3809_v21 = vpack.c.bf16 %v3685_v16, %v3684_v15  ;;  %v3688_v27 = vld [vmem:[%s10809_s20 + $0x50] sm:$0xff]  ;;  %v3706_v16 = vld [vmem:[%s10809_s20 + $0xe0] sm:$0xff] }
 0x292   : > { %v9911_v33 = vpop.f32.mrf.mxu1  ;;  %v9946_v34 = vpop.f32.mrf.mxu0  ;;  %10041 = vmatmul.mubr.msk.bf16.gmra.mxu0 %vm1337_vm1, %v2262_v28  ;;  %v3689_v28 = vld [vmem:[%s10809_s20 + $0x58] sm:$0xff] }
 0x293   : > { %3199 = vrot.lane.b32.xlu1 %v2593_v30, %s10769_s26  ;;  %10076 = vmatprep.mubr.msk.bf16.mxu1 %vm1337_vm1, %v3881_v31  ;;  %v2198_v35 = vmax.f32 %v9911_v33, 0.0  ;;  %v3690_v30 = vld [vmem:[%s10809_s20 + $0x60] sm:$0xff]  ;;  %v3691_v31 = vld [vmem:[%s10809_s20 + $0x68] sm:$0xff]  ;;  %v3811_v33 = vpack.c.bf16 %v3689_v28, %v3688_v27 }
 0x294   : > { %v2047_v36 = vpop.f32.mrf.mxu1  ;;  %v2606_v37 = vpop.f32.mrf.mxu0  ;;  %10077 = vmatmul.mubr.msk.bf16.gmra.mxu1 %vm1337_vm1, %v3882_v32 }
 0x295   : > { %v2196_v39 = vmax.f32 %v2047_v36, 0.0  ;;  %3209 = vrot.lane.b32.xlu0 %v9946_v34, %s10769_s26  ;;  %v2264_v44 = vpack.c.bf16 %v2198_v35, %v2197_v40  ;;  %v3812_v35 = vpack.c.bf16 %v3691_v31, %v3690_v30  ;;  %v10752_v36 = vld [vmem:[%s12698_s2 + $0x60] sm:$0xff]   ;;  %v3692_v40 = vld [vmem:[%s10809_s20 + $0x70] sm:$0xff]  ;;  %v3711_v30 = vld [vmem:[%s10809_s20 + $0x108] sm:$0xff] }
 0x296   : > { %v9914_v41 = vpop.f32.mrf.mxu1  ;;  %v9947_v42 = vpop.f32.mrf.mxu0  ;;  %10324 = vmatprep.subr.bf16.mxu1 %v10752_v36 }
 0x297   : > { %v2263_v43 = vpack.c.bf16 %v2196_v39, %v2195_v38  ;;  %3211 = vrot.lane.b32.xlu1 %v9947_v42, %s10769_s26  ;;  %v3884_v62 = vpack.c.bf16 %v9947_v42, %v9946_v34  ;;  %v2201_v56 = vmax.f32 %v9914_v41, 0.0  ;;  %v3693_v41 = vld [vmem:[%s10809_s20 + $0x78] sm:$0xff]  ;;  %10325 = vmatpush3.bf16.msra.mxu1 %v10752_v36 }
 0x298   : > { %v2060_v45 = vpop.f32.mrf.mxu1  ;;  %v2609_v46 = vpop.f32.mrf.mxu0 }
 0x299   : > { %v3883_v47 = vpack.c.bf16 %v2609_v46, %v2606_v37  ;;  %10044 = vmatprep.mubr.msk.bf16.mxu0 %vm1337_vm1, %v2263_v43  ;;  %3205 = vrot.lane.b32.xlu0 %v2606_v37, %s10769_s26  ;;  %v2199_v53 = vmax.f32 %v2060_v45, 0.0  ;;  %v3694_v43 = vld [vmem:[%s10809_s20 + $0x80] sm:$0xff] }
 0x29a   : > { %v9915_v48 = vpop.f32.mrf.mxu1  ;;  %v9950_v49 = vpop.f32.mrf.mxu0  ;;  %10045 = vmatmul.mubr.msk.bf16.gmra.mxu0 %vm1337_vm1, %v2264_v44  ;;  %v3695_v44 = vld [vmem:[%s10809_s20 + $0x88] sm:$0xff] }
 0x29b   : > { %3207 = vrot.lane.b32.xlu1 %v2609_v46, %s10769_s26  ;;  %10080 = vmatprep.mubr.msk.bf16.mxu1 %vm1337_vm1, %v3883_v47  ;;  %v2202_v50 = vmax.f32 %v9915_v48, 0.0  ;;  %v3813_v46 = vpack.c.bf16 %v3693_v41, %v3692_v40  ;;  %v3712_v41 = vld [vmem:[%s10809_s20 + $0x110] sm:$0xff] }
 0x29c   : > { %v2063_v51 = vpop.f32.mrf.mxu1  ;;  %v2622_v52 = vpop.f32.mrf.mxu0  ;;  %10081 = vmatmul.mubr.msk.bf16.gmra.mxu1 %vm1337_vm1, %v3884_v62  ;;  %v3814_v62 = vpack.c.bf16 %v3695_v44, %v3694_v43  ;;  %v3714_v44 = vld [vmem:[%s10809_s20 + $0x120] sm:$0xff] }
 0x29d   : > { %v2200_v54 = vmax.f32 %v2063_v51, 0.0  ;;  %3217 = vrot.lane.b32.xlu0 %v9950_v49, %s10769_s26  ;;  %v2266_v60 = vpack.c.bf16 %v2202_v50, %v2201_v56  ;;  %v10753_v51 = vld [vmem:[%s12698_s2 + $0x98] sm:$0xff]  }
 0x29e   : > { %v9951_v58 = vpop.f32.mrf.mxu0  ;;  %10454 = vmatprep.subr.bf16.mxu0 %v10753_v51 }
 0x29f   : > { %v2265_v59 = vpack.c.bf16 %v2200_v54, %v2199_v53  ;;  %3219 = vrot.lane.b32.xlu1 %v9951_v58, %s10769_s26  ;;  %v3886_v1 = vpack.c.bf16 %v9951_v58, %v9950_v49  ;;  %v3697_v53 = vld [vmem:[%s10809_s20 + $0x98] sm:$0xff] }
 0x2a0   : > { %v2625_v61 = vpop.f32.mrf.mxu0 }
 0x2a1   : > { %v3885_v0 = vpack.c.bf16 %v2625_v61, %v2622_v52  ;;  %3213 = vrot.lane.b32.xlu0 %v2622_v52, %s10769_s26  ;;  %10048 = vmatprep.mubr.msk.bf16.mxu0 %vm1337_vm1, %v2265_v59  ;;  %v3696_v52 = vld [vmem:[%s10809_s20 + $0x90] sm:$0xff] }
 0x2a2   : > { %v9954_v2 = vpop.f32.mrf.mxu0  ;;  %10049 = vmatmul.mubr.msk.bf16.gmra.mxu0 %vm1337_vm1, %v2266_v60  ;;  %v3815_v58 = vpack.c.bf16 %v3697_v53, %v3696_v52  ;;  %v3816_v60 = vpack.c.bf16 %v3699_v57, %v3698_v55  ;;  %v3716_v55 = vld [vmem:[%s10809_s20 + $0x130] sm:$0xff]  ;;  %v3717_v57 = vld [vmem:[%s10809_s20 + $0x138] sm:$0xff] }
 0x2a3   : > { %3215 = vrot.lane.b32.xlu1 %v2625_v61, %s10769_s26  ;;  %10084 = vmatprep.mubr.msk.bf16.mxu1 %vm1337_vm1, %v3885_v0 }
 0x2a4   : > { %v2638_v5 = vpop.f32.mrf.mxu0  ;;  %10085 = vmatmul.mubr.msk.bf16.gmra.mxu1 %vm1337_vm1, %v3886_v1  ;;  %10190 = vmatprep.mubr.msk.bf16.mxu0 %vm375_vm0, %v3806_v63  ;;  %v3700_v1 = vld [vmem:[%s10809_s20 + $0xb0] sm:$0xff] }
 0x2a5   : > { %3225 = vrot.lane.b32.xlu0 %v9954_v2, %s10769_s26 }
 0x2a6   : > { %v9955_v8 = vpop.f32.mrf.mxu0 }
 0x2a7   : > { %3227 = vrot.lane.b32.xlu1 %v9955_v8, %s10769_s26  ;;  %v3888_v13 = vpack.c.bf16 %v9955_v8, %v9954_v2  ;;  %v3701_v2 = vld [vmem:[%s10809_s20 + $0xb8] sm:$0xff] }
 0x2a8   : > { %v2641_v10 = vpop.f32.mrf.mxu0  ;;  %v3817_v7 = vpack.c.bf16 %v3701_v2, %v3700_v1 }
 0x2a9   : > { %v3887_v12 = vpack.c.bf16 %v2641_v10, %v2638_v5  ;;  %3221 = vrot.lane.b32.xlu0 %v2638_v5, %s10769_s26  ;;  %v3703_v5 = vld [vmem:[%s10809_s20 + $0xc8] sm:$0xff] }
 0x2aa   : > { %v9958_v14 = vpop.f32.mrf.mxu0  ;;  %10191 = vmatmul.mubr.msk.bf16.vlgmr.msra.gmra.mxu0 %vm375_vm0, %v3807_v9  ;;  %v3818_v9 = vpack.c.bf16 %v3703_v5, %v3702_v4 }
 0x2ab   : > { %3223 = vrot.lane.b32.xlu1 %v2641_v10, %s10769_s26  ;;  %10088 = vmatprep.mubr.msk.bf16.mxu1 %vm1337_vm1, %v3887_v12 }
 0x2ac   : > { %v2654_v17 = vpop.f32.mrf.mxu0  ;;  %10089 = vmatmul.mubr.msk.bf16.gmra.mxu1 %vm1337_vm1, %v3888_v13  ;;  %10194 = vmatprep.mubr.msk.bf16.mxu0 %vm375_vm0, %v3808_v11  ;;  %v3704_v13 = vld [vmem:[%s10809_s20 + $0xd0] sm:$0xff] }
 0x2ad   : > { %3233 = vrot.lane.b32.xlu0 %v9958_v14, %s10769_s26  ;;  %10455 = vmatpush3.bf16.msra.mxu0 %v10753_v51 }
 0x2ae   : > { %v9959_v20 = vpop.f32.mrf.mxu0 }
 0x2af   : > { %3235 = vrot.lane.b32.xlu1 %v9959_v20, %s10769_s26  ;;  %v3890_v25 = vpack.c.bf16 %v9959_v20, %v9958_v14  ;;  %v3705_v14 = vld [vmem:[%s10809_s20 + $0xd8] sm:$0xff] }
 0x2b0   : > { %v2657_v22 = vpop.f32.mrf.mxu0  ;;  %v3819_v19 = vpack.c.bf16 %v3705_v14, %v3704_v13  ;;  %v3723_v13 = vld [vmem:[%s10809_s20 + $0x168] sm:$0xff] }
 0x2b1   : > { %v3889_v24 = vpack.c.bf16 %v2657_v22, %v2654_v17  ;;  %3229 = vrot.lane.b32.xlu0 %v2654_v17, %s10769_s26  ;;  %v3707_v17 = vld [vmem:[%s10809_s20 + $0xe8] sm:$0xff] }
 0x2b2   : > { %v9962_v26 = vpop.f32.mrf.mxu0  ;;  %10195 = vmatmul.mubr.msk.bf16.gmra.mxu0 %vm375_vm0, %v3809_v21  ;;  %v3820_v21 = vpack.c.bf16 %v3707_v17, %v3706_v16 }
 0x2b3   : > { %3231 = vrot.lane.b32.xlu1 %v2657_v22, %s10769_s26  ;;  %10092 = vmatprep.mubr.msk.bf16.mxu1 %vm1337_vm1, %v3889_v24 }
 0x2b4   : > { %v2670_v29 = vpop.f32.mrf.mxu0  ;;  %10093 = vmatmul.mubr.msk.bf16.gmra.mxu1 %vm1337_vm1, %v3890_v25  ;;  %10198 = vmatprep.mubr.msk.bf16.mxu0 %vm375_vm0, %v3810_v23  ;;  %v3708_v25 = vld [vmem:[%s10809_s20 + $0xf0] sm:$0xff] }
 0x2b5   : > { %3241 = vrot.lane.b32.xlu0 %v9962_v26, %s10769_s26 }
 0x2b6   : > { %v9963_v32 = vpop.f32.mrf.mxu0 }
 0x2b7   : > { %3243 = vrot.lane.b32.xlu1 %v9963_v32, %s10769_s26  ;;  %v3892_v38 = vpack.c.bf16 %v9963_v32, %v9962_v26  ;;  %v3709_v26 = vld [vmem:[%s10809_s20 + $0xf8] sm:$0xff] }
 0x2b8   : > { %v2673_v34 = vpop.f32.mrf.mxu0  ;;  %v3821_v32 = vpack.c.bf16 %v3709_v26, %v3708_v25  ;;  %v3725_v25 = vld [vmem:[%s10809_s20 + $0x178] sm:$0xff] }
 0x2b9   : > { %v3891_v37 = vpack.c.bf16 %v2673_v34, %v2670_v29  ;;  %3237 = vrot.lane.b32.xlu0 %v2670_v29, %s10769_s26  ;;  %v3710_v29 = vld [vmem:[%s10809_s20 + $0x100] sm:$0xff] }
 0x2ba   : > { %v9966_v39 = vpop.f32.mrf.mxu0  ;;  %10199 = vmatmul.mubr.msk.bf16.gmra.mxu0 %vm375_vm0, %v3811_v33 }
 0x2bb   : > { %3239 = vrot.lane.b32.xlu1 %v2673_v34, %s10769_s26  ;;  %10096 = vmatprep.mubr.msk.bf16.mxu1 %vm1337_vm1, %v3891_v37 }
 0x2bc   : > { %v2686_v42 = vpop.f32.mrf.mxu0  ;;  %10097 = vmatmul.mubr.msk.bf16.gmra.mxu1 %vm1337_vm1, %v3892_v38  ;;  %10202 = vmatprep.mubr.msk.bf16.mxu0 %vm375_vm0, %v3812_v35  ;;  %v3822_v35 = vpack.c.bf16 %v3711_v30, %v3710_v29  ;;  %v3727_v29 = vld [vmem:[%s10809_s20 + $0x188] sm:$0xff] }
 0x2bd   : > { %3249 = vrot.lane.b32.xlu0 %v9966_v39, %s10769_s26 }
 0x2be   : > { %v9967_v45 = vpop.f32.mrf.mxu0 }
 0x2bf   : > { %3251 = vrot.lane.b32.xlu1 %v9967_v45, %s10769_s26  ;;  %v3894_v49 = vpack.c.bf16 %v9967_v45, %v9966_v39  ;;  %v3715_v45 = vld [vmem:[%s10809_s20 + $0x128] sm:$0xff] }
 0x2c0   : > { %v2689_v47 = vpop.f32.mrf.mxu0 }
 0x2c1   : > { %v3893_v48 = vpack.c.bf16 %v2689_v47, %v2686_v42  ;;  %3245 = vrot.lane.b32.xlu0 %v2686_v42, %s10769_s26  ;;  %v3713_v42 = vld [vmem:[%s10809_s20 + $0x118] sm:$0xff] }
 0x2c2   : > { %v9970_v50 = vpop.f32.mrf.mxu0  ;;  %10203 = vmatmul.mubr.msk.bf16.gmra.mxu0 %vm375_vm0, %v3813_v46 }
 0x2c3   : > { %3247 = vrot.lane.b32.xlu1 %v2689_v47, %s10769_s26  ;;  %10100 = vmatprep.mubr.msk.bf16.mxu1 %vm1337_vm1, %v3893_v48  ;;  %v3823_v47 = vpack.c.bf16 %v3713_v42, %v3712_v41  ;;  %v3729_v41 = vld [vmem:[%s10809_s20 + $0x198] sm:$0xff] }
 0x2c4   : > { %v2702_v54 = vpop.f32.mrf.mxu0  ;;  %10101 = vmatmul.mubr.msk.bf16.gmra.mxu1 %vm1337_vm1, %v3894_v49  ;;  %10206 = vmatprep.mubr.msk.bf16.mxu0 %vm375_vm0, %v3814_v62  ;;  %v3824_v49 = vpack.c.bf16 %v3715_v45, %v3714_v44  ;;  %v3730_v44 = vld [vmem:[%s10809_s20 + $0x1a0] sm:$0xff]  ;;  %v3731_v45 = vld [vmem:[%s10809_s20 + $0x1a8] sm:$0xff] }
 0x2c5   : > { %3257 = vrot.lane.b32.xlu0 %v9970_v50, %s10769_s26 }
 0x2c6   : > { %v9971_v56 = vpop.f32.mrf.mxu0 }
 0x2c7   : > { %3259 = vrot.lane.b32.xlu1 %v9971_v56, %s10769_s26  ;;  %v3896_v63 = vpack.c.bf16 %v9971_v56, %v9970_v50 }
 0x2c8   : > { %v2705_v59 = vpop.f32.mrf.mxu0 }
 0x2c9   : > { %v3895_v61 = vpack.c.bf16 %v2705_v59, %v2702_v54  ;;  %3253 = vrot.lane.b32.xlu0 %v2702_v54, %s10769_s26 }
 0x2ca   : > { %v9974_v0 = vpop.f32.mrf.mxu0  ;;  %10207 = vmatmul.mubr.msk.bf16.gmra.mxu0 %vm375_vm0, %v3815_v58 }
 0x2cb   : > { %3255 = vrot.lane.b32.xlu1 %v2705_v59, %s10769_s26  ;;  %10104 = vmatprep.mubr.msk.bf16.mxu1 %vm1337_vm1, %v3895_v61  ;;  %v3718_v59 = vld [vmem:[%s10809_s20 + $0x140] sm:$0xff] }
 0x2cc   : > { %v2718_v3 = vpop.f32.mrf.mxu0  ;;  %10105 = vmatmul.mubr.msk.bf16.gmra.mxu1 %vm1337_vm1, %v3896_v63  ;;  %10210 = vmatprep.mubr.msk.bf16.mxu0 %vm375_vm0, %v3816_v60  ;;  %v3719_v60 = vld [vmem:[%s10809_s20 + $0x148] sm:$0xff]  ;;  %v3825_v63 = vpack.c.bf16 %v3717_v57, %v3716_v55  ;;  %v3732_v57 = vld [vmem:[%s10809_s20 + $0x1b0] sm:$0xff] }
 0x2cd   : > { %3265 = vrot.lane.b32.xlu0 %v9974_v0, %s10769_s26  ;;  %v3826_v2 = vpack.c.bf16 %v3719_v60, %v3718_v59  ;;  %v3734_v60 = vld [vmem:[%s10809_s20 + $0x1c0] sm:$0xff] }
 0x2ce   : > { %v9975_v6 = vpop.f32.mrf.mxu0 }
 0x2cf   : > { %3267 = vrot.lane.b32.xlu1 %v9975_v6, %s10769_s26  ;;  %v3898_v11 = vpack.c.bf16 %v9975_v6, %v9974_v0 }
 0x2d0   : > { %v2721_v8 = vpop.f32.mrf.mxu0 }
 0x2d1   : > { %v3897_v10 = vpack.c.bf16 %v2721_v8, %v2718_v3  ;;  %3261 = vrot.lane.b32.xlu0 %v2718_v3, %s10769_s26 }
 0x2d2   : > { %v9978_v12 = vpop.f32.mrf.mxu0  ;;  %10211 = vmatmul.mubr.msk.bf16.gmra.mxu0 %vm375_vm0, %v3817_v7 }
 0x2d3   : > { %3263 = vrot.lane.b32.xlu1 %v2721_v8, %s10769_s26  ;;  %10108 = vmatprep.mubr.msk.bf16.mxu1 %vm1337_vm1, %v3897_v10  ;;  %v3720_v8 = vld [vmem:[%s10809_s20 + $0x150] sm:$0xff] }
 0x2d4   : > { %v2734_v15 = vpop.f32.mrf.mxu0  ;;  %10109 = vmatmul.mubr.msk.bf16.gmra.mxu1 %vm1337_vm1, %v3898_v11  ;;  %10214 = vmatprep.mubr.msk.bf16.mxu0 %vm375_vm0, %v3818_v9  ;;  %v3721_v9 = vld [vmem:[%s10809_s20 + $0x158] sm:$0xff] }
 0x2d5   : > { %3273 = vrot.lane.b32.xlu0 %v9978_v12, %s10769_s26 }
 0x2d6   : > { %v9979_v18 = vpop.f32.mrf.mxu0 }
 0x2d7   : > { %3275 = vrot.lane.b32.xlu1 %v9979_v18, %s10769_s26  ;;  %v3900_v23 = vpack.c.bf16 %v9979_v18, %v9978_v12  ;;  %v3722_v12 = vld [vmem:[%s10809_s20 + $0x160] sm:$0xff] }
 0x2d8   : > { %v2737_v20 = vpop.f32.mrf.mxu0  ;;  %v3828_v18 = vpack.c.bf16 %v3723_v13, %v3722_v12  ;;  %v3738_v13 = vld [vmem:[%s10809_s20 + $0x1e0] sm:$0xff] }
 0x2d9   : > { %v3899_v22 = vpack.c.bf16 %v2737_v20, %v2734_v15  ;;  %3269 = vrot.lane.b32.xlu0 %v2734_v15, %s10769_s26  ;;  %v3827_v15 = vpack.c.bf16 %v3721_v9, %v3720_v8  ;;  %v3736_v9 = vld [vmem:[%s10809_s20 + $0x1d0] sm:$0xff] }
 0x2da   : > { %v9982_v24 = vpop.f32.mrf.mxu0  ;;  %10215 = vmatmul.mubr.msk.bf16.gmra.mxu0 %vm375_vm0, %v3819_v19 }
 0x2db   : > { %3271 = vrot.lane.b32.xlu1 %v2737_v20, %s10769_s26  ;;  %10112 = vmatprep.mubr.msk.bf16.mxu1 %vm1337_vm1, %v3899_v22 }
 0x2dc   : > { %v2750_v27 = vpop.f32.mrf.mxu0  ;;  %10113 = vmatmul.mubr.msk.bf16.gmra.mxu1 %vm1337_vm1, %v3900_v23  ;;  %10218 = vmatprep.mubr.msk.bf16.mxu0 %vm375_vm0, %v3820_v21 }
 0x2dd   : > { %v3170_v28 = vpop.permute.xlu1 %3169  ;;  %3281 = vrot.lane.b32.xlu0 %v9982_v24, %s10769_s26 }
 0x2de   : > { %3552 = vst.msk [vmem:[%s11325_s10 + $0x10] sm:$0xff] %vm3549_vm2, %v3170_v28  ;;  %v9983_v31 = vpop.f32.mrf.mxu0  ;;  %v3726_v28 = vld [vmem:[%s10809_s20 + $0x180] sm:$0xff] }
 0x2df   : > { %v3166_v33 = vpop.permute.xlu0 %3165  ;;  %3283 = vrot.lane.b32.xlu1 %v9983_v31, %s10769_s26  ;;  %v3902_v38 = vpack.c.bf16 %v9983_v31, %v9982_v24  ;;  %v3724_v24 = vld [vmem:[%s10809_s20 + $0x170] sm:$0xff] }
 0x2e0   : > { %3550 = vst.msk [vmem:[%s11325_s10] sm:$0xff] %vm3549_vm2, %v3166_v33  ;;  %v2753_v34 = vpop.f32.mrf.mxu0  ;;  %v3829_v31 = vpack.c.bf16 %v3725_v25, %v3724_v24  ;;  %v3740_v25 = vld [vmem:[%s10809_s20 + $0x1f0] sm:$0xff] }
 0x2e1   : > { %v3901_v36 = vpack.c.bf16 %v2753_v34, %v2750_v27  ;;  %v3172_v37 = vpop.permute.xlu1 %3171  ;;  %3277 = vrot.lane.b32.xlu0 %v2750_v27, %s10769_s26 }
 0x2e2   : > { %3553 = vst.msk [vmem:[%s11325_s10 + $0x18] sm:$0xff] %vm3549_vm2, %v3172_v37  ;;  %v9986_v39 = vpop.f32.mrf.mxu0  ;;  %10219 = vmatmul.mubr.msk.bf16.gmra.mxu0 %vm375_vm0, %v3821_v32 }
 0x2e3   : > { %v3168_v40 = vpop.permute.xlu0 %3167  ;;  %3279 = vrot.lane.b32.xlu1 %v2753_v34, %s10769_s26  ;;  %10116 = vmatprep.mubr.msk.bf16.mxu1 %vm1337_vm1, %v3901_v36  ;;  %v3830_v34 = vpack.c.bf16 %v3727_v29, %v3726_v28  ;;  %v3742_v29 = vld [vmem:[%s10809_s20 + $0x200] sm:$0xff] }
 0x2e4   : > { %3551 = vst.msk [vmem:[%s11325_s10 + $0x8] sm:$0xff] %vm3549_vm2, %v3168_v40  ;;  %v2766_v43 = vpop.f32.mrf.mxu0  ;;  %10117 = vmatmul.mubr.msk.bf16.gmra.mxu1 %vm1337_vm1, %v3902_v38  ;;  %10222 = vmatprep.mubr.msk.bf16.mxu0 %vm375_vm0, %v3822_v35  ;;  %v3728_v40 = vld [vmem:[%s10809_s20 + $0x190] sm:$0xff] }
 0x2e5   : > { %3289 = vrot.lane.b32.xlu0 %v9986_v39, %s10769_s26 }
 0x2e6   : > { %v9987_v46 = vpop.f32.mrf.mxu0 }
 0x2e7   : > { %v3178_v62 = vpop.permute.xlu0 %3177  ;;  %3291 = vrot.lane.b32.xlu1 %v9987_v46, %s10769_s26  ;;  %v3904_v52 = vpack.c.bf16 %v9987_v46, %v9986_v39  ;;  %v10754_v46 = vld [vmem:[%s12698_s2 + $0x90] sm:$0xff]  }
 0x2e8   : > { %3556 = vst.msk [vmem:[%s11325_s10 + $0x30] sm:$0xff] %vm3549_vm2, %v3178_v62  ;;  %v2769_v48 = vpop.f32.mrf.mxu0  ;;  %v3831_v62 = vpack.c.bf16 %v3729_v41, %v3728_v40  ;;  %10456 = vmatprep.subr.bf16.mxu0 %v10754_v46  ;;  %v3744_v41 = vld [vmem:[%s10809_s20 + $0x210] sm:$0xff] }
 0x2e9   : > { %v3903_v50 = vpack.c.bf16 %v2769_v48, %v2766_v43  ;;  %v3180_v51 = vpop.permute.xlu1 %3179  ;;  %3285 = vrot.lane.b32.xlu0 %v2766_v43, %s10769_s26  ;;  %10457 = vmatpush3.bf16.msra.mxu0 %v10754_v46  ;;  %v3747_v46 = vld [vmem:[%s10809_s20 + $0x228] sm:$0xff] }
 0x2ea   : > { %3557 = vst.msk [vmem:[%s11325_s10 + $0x38] sm:$0xff] %vm3549_vm2, %v3180_v51  ;;  %v9990_v53 = vpop.f32.mrf.mxu0  ;;  %10223 = vmatmul.mubr.msk.bf16.gmra.mxu0 %vm375_vm0, %v3823_v47 }
 0x2eb   : > { %v3174_v54 = vpop.permute.xlu0 %3173  ;;  %3287 = vrot.lane.b32.xlu1 %v2769_v48, %s10769_s26  ;;  %10120 = vmatprep.mubr.msk.bf16.mxu1 %vm1337_vm1, %v3903_v50  ;;  %v3832_v50 = vpack.c.bf16 %v3731_v45, %v3730_v44  ;;  %v3746_v45 = vld [vmem:[%s10809_s20 + $0x220] sm:$0xff] }
 0x2ec   : > { %3554 = vst.msk [vmem:[%s11325_s10 + $0x20] sm:$0xff] %vm3549_vm2, %v3174_v54  ;;  %v2782_v56 = vpop.f32.mrf.mxu0  ;;  %10121 = vmatmul.mubr.msk.bf16.gmra.mxu1 %vm1337_vm1, %v3904_v52  ;;  %10226 = vmatprep.mubr.msk.bf16.mxu0 %vm375_vm0, %v3824_v49 }
 0x2ed   : > { %v3176_v58 = vpop.permute.xlu1 %3175  ;;  %3297 = vrot.lane.b32.xlu0 %v9990_v53, %s10769_s26 }
 0x2ee   : > { %3555 = vst.msk [vmem:[%s11325_s10 + $0x28] sm:$0xff] %vm3549_vm2, %v3176_v58  ;;  %v9991_v61 = vpop.f32.mrf.mxu0 }
 0x2ef   : > { %v3186_v0 = vpop.permute.xlu0 %3185  ;;  %3299 = vrot.lane.b32.xlu1 %v9991_v61, %s10769_s26  ;;  %v3906_v5 = vpack.c.bf16 %v9991_v61, %v9990_v53  ;;  %v3735_v61 = vld [vmem:[%s10809_s20 + $0x1c8] sm:$0xff] }
 0x2f0   : > { %3560 = vst.msk [vmem:[%s11325_s10 + $0x50] sm:$0xff] %vm3549_vm2, %v3186_v0  ;;  %v2785_v1 = vpop.f32.mrf.mxu0 }
 0x2f1   : > { %v3905_v3 = vpack.c.bf16 %v2785_v1, %v2782_v56  ;;  %v3188_v4 = vpop.permute.xlu1 %3187  ;;  %3293 = vrot.lane.b32.xlu0 %v2782_v56, %s10769_s26  ;;  %v3733_v56 = vld [vmem:[%s10809_s20 + $0x1b8] sm:$0xff] }
 0x2f2   : > { %3561 = vst.msk [vmem:[%s11325_s10 + $0x58] sm:$0xff] %vm3549_vm2, %v3188_v4  ;;  %v9994_v6 = vpop.f32.mrf.mxu0  ;;  %10227 = vmatmul.mubr.msk.bf16.gmra.mxu0 %vm375_vm0, %v3825_v63  ;;  %v3833_v0 = vpack.c.bf16 %v3733_v56, %v3732_v57  ;;  %v3748_v57 = vld [vmem:[%s10809_s20 + $0x230] sm:$0xff]  ;;  %v3749_v56 = vld [vmem:[%s10809_s20 + $0x238] sm:$0xff] }
 0x2f3   : > { %v3182_v7 = vpop.permute.xlu0 %3181  ;;  %3295 = vrot.lane.b32.xlu1 %v2785_v1, %s10769_s26  ;;  %10124 = vmatprep.mubr.msk.bf16.mxu1 %vm1337_vm1, %v3905_v3  ;;  %v3834_v3 = vpack.c.bf16 %v3735_v61, %v3734_v60  ;;  %v3750_v60 = vld [vmem:[%s10809_s20 + $0x240] sm:$0xff]  ;;  %v3751_v61 = vld [vmem:[%s10809_s20 + $0x248] sm:$0xff] }
 0x2f4   : > { %3558 = vst.msk [vmem:[%s11325_s10 + $0x40] sm:$0xff] %vm3549_vm2, %v3182_v7  ;;  %v2798_v10 = vpop.f32.mrf.mxu0  ;;  %10125 = vmatmul.mubr.msk.bf16.gmra.mxu1 %vm1337_vm1, %v3906_v5  ;;  %10230 = vmatprep.mubr.msk.bf16.mxu0 %vm375_vm0, %v3826_v2 }
 0x2f5   : > { %v3184_v11 = vpop.permute.xlu1 %3183  ;;  %3305 = vrot.lane.b32.xlu0 %v9994_v6, %s10769_s26 }
 0x2f6   : > { %3559 = vst.msk [vmem:[%s11325_s10 + $0x48] sm:$0xff] %vm3549_vm2, %v3184_v11  ;;  %v9995_v14 = vpop.f32.mrf.mxu0 }
 0x2f7   : > { %v3194_v16 = vpop.permute.xlu0 %3193  ;;  %3307 = vrot.lane.b32.xlu1 %v9995_v14, %s10769_s26  ;;  %v3908_v21 = vpack.c.bf16 %v9995_v14, %v9994_v6  ;;  %v3739_v14 = vld [vmem:[%s10809_s20 + $0x1e8] sm:$0xff] }
 0x2f8   : > { %3564 = vst.msk [vmem:[%s11325_s10 + $0x70] sm:$0xff] %vm3549_vm2, %v3194_v16  ;;  %v2801_v17 = vpop.f32.mrf.mxu0 }
 0x2f9   : > { %v3907_v19 = vpack.c.bf16 %v2801_v17, %v2798_v10  ;;  %v3196_v20 = vpop.permute.xlu1 %3195  ;;  %3301 = vrot.lane.b32.xlu0 %v2798_v10, %s10769_s26  ;;  %v3737_v10 = vld [vmem:[%s10809_s20 + $0x1d8] sm:$0xff] }
 0x2fa   : > { %3565 = vst.msk [vmem:[%s11325_s10 + $0x78] sm:$0xff] %vm3549_vm2, %v3196_v20  ;;  %v9998_v22 = vpop.f32.mrf.mxu0  ;;  %10231 = vmatmul.mubr.msk.bf16.gmra.mxu0 %vm375_vm0, %v3827_v15  ;;  %v3835_v16 = vpack.c.bf16 %v3737_v10, %v3736_v9  ;;  %v3752_v9 = vld [vmem:[%s10809_s20 + $0x250] sm:$0xff]  ;;  %v3753_v10 = vld [vmem:[%s10809_s20 + $0x258] sm:$0xff] }
 0x2fb   : > { %v3190_v23 = vpop.permute.xlu0 %3189  ;;  %3303 = vrot.lane.b32.xlu1 %v2801_v17, %s10769_s26  ;;  %10128 = vmatprep.mubr.msk.bf16.mxu1 %vm1337_vm1, %v3907_v19  ;;  %v3836_v19 = vpack.c.bf16 %v3739_v14, %v3738_v13  ;;  %v3754_v14 = vld [vmem:[%s10809_s20 + $0x260] sm:$0xff] }
 0x2fc   : > { %3562 = vst.msk [vmem:[%s11325_s10 + $0x60] sm:$0xff] %vm3549_vm2, %v3190_v23  ;;  %v2814_v26 = vpop.f32.mrf.mxu0  ;;  %10129 = vmatmul.mubr.msk.bf16.gmra.mxu1 %vm1337_vm1, %v3908_v21  ;;  %10234 = vmatprep.mubr.msk.bf16.mxu0 %vm375_vm0, %v3828_v18 }
 0x2fd   : > { %v3192_v27 = vpop.permute.xlu1 %3191  ;;  %3313 = vrot.lane.b32.xlu0 %v9998_v22, %s10769_s26 }
 0x2fe   : > { %3563 = vst.msk [vmem:[%s11325_s10 + $0x68] sm:$0xff] %vm3549_vm2, %v3192_v27  ;;  %v9999_v30 = vpop.f32.mrf.mxu0 }
 0x2ff   : > { %v3202_v32 = vpop.permute.xlu0 %3201  ;;  %3315 = vrot.lane.b32.xlu1 %v9999_v30, %s10769_s26  ;;  %v3910_v37 = vpack.c.bf16 %v9999_v30, %v9998_v22  ;;  %v3743_v30 = vld [vmem:[%s10809_s20 + $0x208] sm:$0xff] }
 0x300   : > { %3568 = vst.msk [vmem:[%s11325_s10 + $0x90] sm:$0xff] %vm3549_vm2, %v3202_v32  ;;  %v2817_v33 = vpop.f32.mrf.mxu0 }
 0x301   : > { %v3909_v35 = vpack.c.bf16 %v2817_v33, %v2814_v26  ;;  %v3204_v36 = vpop.permute.xlu1 %3203  ;;  %3309 = vrot.lane.b32.xlu0 %v2814_v26, %s10769_s26  ;;  %v3741_v26 = vld [vmem:[%s10809_s20 + $0x1f8] sm:$0xff] }
 0x302   : > { %3569 = vst.msk [vmem:[%s11325_s10 + $0x98] sm:$0xff] %vm3549_vm2, %v3204_v36  ;;  %v10002_v38 = vpop.f32.mrf.mxu0  ;;  %10235 = vmatmul.mubr.msk.bf16.gmra.mxu0 %vm375_vm0, %v3829_v31  ;;  %v3837_v32 = vpack.c.bf16 %v3741_v26, %v3740_v25 }
 0x303   : > { %v3198_v39 = vpop.permute.xlu0 %3197  ;;  %3311 = vrot.lane.b32.xlu1 %v2817_v33, %s10769_s26  ;;  %10132 = vmatprep.mubr.msk.bf16.mxu1 %vm1337_vm1, %v3909_v35  ;;  %v3838_v35 = vpack.c.bf16 %v3743_v30, %v3742_v29  ;;  %v3756_v29 = vld [vmem:[%s10809_s20 + $0x270] sm:$0xff]  ;;  %v3757_v30 = vld [vmem:[%s10809_s20 + $0x278] sm:$0xff] }
 0x304   : > { %3566 = vst.msk [vmem:[%s11325_s10 + $0x80] sm:$0xff] %vm3549_vm2, %v3198_v39  ;;  %v2830_v42 = vpop.f32.mrf.mxu0  ;;  %10133 = vmatmul.mubr.msk.bf16.gmra.mxu1 %vm1337_vm1, %v3910_v37  ;;  %10238 = vmatprep.mubr.msk.bf16.mxu0 %vm375_vm0, %v3830_v34 }
 0x305   : > { %v3200_v43 = vpop.permute.xlu1 %3199  ;;  %3321 = vrot.lane.b32.xlu0 %v10002_v38, %s10769_s26 }
 0x306   : > { %3567 = vst.msk [vmem:[%s11325_s10 + $0x88] sm:$0xff] %vm3549_vm2, %v3200_v43  ;;  %v10003_v47 = vpop.f32.mrf.mxu0 }
 0x307   : > { %v3210_v48 = vpop.permute.xlu0 %3209  ;;  %3323 = vrot.lane.b32.xlu1 %v10003_v47, %s10769_s26  ;;  %v3912_v53 = vpack.c.bf16 %v10003_v47, %v10002_v38 }
 0x308   : > { %3572 = vst.msk [vmem:[%s11325_s10 + $0xb0] sm:$0xff] %vm3549_vm2, %v3210_v48  ;;  %v2833_v49 = vpop.f32.mrf.mxu0 }
 0x309   : > { %v3911_v51 = vpack.c.bf16 %v2833_v49, %v2830_v42  ;;  %v3212_v52 = vpop.permute.xlu1 %3211  ;;  %3317 = vrot.lane.b32.xlu0 %v2830_v42, %s10769_s26  ;;  %v3745_v42 = vld [vmem:[%s10809_s20 + $0x218] sm:$0xff] }
 0x30a   : > { %3573 = vst.msk [vmem:[%s11325_s10 + $0xb8] sm:$0xff] %vm3549_vm2, %v3212_v52  ;;  %v10006_v54 = vpop.f32.mrf.mxu0  ;;  %10239 = vmatmul.mubr.msk.bf16.gmra.mxu0 %vm375_vm0, %v3831_v62  ;;  %v3839_v62 = vpack.c.bf16 %v3745_v42, %v3744_v41 }
 0x30b   : > { %v3206_v55 = vpop.permute.xlu0 %3205  ;;  %3319 = vrot.lane.b32.xlu1 %v2833_v49, %s10769_s26  ;;  %10136 = vmatprep.mubr.msk.bf16.mxu1 %vm1337_vm1, %v3911_v51 }
 0x30c   : > { %3570 = vst.msk [vmem:[%s11325_s10 + $0xa0] sm:$0xff] %vm3549_vm2, %v3206_v55  ;;  %v2846_v58 = vpop.f32.mrf.mxu0  ;;  %10137 = vmatmul.mubr.msk.bf16.gmra.mxu1 %vm1337_vm1, %v3912_v53  ;;  %10242 = vmatprep.mubr.msk.bf16.mxu0 %vm375_vm0, %v3832_v50  ;;  %v3840_v50 = vpack.c.bf16 %v3747_v46, %v3746_v45 }
 0x30d   : > { %v3208_v59 = vpop.permute.xlu1 %3207  ;;  %3329 = vrot.lane.b32.xlu0 %v10006_v54, %s10769_s26 }
 0x30e   : > { %3571 = vst.msk [vmem:[%s11325_s10 + $0xa8] sm:$0xff] %vm3549_vm2, %v3208_v59  ;;  %v10007_v63 = vpop.f32.mrf.mxu0 }
 0x30f   : > { %v3218_v1 = vpop.permute.xlu0 %3217  ;;  %3331 = vrot.lane.b32.xlu1 %v10007_v63, %s10769_s26  ;;  %v3914_v6 = vpack.c.bf16 %v10007_v63, %v10006_v54 }
 0x310   : > { %3576 = vst.msk [vmem:[%s11325_s10 + $0xd0] sm:$0xff] %vm3549_vm2, %v3218_v1  ;;  %v2849_v2 = vpop.f32.mrf.mxu0 }
 0x311   : > { %v3913_v4 = vpack.c.bf16 %v2849_v2, %v2846_v58  ;;  %v3220_v5 = vpop.permute.xlu1 %3219  ;;  %3325 = vrot.lane.b32.xlu0 %v2846_v58, %s10769_s26 }
 0x312   : > { %3577 = vst.msk [vmem:[%s11325_s10 + $0xd8] sm:$0xff] %vm3549_vm2, %v3220_v5  ;;  %v10010_v7 = vpop.f32.mrf.mxu0  ;;  %10243 = vmatmul.mubr.msk.bf16.gmra.mxu0 %vm375_vm0, %v3833_v0  ;;  %v3841_v0 = vpack.c.bf16 %v3749_v56, %v3748_v57 }
 0x313   : > { %v3214_v8 = vpop.permute.xlu0 %3213  ;;  %3327 = vrot.lane.b32.xlu1 %v2849_v2, %s10769_s26  ;;  %10140 = vmatprep.mubr.msk.bf16.mxu1 %vm1337_vm1, %v3913_v4 }
 0x314   : > { %3574 = vst.msk [vmem:[%s11325_s10 + $0xc0] sm:$0xff] %vm3549_vm2, %v3214_v8  ;;  %v2862_v11 = vpop.f32.mrf.mxu0  ;;  %10141 = vmatmul.mubr.msk.bf16.gmra.mxu1 %vm1337_vm1, %v3914_v6  ;;  %10246 = vmatprep.mubr.msk.bf16.mxu0 %vm375_vm0, %v3834_v3  ;;  %v3842_v3 = vpack.c.bf16 %v3751_v61, %v3750_v60 }
 0x315   : > { %v3216_v12 = vpop.permute.xlu1 %3215  ;;  %3337 = vrot.lane.b32.xlu0 %v10010_v7, %s10769_s26 }
 0x316   : > { %3575 = vst.msk [vmem:[%s11325_s10 + $0xc8] sm:$0xff] %vm3549_vm2, %v3216_v12  ;;  %v10011_v15 = vpop.f32.mrf.mxu0 }
 0x317   : > { %v3226_v17 = vpop.permute.xlu0 %3225  ;;  %3339 = vrot.lane.b32.xlu1 %v10011_v15, %s10769_s26  ;;  %v3916_v22 = vpack.c.bf16 %v10011_v15, %v10010_v7  ;;  %v3755_v15 = vld [vmem:[%s10809_s20 + $0x268] sm:$0xff] }
 0x318   : > { %3580 = vst.msk [vmem:[%s11325_s10 + $0xf0] sm:$0xff] %vm3549_vm2, %v3226_v17  ;;  %v2865_v18 = vpop.f32.mrf.mxu0 }
 0x319   : > { %v3915_v20 = vpack.c.bf16 %v2865_v18, %v2862_v11  ;;  %v3228_v21 = vpop.permute.xlu1 %3227  ;;  %3333 = vrot.lane.b32.xlu0 %v2862_v11, %s10769_s26 }
 0x31a   : > { %3581 = vst.msk [vmem:[%s11325_s10 + $0xf8] sm:$0xff] %vm3549_vm2, %v3228_v21  ;;  %v10014_v23 = vpop.f32.mrf.mxu0  ;;  %10247 = vmatmul.mubr.msk.bf16.gmra.mxu0 %vm375_vm0, %v3835_v16 }
 0x31b   : > { %v3222_v24 = vpop.permute.xlu0 %3221  ;;  %3335 = vrot.lane.b32.xlu1 %v2865_v18, %s10769_s26  ;;  %10144 = vmatprep.mubr.msk.bf16.mxu1 %vm1337_vm1, %v3915_v20  ;;  %v3843_v18 = vpack.c.bf16 %v3753_v10, %v3752_v9 }
 0x31c   : > { %3578 = vst.msk [vmem:[%s11325_s10 + $0xe0] sm:$0xff] %vm3549_vm2, %v3222_v24  ;;  %v2878_v27 = vpop.f32.mrf.mxu0  ;;  %10145 = vmatmul.mubr.msk.bf16.gmra.mxu1 %vm1337_vm1, %v3916_v22  ;;  %10250 = vmatprep.mubr.msk.bf16.mxu0 %vm375_vm0, %v3836_v19  ;;  %v3844_v22 = vpack.c.bf16 %v3755_v15, %v3754_v14 }
 0x31d   : > { %v3224_v28 = vpop.permute.xlu1 %3223  ;;  %3345 = vrot.lane.b32.xlu0 %v10014_v23, %s10769_s26 }
 0x31e   : > { %3579 = vst.msk [vmem:[%s11325_s10 + $0xe8] sm:$0xff] %vm3549_vm2, %v3224_v28  ;;  %v10015_v31 = vpop.f32.mrf.mxu0 }
 0x31f   : > { %v3234_v33 = vpop.permute.xlu0 %3233  ;;  %3347 = vrot.lane.b32.xlu1 %v10015_v31, %s10769_s26  ;;  %v3918_v38 = vpack.c.bf16 %v10015_v31, %v10014_v23 }
 0x320   : > { %3584 = vst.msk [vmem:[%s11325_s10 + $0x110] sm:$0xff] %vm3549_vm2, %v3234_v33  ;;  %v2881_v34 = vpop.f32.mrf.mxu0 }
 0x321   : > { %v3917_v36 = vpack.c.bf16 %v2881_v34, %v2878_v27  ;;  %v3236_v37 = vpop.permute.xlu1 %3235  ;;  %3341 = vrot.lane.b32.xlu0 %v2878_v27, %s10769_s26 }
 0x322   : > { %3585 = vst.msk [vmem:[%s11325_s10 + $0x118] sm:$0xff] %vm3549_vm2, %v3236_v37  ;;  %v10018_v39 = vpop.f32.mrf.mxu0  ;;  %10251 = vmatmul.mubr.msk.bf16.gmra.mxu0 %vm375_vm0, %v3837_v32 }
 0x323   : > { %v3230_v40 = vpop.permute.xlu0 %3229  ;;  %3343 = vrot.lane.b32.xlu1 %v2881_v34, %s10769_s26  ;;  %10148 = vmatprep.mubr.msk.bf16.mxu1 %vm1337_vm1, %v3917_v36  ;;  %v3758_v34 = vld [vmem:[%s10809_s20 + $0x280] sm:$0xff] }
 0x324   : > { %3582 = vst.msk [vmem:[%s11325_s10 + $0x100] sm:$0xff] %vm3549_vm2, %v3230_v40  ;;  %v2894_v43 = vpop.f32.mrf.mxu0  ;;  %10149 = vmatmul.mubr.msk.bf16.gmra.mxu1 %vm1337_vm1, %v3918_v38  ;;  %10254 = vmatprep.mubr.msk.bf16.mxu0 %vm375_vm0, %v3838_v35  ;;  %v3759_v35 = vld [vmem:[%s10809_s20 + $0x288] sm:$0xff]  ;;  %v3845_v38 = vpack.c.bf16 %v3757_v30, %v3756_v29  ;;  %v3768_v30 = vld [vmem:[%s10809_s20 + $0x2d0] sm:$0xff] }
 0x325   : > { %v3232_v44 = vpop.permute.xlu1 %3231  ;;  %3353 = vrot.lane.b32.xlu0 %v10018_v39, %s10769_s26  ;;  %v3846_v42 = vpack.c.bf16 %v3759_v35, %v3758_v34 }
 0x326   : > { %3583 = vst.msk [vmem:[%s11325_s10 + $0x108] sm:$0xff] %vm3549_vm2, %v3232_v44  ;;  %v10019_v47 = vpop.f32.mrf.mxu0 }
 0x327   : > { %v3242_v48 = vpop.permute.xlu0 %3241  ;;  %3355 = vrot.lane.b32.xlu1 %v10019_v47, %s10769_s26  ;;  %v3920_v53 = vpack.c.bf16 %v10019_v47, %v10018_v39 }
 0x328   : > { %3588 = vst.msk [vmem:[%s11325_s10 + $0x130] sm:$0xff] %vm3549_vm2, %v3242_v48  ;;  %v2897_v49 = vpop.f32.mrf.mxu0  ;;  %v3760_v48 = vld [vmem:[%s10809_s20 + $0x290] sm:$0xff] }
 0x329   : > { %v3919_v51 = vpack.c.bf16 %v2897_v49, %v2894_v43  ;;  %v3244_v52 = vpop.permute.xlu1 %3243  ;;  %3349 = vrot.lane.b32.xlu0 %v2894_v43, %s10769_s26 }
 0x32a   : > { %3589 = vst.msk [vmem:[%s11325_s10 + $0x138] sm:$0xff] %vm3549_vm2, %v3244_v52  ;;  %v10022_v54 = vpop.f32.mrf.mxu0  ;;  %10255 = vmatmul.mubr.msk.bf16.gmra.mxu0 %vm375_vm0, %v3839_v62 }
 0x32b   : > { %v3238_v55 = vpop.permute.xlu0 %3237  ;;  %3351 = vrot.lane.b32.xlu1 %v2897_v49, %s10769_s26  ;;  %10152 = vmatprep.mubr.msk.bf16.mxu1 %vm1337_vm1, %v3919_v51  ;;  %v3761_v49 = vld [vmem:[%s10809_s20 + $0x298] sm:$0xff] }
 0x32c   : > { %3586 = vst.msk [vmem:[%s11325_s10 + $0x120] sm:$0xff] %vm3549_vm2, %v3238_v55  ;;  %v2910_v58 = vpop.f32.mrf.mxu0  ;;  %10153 = vmatmul.mubr.msk.bf16.gmra.mxu1 %vm1337_vm1, %v3920_v53  ;;  %10258 = vmatprep.mubr.msk.bf16.mxu0 %vm375_vm0, %v3840_v50  ;;  %v3762_v53 = vld [vmem:[%s10809_s20 + $0x2a0] sm:$0xff]  ;;  %v10755_v55 = vld [vmem:[%s12698_s2 + $0x88] sm:$0xff]  }
 0x32d   : > { %v3240_v59 = vpop.permute.xlu1 %3239  ;;  %3361 = vrot.lane.b32.xlu0 %v10022_v54, %s10769_s26  ;;  %10458 = vmatprep.subr.bf16.mxu0 %v10755_v55 }
 0x32e   : > { %3587 = vst.msk [vmem:[%s11325_s10 + $0x128] sm:$0xff] %vm3549_vm2, %v3240_v59  ;;  %v10023_v63 = vpop.f32.mrf.mxu0  ;;  %10459 = vmatpush3.bf16.msra.mxu0 %v10755_v55  ;;  %v3773_v55 = vld [vmem:[%s10809_s20 + $0x2f8] sm:$0xff] }
 0x32f   : > { %v3250_v1 = vpop.permute.xlu0 %3249  ;;  %3363 = vrot.lane.b32.xlu1 %v10023_v63, %s10769_s26  ;;  %v3922_v6 = vpack.c.bf16 %v10023_v63, %v10022_v54  ;;  %v3763_v54 = vld [vmem:[%s10809_s20 + $0x2a8] sm:$0xff] }
 0x330   : > { %3592 = vst.msk [vmem:[%s11325_s10 + $0x150] sm:$0xff] %vm3549_vm2, %v3250_v1  ;;  %v2913_v2 = vpop.f32.mrf.mxu0  ;;  %v3848_v63 = vpack.c.bf16 %v3763_v54, %v3762_v53  ;;  %v3772_v54 = vld [vmem:[%s10809_s20 + $0x2f0] sm:$0xff] }
 0x331   : > { %v3921_v4 = vpack.c.bf16 %v2913_v2, %v2910_v58  ;;  %v3252_v5 = vpop.permute.xlu1 %3251  ;;  %3357 = vrot.lane.b32.xlu0 %v2910_v58, %s10769_s26  ;;  %v3847_v58 = vpack.c.bf16 %v3761_v49, %v3760_v48 }
 0x332   : > { %3593 = vst.msk [vmem:[%s11325_s10 + $0x158] sm:$0xff] %vm3549_vm2, %v3252_v5  ;;  %v10026_v7 = vpop.f32.mrf.mxu0  ;;  %10259 = vmatmul.mubr.msk.bf16.gmra.mxu0 %vm375_vm0, %v3841_v0 }
 0x333   : > { %v3246_v8 = vpop.permute.xlu0 %3245  ;;  %3359 = vrot.lane.b32.xlu1 %v2913_v2, %s10769_s26  ;;  %10156 = vmatprep.mubr.msk.bf16.mxu1 %vm1337_vm1, %v3921_v4 }
 0x334   : > { %3590 = vst.msk [vmem:[%s11325_s10 + $0x140] sm:$0xff] %vm3549_vm2, %v3246_v8  ;;  %v2926_v11 = vpop.f32.mrf.mxu0  ;;  %v11550_v12 = vpop.f32.mrf.mxu1  ;;  %10157 = vmatmul.mubr.msk.bf16.gmra.mxu1 %vm1337_vm1, %v3922_v6  ;;  %10262 = vmatprep.mubr.msk.bf16.mxu0 %vm375_vm0, %v3842_v3  ;;  %v3764_v6 = vld [vmem:[%s10809_s20 + $0x2b0] sm:$0xff] }
 0x335   : > { %v3248_v13 = vpop.permute.xlu1 %3247  ;;  %3369 = vrot.lane.b32.xlu0 %v10026_v7, %s10769_s26 }
 0x336   : > { %3591 = vst.msk [vmem:[%s11325_s10 + $0x148] sm:$0xff] %vm3549_vm2, %v3248_v13  ;;  %v10027_v16 = vpop.f32.mrf.mxu0  ;;  %v11559_v17 = vpop.f32.mrf.mxu1  ;;  %v3767_v13 = vld [vmem:[%s10809_s20 + $0x2c8] sm:$0xff] }
 0x337   : > { %v3258_v19 = vpop.permute.xlu0 %3257  ;;  %3371 = vrot.lane.b32.xlu1 %v10027_v16, %s10769_s26  ;;  %v3924_v25 = vpack.c.bf16 %v10027_v16, %v10026_v7  ;;  %v3765_v7 = vld [vmem:[%s10809_s20 + $0x2b8] sm:$0xff] }
 0x338   : > { %3596 = vst.msk [vmem:[%s11325_s10 + $0x170] sm:$0xff] %vm3549_vm2, %v3258_v19  ;;  %v2929_v20 = vpop.f32.mrf.mxu0  ;;  %v11564_v21 = vpop.f32.mrf.mxu1  ;;  %v3849_v16 = vpack.c.bf16 %v3765_v7, %v3764_v6 }
 0x339   : > { %v3923_v23 = vpack.c.bf16 %v2929_v20, %v2926_v11  ;;  %v3260_v24 = vpop.permute.xlu1 %3259  ;;  %3365 = vrot.lane.b32.xlu0 %v2926_v11, %s10769_s26  ;;  %v3766_v11 = vld [vmem:[%s10809_s20 + $0x2c0] sm:$0xff] }
 0x33a   : > { %3597 = vst.msk [vmem:[%s11325_s10 + $0x178] sm:$0xff] %vm3549_vm2, %v3260_v24  ;;  %v10030_v26 = vpop.f32.mrf.mxu0  ;;  %v11569_v27 = vpop.f32.mrf.mxu1  ;;  %10263 = vmatmul.mubr.msk.bf16.gmra.mxu0 %vm375_vm0, %v3843_v18 }
 0x33b   : > { %v3254_v28 = vpop.permute.xlu0 %3253  ;;  %3367 = vrot.lane.b32.xlu1 %v2929_v20, %s10769_s26  ;;  %10160 = vmatprep.mubr.msk.bf16.mxu1 %vm1337_vm1, %v3923_v23 }
 0x33c   : > { %3594 = vst.msk [vmem:[%s11325_s10 + $0x160] sm:$0xff] %vm3549_vm2, %v3254_v28  ;;  %v2942_v31 = vpop.f32.mrf.mxu0  ;;  %v11578_v32 = vpop.f32.mrf.mxu1  ;;  %10161 = vmatmul.mubr.msk.bf16.gmra.mxu1 %vm1337_vm1, %v3924_v25  ;;  %10266 = vmatprep.mubr.msk.bf16.mxu0 %vm375_vm0, %v3844_v22  ;;  %v3850_v22 = vpack.c.bf16 %v3767_v13, %v3766_v11 }
 0x33d   : > { %v3256_v33 = vpop.permute.xlu1 %3255  ;;  %3377 = vrot.lane.b32.xlu0 %v10030_v26, %s10769_s26 }
 0x33e   : > { %3595 = vst.msk [vmem:[%s11325_s10 + $0x168] sm:$0xff] %vm3549_vm2, %v3256_v33  ;;  %v10031_v36 = vpop.f32.mrf.mxu0  ;;  %v11587_v37 = vpop.f32.mrf.mxu1 }
 0x33f   : > { %v3266_v39 = vpop.permute.xlu0 %3265  ;;  %3379 = vrot.lane.b32.xlu1 %v10031_v36, %s10769_s26  ;;  %v3926_v45 = vpack.c.bf16 %v10031_v36, %v10030_v26  ;;  %v3770_v36 = vld [vmem:[%s10809_s20 + $0x2e0] sm:$0xff] }
 0x340   : > { %3600 = vst.msk [vmem:[%s11325_s10 + $0x190] sm:$0xff] %vm3549_vm2, %v3266_v39  ;;  %v2945_v40 = vpop.f32.mrf.mxu0  ;;  %v11592_v41 = vpop.f32.mrf.mxu1 }
 0x341   : > { %v3925_v43 = vpack.c.bf16 %v2945_v40, %v2942_v31  ;;  %v3268_v44 = vpop.permute.xlu1 %3267  ;;  %3373 = vrot.lane.b32.xlu0 %v2942_v31, %s10769_s26  ;;  %v3769_v31 = vld [vmem:[%s10809_s20 + $0x2d8] sm:$0xff] }
 0x342   : > { %3601 = vst.msk [vmem:[%s11325_s10 + $0x198] sm:$0xff] %vm3549_vm2, %v3268_v44  ;;  %v10034_v46 = vpop.f32.mrf.mxu0  ;;  %v11597_v47 = vpop.f32.mrf.mxu1  ;;  %10267 = vmatmul.mubr.msk.bf16.gmra.mxu0 %vm375_vm0, %v3845_v38  ;;  %v3771_v38 = vld [vmem:[%s10809_s20 + $0x2e8] sm:$0xff] }
 0x343   : > { %v3262_v62 = vpop.permute.xlu0 %3261  ;;  %3375 = vrot.lane.b32.xlu1 %v2945_v40, %s10769_s26  ;;  %10164 = vmatprep.mubr.msk.bf16.mxu1 %vm1337_vm1, %v3925_v43 }
 0x344   : > { %3598 = vst.msk [vmem:[%s11325_s10 + $0x180] sm:$0xff] %vm3549_vm2, %v3262_v62  ;;  %v2958_v50 = vpop.f32.mrf.mxu0  ;;  %v11606_v51 = vpop.f32.mrf.mxu1  ;;  %10165 = vmatmul.mubr.msk.bf16.gmra.mxu1 %vm1337_vm1, %v3926_v45  ;;  %10270 = vmatprep.mubr.msk.bf16.mxu0 %vm375_vm0, %v3846_v42  ;;  %v3851_v42 = vpack.c.bf16 %v3769_v31, %v3768_v30 }
 0x345   : > { %v3264_v52 = vpop.permute.xlu1 %3263  ;;  %3385 = vrot.lane.b32.xlu0 %v10034_v46, %s10769_s26 }
 0x346   : > { %3599 = vst.msk [vmem:[%s11325_s10 + $0x188] sm:$0xff] %vm3549_vm2, %v3264_v52  ;;  %v10035_v57 = vpop.f32.mrf.mxu0  ;;  %v11618_v56 = vpop.f32.mrf.mxu1 }
 0x347   : > { %v3274_v59 = vpop.permute.xlu0 %3273  ;;  %3387 = vrot.lane.b32.xlu1 %v10035_v57, %s10769_s26  ;;  %v3928_v2 = vpack.c.bf16 %v10035_v57, %v10034_v46  ;;  %v3852_v46 = vpack.c.bf16 %v3771_v38, %v3770_v36 }
 0x348   : > { %3604 = vst.msk [vmem:[%s11325_s10 + $0x1b0] sm:$0xff] %vm3549_vm2, %v3274_v59  ;;  %v2961_v60 = vpop.f32.mrf.mxu0  ;;  %v11623_v61 = vpop.f32.mrf.mxu1 }
 0x349   : > { %v3927_v0 = vpack.c.bf16 %v2961_v60, %v2958_v50  ;;  %v3276_v1 = vpop.permute.xlu1 %3275  ;;  %3381 = vrot.lane.b32.xlu0 %v2958_v50, %s10769_s26 }
 0x34a   : > { %3605 = vst.msk [vmem:[%s11325_s10 + $0x1b8] sm:$0xff] %vm3549_vm2, %v3276_v1  ;;  %v10038_v3 = vpop.f32.mrf.mxu0  ;;  %v11628_v4 = vpop.f32.mrf.mxu1  ;;  %10271 = vmatmul.mubr.msk.bf16.gmra.mxu0 %vm375_vm0, %v3847_v58 }
 0x34b   : > { %v3270_v5 = vpop.permute.xlu0 %3269  ;;  %3383 = vrot.lane.b32.xlu1 %v2961_v60, %s10769_s26  ;;  %10168 = vmatprep.mubr.msk.bf16.mxu1 %vm1337_vm1, %v3927_v0  ;;  %v3774_v60 = vld [vmem:[%s10809_s20 + $0x300] sm:$0xff] }
 0x34c   : > { %3602 = vst.msk [vmem:[%s11325_s10 + $0x1a0] sm:$0xff] %vm3549_vm2, %v3270_v5  ;;  %v2974_v8 = vpop.f32.mrf.mxu0  ;;  %v11637_v9 = vpop.f32.mrf.mxu1  ;;  %10169 = vmatmul.mubr.msk.bf16.gmra.mxu1 %vm1337_vm1, %v3928_v2  ;;  %10274 = vmatprep.mubr.msk.bf16.mxu0 %vm375_vm0, %v3848_v63  ;;  %v3775_v63 = vld [vmem:[%s10809_s20 + $0x308] sm:$0xff]  ;;  %v3853_v2 = vpack.c.bf16 %v3773_v55, %v3772_v54  ;;  %v3782_v54 = vld [vmem:[%s10809_s20 + $0x340] sm:$0xff] }
 0x34d   : > { %v3272_v10 = vpop.permute.xlu1 %3271  ;;  %3393 = vrot.lane.b32.xlu0 %v10038_v3, %s10769_s26  ;;  %v3854_v7 = vpack.c.bf16 %v3775_v63, %v3774_v60  ;;  %v3783_v55 = vld [vmem:[%s10809_s20 + $0x348] sm:$0xff] }
 0x34e   : > { %3603 = vst.msk [vmem:[%s11325_s10 + $0x1a8] sm:$0xff] %vm3549_vm2, %v3272_v10  ;;  %v10039_v14 = vpop.f32.mrf.mxu0  ;;  %v11646_v15 = vpop.f32.mrf.mxu1 }
 0x34f   : > { %v3282_v18 = vpop.permute.xlu0 %3281  ;;  %3395 = vrot.lane.b32.xlu1 %v10039_v14, %s10769_s26  ;;  %v3930_v25 = vpack.c.bf16 %v10039_v14, %v10038_v3 }
 0x350   : > { %3608 = vst.msk [vmem:[%s11325_s10 + $0x1d0] sm:$0xff] %vm3549_vm2, %v3282_v18  ;;  %v2977_v19 = vpop.f32.mrf.mxu0  ;;  %v11651_v20 = vpop.f32.mrf.mxu1  ;;  %v3776_v18 = vld [vmem:[%s10809_s20 + $0x310] sm:$0xff] }
 0x351   : > { %v3929_v23 = vpack.c.bf16 %v2977_v19, %v2974_v8  ;;  %v3284_v24 = vpop.permute.xlu1 %3283  ;;  %3389 = vrot.lane.b32.xlu0 %v2974_v8, %s10769_s26 }
 0x352   : > { %3609 = vst.msk [vmem:[%s11325_s10 + $0x1d8] sm:$0xff] %vm3549_vm2, %v3284_v24  ;;  %v10042_v26 = vpop.f32.mrf.mxu0  ;;  %v11656_v28 = vpop.f32.mrf.mxu1  ;;  %10275 = vmatmul.mubr.msk.bf16.gmra.mxu0 %vm375_vm0, %v3849_v16  ;;  %v3778_v24 = vld [vmem:[%s10809_s20 + $0x320] sm:$0xff] }
 0x353   : > { %v3278_v29 = vpop.permute.xlu0 %3277  ;;  %3391 = vrot.lane.b32.xlu1 %v2977_v19, %s10769_s26  ;;  %10172 = vmatprep.mubr.msk.bf16.mxu1 %vm1337_vm1, %v3929_v23  ;;  %v3777_v19 = vld [vmem:[%s10809_s20 + $0x318] sm:$0xff] }
 0x354   : > { %3606 = vst.msk [vmem:[%s11325_s10 + $0x1c0] sm:$0xff] %vm3549_vm2, %v3278_v29  ;;  %v2990_v33 = vpop.f32.mrf.mxu0  ;;  %v11665_v34 = vpop.f32.mrf.mxu1  ;;  %10173 = vmatmul.mubr.msk.bf16.gmra.mxu1 %vm1337_vm1, %v3930_v25  ;;  %10278 = vmatprep.mubr.msk.bf16.mxu0 %vm375_vm0, %v3850_v22  ;;  %v3779_v25 = vld [vmem:[%s10809_s20 + $0x328] sm:$0xff]  ;;  %v3855_v31 = vpack.c.bf16 %v3777_v19, %v3776_v18 }
 0x355   : > { %v3280_v35 = vpop.permute.xlu1 %3279  ;;  %3401 = vrot.lane.b32.xlu0 %v10042_v26, %s10769_s26 }
 0x356   : > { %3607 = vst.msk [vmem:[%s11325_s10 + $0x1c8] sm:$0xff] %vm3549_vm2, %v3280_v35  ;;  %v10043_v39 = vpop.f32.mrf.mxu0  ;;  %v11674_v40 = vpop.f32.mrf.mxu1  ;;  %v3856_v35 = vpack.c.bf16 %v3779_v25, %v3778_v24  ;;  %v3785_v24 = vld [vmem:[%s10809_s20 + $0x358] sm:$0xff] }
 0x357   : > { %v3290_v43 = vpop.permute.xlu0 %3289  ;;  %3403 = vrot.lane.b32.xlu1 %v10043_v39, %s10769_s26  ;;  %v3932_v49 = vpack.c.bf16 %v10043_v39, %v10042_v26 }
 0x358   : > { %3612 = vst.msk [vmem:[%s11325_s10 + $0x1f0] sm:$0xff] %vm3549_vm2, %v3290_v43  ;;  %v2993_v44 = vpop.f32.mrf.mxu0  ;;  %v11679_v45 = vpop.f32.mrf.mxu1 }
 0x359   : > { %v3931_v62 = vpack.c.bf16 %v2993_v44, %v2990_v33  ;;  %v3292_v48 = vpop.permute.xlu1 %3291  ;;  %3397 = vrot.lane.b32.xlu0 %v2990_v33, %s10769_s26 }
 0x35a   : > { %3613 = vst.msk [vmem:[%s11325_s10 + $0x1f8] sm:$0xff] %vm3549_vm2, %v3292_v48  ;;  %v10046_v50 = vpop.f32.mrf.mxu0  ;;  %v11684_v52 = vpop.f32.mrf.mxu1  ;;  %10279 = vmatmul.mubr.msk.bf16.gmra.mxu0 %vm375_vm0, %v3851_v42  ;;  %v3780_v48 = vld [vmem:[%s10809_s20 + $0x330] sm:$0xff] }
 0x35b   : > { %v3286_v53 = vpop.permute.xlu0 %3285  ;;  %3399 = vrot.lane.b32.xlu1 %v2993_v44, %s10769_s26  ;;  %10176 = vmatprep.mubr.msk.bf16.mxu1 %vm1337_vm1, %v3931_v62 }
 0x35c   : > { %3610 = vst.msk [vmem:[%s11325_s10 + $0x1e0] sm:$0xff] %vm3549_vm2, %v3286_v53  ;;  %v3006_v57 = vpop.f32.mrf.mxu0  ;;  %v11693_v58 = vpop.f32.mrf.mxu1  ;;  %10177 = vmatmul.mubr.msk.bf16.gmra.mxu1 %vm1337_vm1, %v3932_v49  ;;  %10282 = vmatprep.mubr.msk.bf16.mxu0 %vm375_vm0, %v3852_v46  ;;  %v3781_v49 = vld [vmem:[%s10809_s20 + $0x338] sm:$0xff] }
 0x35d   : > { %v3288_v59 = vpop.permute.xlu1 %3287  ;;  %3409 = vrot.lane.b32.xlu0 %v10046_v50, %s10769_s26  ;;  %v3857_v63 = vpack.c.bf16 %v3781_v49, %v3780_v48 }
 0x35e   : > { %3611 = vst.msk [vmem:[%s11325_s10 + $0x1e8] sm:$0xff] %vm3549_vm2, %v3288_v59  ;;  %v10047_v0 = vpop.f32.mrf.mxu0  ;;  %v11702_v1 = vpop.f32.mrf.mxu1 }
 0x35f   : > { %v3298_v3 = vpop.permute.xlu0 %3297  ;;  %3411 = vrot.lane.b32.xlu1 %v10047_v0, %s10769_s26  ;;  %v3934_v11 = vpack.c.bf16 %v10047_v0, %v10046_v50 }
 0x360   : > { %3616 = vst.msk [vmem:[%s11325_s10 + $0x210] sm:$0xff] %vm3549_vm2, %v3298_v3  ;;  %v3009_v5 = vpop.f32.mrf.mxu0  ;;  %v11707_v6 = vpop.f32.mrf.mxu1 }
 0x361   : > { %v3933_v8 = vpack.c.bf16 %v3009_v5, %v3006_v57  ;;  %v3300_v10 = vpop.permute.xlu1 %3299  ;;  %3405 = vrot.lane.b32.xlu0 %v3006_v57, %s10769_s26 }
 0x362   : > { %3617 = vst.msk [vmem:[%s11325_s10 + $0x218] sm:$0xff] %vm3549_vm2, %v3300_v10  ;;  %v10050_v13 = vpop.f32.mrf.mxu0  ;;  %v11712_v14 = vpop.f32.mrf.mxu1  ;;  %10283 = vmatmul.mubr.msk.bf16.gmra.mxu0 %vm375_vm0, %v3853_v2 }
 0x363   : > { %v3294_v16 = vpop.permute.xlu0 %3293  ;;  %3407 = vrot.lane.b32.xlu1 %v3009_v5, %s10769_s26  ;;  %10180 = vmatprep.mubr.msk.bf16.mxu1 %vm1337_vm1, %v3933_v8  ;;  %v3858_v5 = vpack.c.bf16 %v3783_v55, %v3782_v54 }
 0x364   : > { %3614 = vst.msk [vmem:[%s11325_s10 + $0x200] sm:$0xff] %vm3549_vm2, %v3294_v16  ;;  %v3022_v22 = vpop.f32.mrf.mxu0  ;;  %v11721_v23 = vpop.f32.mrf.mxu1  ;;  %10181 = vmatmul.mubr.msk.bf16.gmra.mxu1 %vm1337_vm1, %v3934_v11  ;;  %10286 = vmatprep.mubr.msk.bf16.mxu0 %vm375_vm0, %v3854_v7 }
 0x365   : > { %v3296_v26 = vpop.permute.xlu1 %3295  ;;  %3413 = vrot.lane.b32.xlu0 %v3022_v22, %s10769_s26 }
 0x366   : > { %3615 = vst.msk [vmem:[%s11325_s10 + $0x208] sm:$0xff] %vm3549_vm2, %v3296_v26  ;;  %v10051_v29 = vpop.f32.mrf.mxu0  ;;  %v11730_v30 = vpop.f32.mrf.mxu1 }
 0x367   : > { %v3306_v33 = vpop.permute.xlu0 %3305  ;;  %v3936_v43 = vpack.c.bf16 %v10051_v29, %v10050_v13 }
 0x368   : > { %3620 = vst.msk [vmem:[%s11325_s10 + $0x230] sm:$0xff] %vm3549_vm2, %v3306_v33  ;;  %v3025_v36 = vpop.f32.mrf.mxu0  ;;  %v11734_v38 = vpop.f32.mrf.mxu1 }
 0x369   : > { %v3935_v39 = vpack.c.bf16 %v3025_v36, %v3022_v22  ;;  %v3308_v42 = vpop.permute.xlu1 %3307  ;;  %3417 = vrot.lane.b32.xlu0 %v10050_v13, %s10769_s26  ;;  %3415 = vrot.lane.b32.xlu1 %v3025_v36, %s10769_s26  ;;  %v3784_v22 = vld [vmem:[%s10809_s20 + $0x350] sm:$0xff] }
 0x36a   : > { %3621 = vst.msk [vmem:[%s11325_s10 + $0x238] sm:$0xff] %vm3549_vm2, %v3308_v42  ;;  %v11740_v44 = vpop.f32.mrf.mxu1  ;;  %v10192_v46 = vpop.f32.mrf.mxu0  ;;  %10287 = vmatmul.mubr.msk.bf16.gmra.mxu0 %vm375_vm0, %v3855_v31  ;;  %v3787_v31 = vld [vmem:[%s10809_s20 + $0x368] sm:$0xff] }
 0x36b   : > { %v3302_v62 = vpop.permute.xlu0 %3301  ;;  %10184 = vmatprep.mubr.msk.bf16.mxu1 %vm1337_vm1, %v3935_v39  ;;  %10290 = vmatprep.mubr.msk.bf16.mxu0 %vm375_vm0, %v3856_v35  ;;  %v4948_v7 = vadd.f32 %v10192_v46, %v11550_v12 }
 0x36c   : > { %3618 = vst.msk [vmem:[%s11325_s10 + $0x220] sm:$0xff] %vm3549_vm2, %v3302_v62  ;;  %v11749_v50 = vpop.f32.mrf.mxu1  ;;  %10185 = vmatmul.mubr.msk.bf16.gmra.mxu1 %vm1337_vm1, %v3936_v43  ;;  %v4939_v53 = vpop.f32.mrf.mxu0  ;;  %v3859_v43 = vpack.c.bf16 %v3785_v24, %v3784_v22 }
 0x36d   : > { %v3304_v57 = vpop.permute.xlu1 %3303  ;;  %3419 = vrot.lane.b32.xlu1 %v10051_v29, %s10769_s26  ;;  %v4940_v0 = vadd.f32 %v4939_v53, %v11559_v17  ;;  %v3786_v29 = vld [vmem:[%s10809_s20 + $0x360] sm:$0xff] }
 0x36e   : > { %3619 = vst.msk [vmem:[%s11325_s10 + $0x228] sm:$0xff] %vm3549_vm2, %v3304_v57  ;;  %v11757_v59 = vpop.f32.mrf.mxu1  ;;  %v10193_v60 = vpop.f32.mrf.mxu0  ;;  %v3860_v49 = vpack.c.bf16 %v3787_v31, %v3786_v29 }
 0x36f   : > { %v4951_v2 = vadd.f32 %v10193_v60, %v11564_v21  ;;  %v3314_v3 = vpop.permute.xlu0 %3313  ;;  %v5450_v12 = vmax.f32 %v4940_v0, 0.0 }
 0x370   : > { %3624 = vst.msk [vmem:[%s11325_s10 + $0x250] sm:$0xff] %vm3549_vm2, %v3314_v3  ;;  %v11764_v8 = vpop.f32.mrf.mxu1  ;;  %v4942_v10 = vpop.f32.mrf.mxu0  ;;  %v3788_v3 = vld [vmem:[%s10809_s20 + $0x370] sm:$0xff] }
 0x371   : > { %v4943_v11 = vadd.f32 %v4942_v10, %v11569_v27  ;;  %v3316_v13 = vpop.permute.xlu1 %3315  ;;  %v5453_v16 = vmax.f32 %v4951_v2, 0.0  ;;  %v5452_v27 = vmax.f32 %v4948_v7, 0.0 }
 0x372   : > { %3625 = vst.msk [vmem:[%s11325_s10 + $0x258] sm:$0xff] %vm3549_vm2, %v3316_v13  ;;  %v11769_v17 = vpop.f32.mrf.mxu1  ;;  %v10196_v21 = vpop.f32.mrf.mxu0  ;;  %10291 = vmatmul.mubr.msk.bf16.gmra.mxu0 %vm375_vm0, %v3857_v63  ;;  %v3791_v13 = vld [vmem:[%s10809_s20 + $0x388] sm:$0xff] }
 0x373   : > { %v5451_v18 = vmax.f32 %v4943_v11, 0.0  ;;  %v3310_v19 = vpop.permute.xlu0 %3309  ;;  %10294 = vmatprep.mubr.msk.bf16.mxu0 %vm375_vm0, %v3858_v5  ;;  %v5579_v36 = vpack.c.bf16 %v5453_v16, %v5452_v27  ;;  %v4964_v53 = vadd.f32 %v10196_v21, %v11578_v32  ;;  %v3789_v5 = vld [vmem:[%s10809_s20 + $0x378] sm:$0xff]  ;;  %v3790_v11 = vld [vmem:[%s10809_s20 + $0x380] sm:$0xff] }
 0x374   : > { %3622 = vst.msk [vmem:[%s11325_s10 + $0x240] sm:$0xff] %vm3549_vm2, %v3310_v19  ;;  %v11777_v25 = vpop.f32.mrf.mxu1  ;;  %v4955_v26 = vpop.f32.mrf.mxu0  ;;  %v3861_v22 = vpack.c.bf16 %v3789_v5, %v3788_v3  ;;  %v3862_v29 = vpack.c.bf16 %v3791_v13, %v3790_v11 }
 0x375   : > { %v5578_v33 = vpack.c.bf16 %v5451_v18, %v5450_v12  ;;  %v3312_v35 = vpop.permute.xlu1 %3311  ;;  %v4956_v46 = vadd.f32 %v4955_v26, %v11587_v37 }
 0x376   : > { %3623 = vst.msk [vmem:[%s11325_s10 + $0x248] sm:$0xff] %vm3549_vm2, %v3312_v35  ;;  %v11783_v39 = vpop.f32.mrf.mxu1  ;;  %v10197_v42 = vpop.f32.mrf.mxu0 }
 0x377   : > { %v4967_v62 = vadd.f32 %v10197_v42, %v11592_v41  ;;  %v3322_v48 = vpop.permute.xlu0 %3321  ;;  %10326 = vmatprep.mubr.msk.bf16.mxu1 %vm1337_vm1, %v5578_v33  ;;  %v5454_v63 = vmax.f32 %v4956_v46, 0.0 }
 0x378   : > { %3628 = vst.msk [vmem:[%s11325_s10 + $0x270] sm:$0xff] %vm3549_vm2, %v3322_v48  ;;  %v11791_v54 = vpop.f32.mrf.mxu1  ;;  %v4958_v55 = vpop.f32.mrf.mxu0  ;;  %10327 = vmatmul.mubr.msk.bf16.vlgmr.msra.gmra.mxu1 %vm1337_vm1, %v5579_v36  ;;  %v3792_v48 = vld [vmem:[%s10809_s20 + $0x390] sm:$0xff] }
 0x379   : > { %v4959_v37 = vadd.f32 %v4958_v55, %v11597_v47  ;;  %v3324_v57 = vpop.permute.xlu1 %3323  ;;  %v5457_v41 = vmax.f32 %v4967_v62, 0.0  ;;  %v5456_v47 = vmax.f32 %v4964_v53, 0.0 }
 0x37a   : > { %3629 = vst.msk [vmem:[%s11325_s10 + $0x278] sm:$0xff] %vm3549_vm2, %v3324_v57  ;;  %v11797_v60 = vpop.f32.mrf.mxu1  ;;  %v10200_v32 = vpop.f32.mrf.mxu0  ;;  %10295 = vmatmul.mubr.msk.bf16.gmra.mxu0 %vm375_vm0, %v3859_v43  ;;  %v3795_v57 = vld [vmem:[%s10809_s20 + $0x3a8] sm:$0xff] }
 0x37b   : > { %v5455_v0 = vmax.f32 %v4959_v37, 0.0  ;;  %v3318_v2 = vpop.permute.xlu0 %3317  ;;  %10298 = vmatprep.mubr.msk.bf16.mxu0 %vm375_vm0, %v3860_v49  ;;  %v5581_v12 = vpack.c.bf16 %v5457_v41, %v5456_v47  ;;  %v4980_v31 = vadd.f32 %v10200_v32, %v11606_v51  ;;  %v3793_v49 = vld [vmem:[%s10809_s20 + $0x398] sm:$0xff]  ;;  %v3794_v37 = vld [vmem:[%s10809_s20 + $0x3a0] sm:$0xff] }
 0x37c   : > { %3626 = vst.msk [vmem:[%s11325_s10 + $0x260] sm:$0xff] %vm3549_vm2, %v3318_v2  ;;  %v11805_v7 = vpop.f32.mrf.mxu1  ;;  %v4971_v10 = vpop.f32.mrf.mxu0  ;;  %v3863_v5 = vpack.c.bf16 %v3793_v49, %v3792_v48  ;;  %v3864_v13 = vpack.c.bf16 %v3795_v57, %v3794_v37 }
 0x37d   : > { %v5580_v16 = vpack.c.bf16 %v5455_v0, %v5454_v63  ;;  %v3320_v21 = vpop.permute.xlu1 %3319  ;;  %v4972_v24 = vadd.f32 %v4971_v10, %v11618_v56  ;;  %v10756_v63 = vld [vmem:[%s12698_s2 + $0x80] sm:$0xff]  }
 0x37e   : > { %3627 = vst.msk [vmem:[%s11325_s10 + $0x268] sm:$0xff] %vm3549_vm2, %v3320_v21  ;;  %v11811_v18 = vpop.f32.mrf.mxu1  ;;  %v10201_v19 = vpop.f32.mrf.mxu0  ;;  %10460 = vmatprep.subr.bf16.mxu0 %v10756_v63 }
 0x37f   : > { %v4983_v27 = vadd.f32 %v10201_v19, %v11623_v61  ;;  %v3330_v26 = vpop.permute.xlu0 %3329  ;;  %10330 = vmatprep.mubr.msk.bf16.mxu1 %vm1337_vm1, %v5580_v16  ;;  %v5458_v43 = vmax.f32 %v4972_v24, 0.0  ;;  %10461 = vmatpush3.bf16.msra.mxu0 %v10756_v63 }
 0x380   : > { %3632 = vst.msk [vmem:[%s11325_s10 + $0x290] sm:$0xff] %vm3549_vm2, %v3330_v26  ;;  %v11819_v33 = vpop.f32.mrf.mxu1  ;;  %v4974_v35 = vpop.f32.mrf.mxu0  ;;  %10331 = vmatmul.mubr.msk.bf16.gmra.mxu1 %vm1337_vm1, %v5581_v12 }
 0x381   : > { %v4975_v56 = vadd.f32 %v4974_v35, %v11628_v4  ;;  %v3332_v36 = vpop.permute.xlu1 %3331  ;;  %v5461_v61 = vmax.f32 %v4983_v27, 0.0  ;;  %v5460_v4 = vmax.f32 %v4980_v31, 0.0  ;;  %v3797_v31 = vld [vmem:[%s10809_s20 + $0x3b8] sm:$0xff] }
 0x382   : > { %3633 = vst.msk [vmem:[%s11325_s10 + $0x298] sm:$0xff] %vm3549_vm2, %v3332_v36  ;;  %v11825_v42 = vpop.f32.mrf.mxu1  ;;  %v10204_v51 = vpop.f32.mrf.mxu0  ;;  %10299 = vmatmul.mubr.msk.bf16.gmra.mxu0 %vm375_vm0, %v3861_v22  ;;  %v3798_v36 = vld [vmem:[%s10809_s20 + $0x3c0] sm:$0xff] }
 0x383   : > { %v5459_v46 = vmax.f32 %v4975_v56, 0.0  ;;  %v3326_v62 = vpop.permute.xlu0 %3325  ;;  %10302 = vmatprep.mubr.msk.bf16.mxu0 %vm375_vm0, %v3862_v29  ;;  %v5583_v0 = vpack.c.bf16 %v5461_v61, %v5460_v4  ;;  %v4996_v16 = vadd.f32 %v10204_v51, %v11637_v9  ;;  %v3796_v29 = vld [vmem:[%s10809_s20 + $0x3b0] sm:$0xff]  ;;  %v3799_v61 = vld [vmem:[%s10809_s20 + $0x3c8] sm:$0xff] }
 0x384   : > { %3630 = vst.msk [vmem:[%s11325_s10 + $0x280] sm:$0xff] %vm3549_vm2, %v3326_v62  ;;  %v11833_v53 = vpop.f32.mrf.mxu1  ;;  %v4987_v55 = vpop.f32.mrf.mxu0  ;;  %v3865_v49 = vpack.c.bf16 %v3797_v31, %v3796_v29  ;;  %v3866_v57 = vpack.c.bf16 %v3799_v61, %v3798_v36 }
 0x385   : > { %v5582_v41 = vpack.c.bf16 %v5459_v46, %v5458_v43  ;;  %v3328_v32 = vpop.permute.xlu1 %3327  ;;  %v4988_v47 = vadd.f32 %v4987_v55, %v11646_v15 }
 0x386   : > { %3631 = vst.msk [vmem:[%s11325_s10 + $0x288] sm:$0xff] %vm3549_vm2, %v3328_v32  ;;  %v11842_v2 = vpop.f32.mrf.mxu1  ;;  %v10205_v3 = vpop.f32.mrf.mxu0 }
 0x387   : > { %v4999_v10 = vadd.f32 %v10205_v3, %v11651_v20  ;;  %v3338_v11 = vpop.permute.xlu0 %3337  ;;  %10334 = vmatprep.mubr.msk.bf16.mxu1 %vm1337_vm1, %v5582_v41  ;;  %v5462_v24 = vmax.f32 %v4988_v47, 0.0 }
 0x388   : > { %3636 = vst.msk [vmem:[%s11325_s10 + $0x2b0] sm:$0xff] %vm3549_vm2, %v3338_v11  ;;  %v11850_v21 = vpop.f32.mrf.mxu1  ;;  %v4990_v12 = vpop.f32.mrf.mxu0  ;;  %10335 = vmatmul.mubr.msk.bf16.gmra.mxu1 %vm1337_vm1, %v5583_v0  ;;  %v3800_v11 = vld [vmem:[%s10809_s20 + $0x3d0] sm:$0xff] }
 0x389   : > { %v4991_v15 = vadd.f32 %v4990_v12, %v11656_v28  ;;  %v3340_v20 = vpop.permute.xlu1 %3339  ;;  %v5465_v19 = vmax.f32 %v4999_v10, 0.0  ;;  %v5464_v28 = vmax.f32 %v4996_v16, 0.0 }
 0x38a   : > { %3637 = vst.msk [vmem:[%s11325_s10 + $0x2b8] sm:$0xff] %vm3549_vm2, %v3340_v20  ;;  %v11856_v9 = vpop.f32.mrf.mxu1  ;;  %v10208_v22 = vpop.f32.mrf.mxu0  ;;  %10303 = vmatmul.mubr.msk.bf16.gmra.mxu0 %vm375_vm0, %v3863_v5  ;;  %v3802_v20 = vld [vmem:[%s10809_s20 + $0x3e0] sm:$0xff] }
 0x38b   : > { %v5463_v27 = vmax.f32 %v4991_v15, 0.0  ;;  %v3334_v26 = vpop.permute.xlu0 %3333  ;;  %10306 = vmatprep.mubr.msk.bf16.mxu0 %vm375_vm0, %v3864_v13  ;;  %v5585_v46 = vpack.c.bf16 %v5465_v19, %v5464_v28  ;;  %v5012_v41 = vadd.f32 %v10208_v22, %v11665_v34  ;;  %v3801_v13 = vld [vmem:[%s10809_s20 + $0x3d8] sm:$0xff]  ;;  %v3803_v19 = vld [vmem:[%s10809_s20 + $0x3e8] sm:$0xff] }
 0x38c   : > { %3634 = vst.msk [vmem:[%s11325_s10 + $0x2a0] sm:$0xff] %vm3549_vm2, %v3334_v26  ;;  %v11864_v35 = vpop.f32.mrf.mxu1  ;;  %v5003_v56 = vpop.f32.mrf.mxu0  ;;  %v3867_v31 = vpack.c.bf16 %v3801_v13, %v3800_v11  ;;  %v3868_v61 = vpack.c.bf16 %v3803_v19, %v3802_v20 }
 0x38d   : > { %v5584_v51 = vpack.c.bf16 %v5463_v27, %v5462_v24  ;;  %v3336_v43 = vpop.permute.xlu1 %3335  ;;  %v5004_v4 = vadd.f32 %v5003_v56, %v11674_v40  ;;  %v5468_v16 = vmax.f32 %v5012_v41, 0.0  ;;  %v3805_v41 = vld [vmem:[%s10809_s20 + $0x3f8] sm:$0xff] }
 0x38e   : > { %3635 = vst.msk [vmem:[%s11325_s10 + $0x2a8] sm:$0xff] %vm3549_vm2, %v3336_v43  ;;  %v11870_v62 = vpop.f32.mrf.mxu1  ;;  %v10209_v48 = vpop.f32.mrf.mxu0 }
 0x38f   : > { %v5015_v55 = vadd.f32 %v10209_v48, %v11679_v45  ;;  %v3346_v37 = vpop.permute.xlu0 %3345  ;;  %10338 = vmatprep.mubr.msk.bf16.mxu1 %vm1337_vm1, %v5584_v51  ;;  %v5466_v5 = vmax.f32 %v5004_v4, 0.0 }
 0x390   : > { %3640 = vst.msk [vmem:[%s11325_s10 + $0x2d0] sm:$0xff] %vm3549_vm2, %v3346_v37  ;;  %v11878_v32 = vpop.f32.mrf.mxu1  ;;  %v5006_v63 = vpop.f32.mrf.mxu0  ;;  %10339 = vmatmul.mubr.msk.bf16.gmra.mxu1 %vm1337_vm1, %v5585_v46 }
 0x391   : > { %v5007_v40 = vadd.f32 %v5006_v63, %v11684_v52  ;;  %v3348_v0 = vpop.permute.xlu1 %3347  ;;  %v5469_v45 = vmax.f32 %v5015_v55, 0.0  ;;  %v10757_v52 = vld [vmem:[%s12698_s2 + $0xb8] sm:$0xff]  }
 0x392   : > { %3641 = vst.msk [vmem:[%s11325_s10 + $0x2d8] sm:$0xff] %vm3549_vm2, %v3348_v0  ;;  %v11884_v3 = vpop.f32.mrf.mxu1  ;;  %v10212_v34 = vpop.f32.mrf.mxu0  ;;  %10307 = vmatmul.mubr.msk.bf16.gmra.mxu0 %vm375_vm0, %v3865_v49  ;;  %10590 = vmatprep.subr.bf16.mxu1 %v10757_v52 }
 0x393   : > { %v5467_v47 = vmax.f32 %v5007_v40, 0.0  ;;  %v3342_v10 = vpop.permute.xlu0 %3341  ;;  %10310 = vmatprep.mubr.msk.bf16.mxu0 %vm375_vm0, %v3866_v57  ;;  %v5587_v27 = vpack.c.bf16 %v5469_v45, %v5468_v16  ;;  %10591 = vmatpush3.bf16.msra.mxu1 %v10757_v52  ;;  %v5028_v51 = vadd.f32 %v10212_v34, %v11693_v58  ;;  %v3804_v57 = vld [vmem:[%s10809_s20 + $0x3f0] sm:$0xff] }
 0x394   : > { %3638 = vst.msk [vmem:[%s11325_s10 + $0x2c0] sm:$0xff] %vm3549_vm2, %v3342_v10  ;;  %v11895_v12 = vpop.f32.mrf.mxu1  ;;  %v5019_v15 = vpop.f32.mrf.mxu0  ;;  %v3869_v10 = vpack.c.bf16 %v3805_v41, %v3804_v57 }
 0x395   : > { %v5586_v22 = vpack.c.bf16 %v5467_v47, %v5466_v5  ;;  %v3344_v24 = vpop.permute.xlu1 %3343  ;;  %v5020_v28 = vadd.f32 %v5019_v15, %v11702_v1  ;;  %v5472_v63 = vmax.f32 %v5028_v51, 0.0 }
 0x396   : > { %3639 = vst.msk [vmem:[%s11325_s10 + $0x2c8] sm:$0xff] %vm3549_vm2, %v3344_v24  ;;  %v11901_v26 = vpop.f32.mrf.mxu1  ;;  %v10213_v29 = vpop.f32.mrf.mxu0 }
 0x397   : > { %v5031_v56 = vadd.f32 %v10213_v29, %v11707_v6  ;;  %v3354_v36 = vpop.permute.xlu0 %3353  ;;  %10342 = vmatprep.mubr.msk.bf16.mxu1 %vm1337_vm1, %v5586_v22  ;;  %v5470_v4 = vmax.f32 %v5020_v28, 0.0 }
 0x398   : > { %3644 = vst.msk [vmem:[%s11325_s10 + $0x2f0] sm:$0xff] %vm3549_vm2, %v3354_v36  ;;  %v11909_v43 = vpop.f32.mrf.mxu1  ;;  %v5022_v46 = vpop.f32.mrf.mxu0  ;;  %10343 = vmatmul.mubr.msk.bf16.gmra.mxu1 %vm1337_vm1, %v5587_v27 }
 0x399   : > { %v5023_v1 = vadd.f32 %v5022_v46, %v11712_v14  ;;  %v3356_v48 = vpop.permute.xlu1 %3355  ;;  %v5473_v6 = vmax.f32 %v5031_v56, 0.0 }
 0x39a   : > { %3645 = vst.msk [vmem:[%s11325_s10 + $0x2f8] sm:$0xff] %vm3549_vm2, %v3356_v48  ;;  %v11915_v49 = vpop.f32.mrf.mxu1  ;;  %v10216_v58 = vpop.f32.mrf.mxu0  ;;  %10311 = vmatmul.mubr.msk.bf16.gmra.mxu0 %vm375_vm0, %v3867_v31 }
 0x39b   : > { %v5471_v55 = vmax.f32 %v5023_v1, 0.0  ;;  %v3350_v37 = vpop.permute.xlu0 %3349  ;;  %10314 = vmatprep.mubr.msk.bf16.mxu0 %vm375_vm0, %v3868_v61  ;;  %v5589_v34 = vpack.c.bf16 %v5473_v6, %v5472_v63  ;;  %v5044_v16 = vadd.f32 %v10216_v58, %v11721_v23 }
 0x39c   : > { %3642 = vst.msk [vmem:[%s11325_s10 + $0x2e0] sm:$0xff] %vm3549_vm2, %v3350_v37  ;;  %v11923_v14 = vpop.f32.mrf.mxu1  ;;  %v5035_v40 = vpop.f32.mrf.mxu0 }
 0x39d   : > { %v5588_v0 = vpack.c.bf16 %v5471_v55, %v5470_v4  ;;  %v3352_v45 = vpop.permute.xlu1 %3351  ;;  %v5036_v11 = vadd.f32 %v5035_v40, %v11730_v30  ;;  %v5476_v31 = vmax.f32 %v5044_v16, 0.0 }
 0x39e   : > { %3643 = vst.msk [vmem:[%s11325_s10 + $0x2e8] sm:$0xff] %vm3549_vm2, %v3352_v45  ;;  %v11927_v5 = vpop.f32.mrf.mxu1  ;;  %v10217_v47 = vpop.f32.mrf.mxu0 }
 0x39f   : > { %v5047_v13 = vadd.f32 %v10217_v47, %v11734_v38  ;;  %v3362_v52 = vpop.permute.xlu0 %3361  ;;  %10346 = vmatprep.mubr.msk.bf16.mxu1 %vm1337_vm1, %v5588_v0  ;;  %v5474_v23 = vmax.f32 %v5036_v11, 0.0 }
 0x3a0   : > { %3648 = vst.msk [vmem:[%s11325_s10 + $0x310] sm:$0xff] %vm3549_vm2, %v3362_v52  ;;  %v11935_v15 = vpop.f32.mrf.mxu1  ;;  %v5038_v20 = vpop.f32.mrf.mxu0  ;;  %10347 = vmatmul.mubr.msk.bf16.gmra.mxu1 %vm1337_vm1, %v5589_v34 }
 0x3a1   : > { %v5039_v19 = vadd.f32 %v5038_v20, %v11740_v44  ;;  %v3364_v22 = vpop.permute.xlu1 %3363  ;;  %v5477_v30 = vmax.f32 %v5047_v13, 0.0 }
 0x3a2   : > { %3649 = vst.msk [vmem:[%s11325_s10 + $0x318] sm:$0xff] %vm3549_vm2, %v3364_v22  ;;  %v11941_v38 = vpop.f32.mrf.mxu1  ;;  %v10220_v24 = vpop.f32.mrf.mxu0  ;;  %10315 = vmatmul.mubr.msk.bf16.gmra.mxu0 %vm375_vm0, %v3869_v10 }
 0x3a3   : > { %v5475_v27 = vmax.f32 %v5039_v19, 0.0  ;;  %v3358_v29 = vpop.permute.xlu0 %3357  ;;  %v5591_v61 = vpack.c.bf16 %v5477_v30, %v5476_v31  ;;  %v5060_v58 = vadd.f32 %v10220_v24, %v11749_v50 }
 0x3a4   : > { %3646 = vst.msk [vmem:[%s11325_s10 + $0x300] sm:$0xff] %vm3549_vm2, %v3358_v29  ;;  %v11946_v28 = vpop.f32.mrf.mxu1  ;;  %v5051_v44 = vpop.f32.mrf.mxu0 }
 0x3a5   : > { %v5590_v56 = vpack.c.bf16 %v5475_v27, %v5474_v23  ;;  %v3360_v36 = vpop.permute.xlu1 %3359  ;;  %v5052_v1 = vadd.f32 %v5051_v44, %v11757_v59  ;;  %v5480_v0 = vmax.f32 %v5060_v58, 0.0 }
 0x3a6   : > { %3647 = vst.msk [vmem:[%s11325_s10 + $0x308] sm:$0xff] %vm3549_vm2, %v3360_v36  ;;  %v11950_v51 = vpop.f32.mrf.mxu1  ;;  %v10221_v46 = vpop.f32.mrf.mxu0 }
 0x3a7   : > { %v5063_v48 = vadd.f32 %v10221_v46, %v11764_v8  ;;  %v3370_v6 = vpop.permute.xlu0 %3369  ;;  %10350 = vmatprep.mubr.msk.bf16.mxu1 %vm1337_vm1, %v5590_v56  ;;  %v5478_v63 = vmax.f32 %v5052_v1, 0.0 }
 0x3a8   : > { %3652 = vst.msk [vmem:[%s11325_s10 + $0x330] sm:$0xff] %vm3549_vm2, %v3370_v6  ;;  %v11958_v4 = vpop.f32.mrf.mxu1  ;;  %v5054_v55 = vpop.f32.mrf.mxu0  ;;  %10351 = vmatmul.mubr.msk.bf16.gmra.mxu1 %vm1337_vm1, %v5591_v61 }
 0x3a9   : > { %v5055_v37 = vadd.f32 %v5054_v55, %v11769_v17  ;;  %v3372_v57 = vpop.permute.xlu1 %3371  ;;  %v5481_v59 = vmax.f32 %v5063_v48, 0.0 }
 0x3aa   : > { %3653 = vst.msk [vmem:[%s11325_s10 + $0x338] sm:$0xff] %vm3549_vm2, %v3372_v57  ;;  %v11964_v8 = vpop.f32.mrf.mxu1  ;;  %v10224_v41 = vpop.f32.mrf.mxu0 }
 0x3ab   : > { %v5479_v40 = vmax.f32 %v5055_v37, 0.0  ;;  %v3366_v50 = vpop.permute.xlu0 %3365  ;;  %v5593_v10 = vpack.c.bf16 %v5481_v59, %v5480_v0  ;;  %v5076_v19 = vadd.f32 %v10224_v41, %v11777_v25 }
 0x3ac   : > { %3650 = vst.msk [vmem:[%s11325_s10 + $0x320] sm:$0xff] %vm3549_vm2, %v3366_v50  ;;  %v11968_v45 = vpop.f32.mrf.mxu1  ;;  %v5067_v34 = vpop.f32.mrf.mxu0 }
 0x3ad   : > { %v5592_v47 = vpack.c.bf16 %v5479_v40, %v5478_v63  ;;  %v3368_v17 = vpop.permute.xlu1 %3367  ;;  %v5068_v52 = vadd.f32 %v5067_v34, %v11783_v39  ;;  %v5484_v44 = vmax.f32 %v5076_v19, 0.0 }
 0x3ae   : > { %3651 = vst.msk [vmem:[%s11325_s10 + $0x328] sm:$0xff] %vm3549_vm2, %v3368_v17  ;;  %v11972_v11 = vpop.f32.mrf.mxu1  ;;  %v10225_v13 = vpop.f32.mrf.mxu0 }
 0x3af   : > { %v5079_v16 = vadd.f32 %v10225_v13, %v11791_v54  ;;  %v3378_v20 = vpop.permute.xlu0 %3377  ;;  %10354 = vmatprep.mubr.msk.bf16.mxu1 %vm1337_vm1, %v5592_v47  ;;  %v5482_v29 = vmax.f32 %v5068_v52, 0.0 }
 0x3b0   : > { %3656 = vst.msk [vmem:[%s11325_s10 + $0x350] sm:$0xff] %vm3549_vm2, %v3378_v20  ;;  %v11980_v22 = vpop.f32.mrf.mxu1  ;;  %v5070_v30 = vpop.f32.mrf.mxu0  ;;  %10355 = vmatmul.mubr.msk.bf16.gmra.mxu1 %vm1337_vm1, %v5593_v10 }
 0x3b1   : > { %v5071_v24 = vadd.f32 %v5070_v30, %v11797_v60  ;;  %v3380_v23 = vpop.permute.xlu1 %3379  ;;  %v5485_v39 = vmax.f32 %v5079_v16, 0.0 }
 0x3b2   : > { %3657 = vst.msk [vmem:[%s11325_s10 + $0x358] sm:$0xff] %vm3549_vm2, %v3380_v23  ;;  %v11986_v54 = vpop.f32.mrf.mxu1  ;;  %v10228_v27 = vpop.f32.mrf.mxu0 }
 0x3b3   : > { %v5483_v31 = vmax.f32 %v5071_v24, 0.0  ;;  %v3374_v25 = vpop.permute.xlu0 %3373  ;;  %v5595_v46 = vpack.c.bf16 %v5485_v39, %v5484_v44  ;;  %v5092_v37 = vadd.f32 %v10228_v27, %v11805_v7 }
 0x3b4   : > { %3654 = vst.msk [vmem:[%s11325_s10 + $0x340] sm:$0xff] %vm3549_vm2, %v3374_v25  ;;  %v11990_v56 = vpop.f32.mrf.mxu1  ;;  %v5083_v36 = vpop.f32.mrf.mxu0 }
 0x3b5   : > { %v5594_v61 = vpack.c.bf16 %v5483_v31, %v5482_v29  ;;  %v3376_v60 = vpop.permute.xlu1 %3375  ;;  %v5084_v6 = vadd.f32 %v5083_v36, %v11811_v18  ;;  %v5488_v34 = vmax.f32 %v5092_v37, 0.0 }
 0x3b6   : > { %3655 = vst.msk [vmem:[%s11325_s10 + $0x348] sm:$0xff] %vm3549_vm2, %v3376_v60  ;;  %v11994_v1 = vpop.f32.mrf.mxu1  ;;  %v10229_v48 = vpop.f32.mrf.mxu0 }
 0x3b7   : > { %v5095_v58 = vadd.f32 %v10229_v48, %v11819_v33  ;;  %v3386_v55 = vpop.permute.xlu0 %3385  ;;  %10358 = vmatprep.mubr.msk.bf16.mxu1 %vm1337_vm1, %v5594_v61  ;;  %v5486_v50 = vmax.f32 %v5084_v6, 0.0 }
 0x3b8   : > { %3660 = vst.msk [vmem:[%s11325_s10 + $0x370] sm:$0xff] %vm3549_vm2, %v3386_v55  ;;  %v12002_v57 = vpop.f32.mrf.mxu1  ;;  %v5086_v59 = vpop.f32.mrf.mxu0  ;;  %10359 = vmatmul.mubr.msk.bf16.gmra.mxu1 %vm1337_vm1, %v5595_v46 }
 0x3b9   : > { %v5087_v41 = vadd.f32 %v5086_v59, %v11825_v42  ;;  %v3388_v63 = vpop.permute.xlu1 %3387  ;;  %v5489_v18 = vmax.f32 %v5095_v58, 0.0 }
 0x3ba   : > { %3661 = vst.msk [vmem:[%s11325_s10 + $0x378] sm:$0xff] %vm3549_vm2, %v3388_v63  ;;  %v12008_v33 = vpop.f32.mrf.mxu1  ;;  %v10232_v40 = vpop.f32.mrf.mxu0 }
 0x3bb   : > { %v5487_v0 = vmax.f32 %v5087_v41, 0.0  ;;  %v3382_v7 = vpop.permute.xlu0 %3381  ;;  %v5597_v13 = vpack.c.bf16 %v5489_v18, %v5488_v34  ;;  %v5108_v24 = vadd.f32 %v10232_v40, %v11833_v53 }
 0x3bc   : > { %3658 = vst.msk [vmem:[%s11325_s10 + $0x360] sm:$0xff] %vm3549_vm2, %v3382_v7  ;;  %v12012_v47 = vpop.f32.mrf.mxu1  ;;  %v5099_v17 = vpop.f32.mrf.mxu0 }
 0x3bd   : > { %v5596_v10 = vpack.c.bf16 %v5487_v0, %v5486_v50  ;;  %v3384_v42 = vpop.permute.xlu1 %3383  ;;  %v5100_v20 = vadd.f32 %v5099_v17, %v11842_v2  ;;  %v5492_v36 = vmax.f32 %v5108_v24, 0.0 }
 0x3be   : > { %3659 = vst.msk [vmem:[%s11325_s10 + $0x368] sm:$0xff] %vm3549_vm2, %v3384_v42  ;;  %v12016_v52 = vpop.f32.mrf.mxu1  ;;  %v10233_v16 = vpop.f32.mrf.mxu0 }
 0x3bf   : > { %v5111_v19 = vadd.f32 %v10233_v16, %v11850_v21  ;;  %v3394_v30 = vpop.permute.xlu0 %3393  ;;  %10362 = vmatprep.mubr.msk.bf16.mxu1 %vm1337_vm1, %v5596_v10  ;;  %v5490_v25 = vmax.f32 %v5100_v20, 0.0 }
 0x3c0   : > { %3664 = vst.msk [vmem:[%s11325_s10 + $0x390] sm:$0xff] %vm3549_vm2, %v3394_v30  ;;  %v12024_v23 = vpop.f32.mrf.mxu1  ;;  %v5102_v39 = vpop.f32.mrf.mxu0  ;;  %10363 = vmatmul.mubr.msk.bf16.gmra.mxu1 %vm1337_vm1, %v5597_v13 }
 0x3c1   : > { %v5103_v27 = vadd.f32 %v5102_v39, %v11856_v9  ;;  %v3396_v29 = vpop.permute.xlu1 %3395  ;;  %v5493_v2 = vmax.f32 %v5111_v19, 0.0 }
 0x3c2   : > { %3665 = vst.msk [vmem:[%s11325_s10 + $0x398] sm:$0xff] %vm3549_vm2, %v3396_v29  ;;  %v12030_v21 = vpop.f32.mrf.mxu1  ;;  %v10236_v31 = vpop.f32.mrf.mxu0 }
 0x3c3   : > { %v5491_v44 = vmax.f32 %v5103_v27, 0.0  ;;  %v3390_v53 = vpop.permute.xlu0 %3389  ;;  %v5599_v48 = vpack.c.bf16 %v5493_v2, %v5492_v36  ;;  %v5124_v41 = vadd.f32 %v10236_v31, %v11864_v35 }
 0x3c4   : > { %3662 = vst.msk [vmem:[%s11325_s10 + $0x380] sm:$0xff] %vm3549_vm2, %v3390_v53  ;;  %v12034_v61 = vpop.f32.mrf.mxu1  ;;  %v5115_v60 = vpop.f32.mrf.mxu0 }
 0x3c5   : > { %v5598_v46 = vpack.c.bf16 %v5491_v44, %v5490_v25  ;;  %v3392_v9 = vpop.permute.xlu1 %3391  ;;  %v5116_v55 = vadd.f32 %v5115_v60, %v11870_v62  ;;  %v5496_v17 = vmax.f32 %v5124_v41, 0.0  ;;  %v10758_v60 = vld [vmem:[%s12698_s2 + $0xb0] sm:$0xff]  }
 0x3c6   : > { %3663 = vst.msk [vmem:[%s11325_s10 + $0x388] sm:$0xff] %vm3549_vm2, %v3392_v9  ;;  %v12038_v6 = vpop.f32.mrf.mxu1  ;;  %v10237_v58 = vpop.f32.mrf.mxu0  ;;  %10592 = vmatprep.subr.bf16.mxu1 %v10758_v60 }
 0x3c7   : > { %v5127_v37 = vadd.f32 %v10237_v58, %v11878_v32  ;;  %v3402_v59 = vpop.permute.xlu0 %3401  ;;  %10366 = vmatprep.mubr.msk.bf16.mxu1 %vm1337_vm1, %v5598_v46  ;;  %v5494_v7 = vmax.f32 %v5116_v55, 0.0  ;;  %10593 = vmatpush3.bf16.msra.mxu1 %v10758_v60 }
 0x3c8   : > { %3668 = vst.msk [vmem:[%s11325_s10 + $0x3b0] sm:$0xff] %vm3549_vm2, %v3402_v59  ;;  %v12046_v63 = vpop.f32.mrf.mxu1  ;;  %v5118_v18 = vpop.f32.mrf.mxu0  ;;  %10367 = vmatmul.mubr.msk.bf16.gmra.mxu1 %vm1337_vm1, %v5599_v48 }
 0x3c9   : > { %v5119_v40 = vadd.f32 %v5118_v18, %v11884_v3  ;;  %v3404_v50 = vpop.permute.xlu1 %3403  ;;  %v5497_v62 = vmax.f32 %v5127_v37, 0.0 }
 0x3ca   : > { %3669 = vst.msk [vmem:[%s11325_s10 + $0x3b8] sm:$0xff] %vm3549_vm2, %v3404_v50  ;;  %v12052_v32 = vpop.f32.mrf.mxu1  ;;  %v10240_v0 = vpop.f32.mrf.mxu0 }
 0x3cb   : > { %v5495_v34 = vmax.f32 %v5119_v40, 0.0  ;;  %v3398_v35 = vpop.permute.xlu0 %3397  ;;  %v5601_v16 = vpack.c.bf16 %v5497_v62, %v5496_v17  ;;  %v5140_v27 = vadd.f32 %v10240_v0, %v11895_v12 }
 0x3cc   : > { %3666 = vst.msk [vmem:[%s11325_s10 + $0x3a0] sm:$0xff] %vm3549_vm2, %v3398_v35  ;;  %v12056_v10 = vpop.f32.mrf.mxu1  ;;  %v5131_v42 = vpop.f32.mrf.mxu0 }
 0x3cd   : > { %v5600_v13 = vpack.c.bf16 %v5495_v34, %v5494_v7  ;;  %v3400_v3 = vpop.permute.xlu1 %3399  ;;  %v5132_v30 = vadd.f32 %v5131_v42, %v11901_v26  ;;  %v5500_v46 = vmax.f32 %v5140_v27, 0.0 }
 0x3ce   : > { %3667 = vst.msk [vmem:[%s11325_s10 + $0x3a8] sm:$0xff] %vm3549_vm2, %v3400_v3  ;;  %v12060_v20 = vpop.f32.mrf.mxu1  ;;  %v10241_v19 = vpop.f32.mrf.mxu0 }
 0x3cf   : > { %v5143_v24 = vadd.f32 %v10241_v19, %v11909_v43  ;;  %v3410_v39 = vpop.permute.xlu0 %3409  ;;  %10370 = vmatprep.mubr.msk.bf16.mxu1 %vm1337_vm1, %v5600_v13  ;;  %v5498_v53 = vmax.f32 %v5132_v30, 0.0 }
 0x3d0   : > { %3672 = vst.msk [vmem:[%s11325_s10 + $0x3d0] sm:$0xff] %vm3549_vm2, %v3410_v39  ;;  %v12068_v29 = vpop.f32.mrf.mxu1  ;;  %v5134_v2 = vpop.f32.mrf.mxu0  ;;  %10371 = vmatmul.mubr.msk.bf16.gmra.mxu1 %vm1337_vm1, %v5601_v16 }
 0x3d1   : > { %v5135_v31 = vadd.f32 %v5134_v2, %v11915_v49  ;;  %v3412_v25 = vpop.permute.xlu1 %3411  ;;  %v5501_v44 = vmax.f32 %v5143_v24, 0.0 }
 0x3d2   : > { %3673 = vst.msk [vmem:[%s11325_s10 + $0x3d8] sm:$0xff] %vm3549_vm2, %v3412_v25  ;;  %v12074_v26 = vpop.f32.mrf.mxu1  ;;  %v10244_v43 = vpop.f32.mrf.mxu0 }
 0x3d3   : > { %v5499_v12 = vmax.f32 %v5135_v31, 0.0  ;;  %v3406_v36 = vpop.permute.xlu0 %3405  ;;  %v5603_v55 = vpack.c.bf16 %v5501_v44, %v5500_v46  ;;  %v5156_v50 = vadd.f32 %v10244_v43, %v11923_v14 }
 0x3d4   : > { %3670 = vst.msk [vmem:[%s11325_s10 + $0x3c0] sm:$0xff] %vm3549_vm2, %v3406_v36  ;;  %v12081_v49 = vpop.f32.mrf.mxu1  ;;  %v5147_v9 = vpop.f32.mrf.mxu0 }
 0x3d5   : > { %v5602_v48 = vpack.c.bf16 %v5499_v12, %v5498_v53  ;;  %v3408_v58 = vpop.permute.xlu1 %3407  ;;  %v5148_v41 = vadd.f32 %v5147_v9, %v11927_v5  ;;  %v5504_v3 = vmax.f32 %v5156_v50, 0.0 }
 0x3d6   : > { %3671 = vst.msk [vmem:[%s11325_s10 + $0x3c8] sm:$0xff] %vm3549_vm2, %v3408_v58  ;;  %v12085_v37 = vpop.f32.mrf.mxu1  ;;  %v10245_v59 = vpop.f32.mrf.mxu0 }
 0x3d7   : > { %v5159_v18 = vadd.f32 %v10245_v59, %v11935_v15  ;;  %v3414_v40 = vpop.permute.xlu0 %3413  ;;  %10374 = vmatprep.mubr.msk.bf16.mxu1 %vm1337_vm1, %v5602_v48  ;;  %v5502_v35 = vmax.f32 %v5148_v41, 0.0 }
 0x3d8   : > { %3674 = vst.msk [vmem:[%s11325_s10 + $0x3e0] sm:$0xff] %vm3549_vm2, %v3414_v40  ;;  %v12093_v62 = vpop.f32.mrf.mxu1  ;;  %v5150_v0 = vpop.f32.mrf.mxu0  ;;  %10375 = vmatmul.mubr.msk.bf16.gmra.mxu1 %vm1337_vm1, %v5603_v55 }
 0x3d9   : > { %v5151_v7 = vadd.f32 %v5150_v0, %v11941_v38  ;;  %v5505_v34 = vmax.f32 %v5159_v18, 0.0 }
 0x3da   : > { %v12097_v5 = vpop.f32.mrf.mxu1  ;;  %v10248_v15 = vpop.f32.mrf.mxu0 }
 0x3db   : > { %v5503_v17 = vmax.f32 %v5151_v7, 0.0  ;;  %v3418_v42 = vpop.permute.xlu0 %3417  ;;  %v3416_v13 = vpop.permute.xlu1 %3415  ;;  %v5605_v30 = vpack.c.bf16 %v5505_v34, %v5504_v3  ;;  %v5172_v31 = vadd.f32 %v10248_v15, %v11946_v28 }
 0x3dc   : > { %3676 = vst.msk [vmem:[%s11325_s10 + $0x3f0] sm:$0xff] %vm3549_vm2, %v3418_v42  ;;  %3675 = vst.msk [vmem:[%s11325_s10 + $0x3e8] sm:$0xff] %vm3549_vm2, %v3416_v13  ;;  %v12103_v14 = vpop.f32.mrf.mxu1  ;;  %v5163_v16 = vpop.f32.mrf.mxu0 }
 0x3dd   : > { %v5604_v19 = vpack.c.bf16 %v5503_v17, %v5502_v35  ;;  %v5164_v39 = vadd.f32 %v5163_v16, %v11950_v51  ;;  %v5508_v60 = vmax.f32 %v5172_v31, 0.0 }
 0x3de   : > { %v12105_v38 = vpop.f32.mrf.mxu1  ;;  %v10249_v24 = vpop.f32.mrf.mxu0 }
 0x3df   : > { %v5175_v27 = vadd.f32 %v10249_v24, %v11958_v4  ;;  %v3420_v2 = vpop.permute.xlu1 %3419  ;;  %10378 = vmatprep.mubr.msk.bf16.mxu1 %vm1337_vm1, %v5604_v19  ;;  %v5506_v36 = vmax.f32 %v5164_v39, 0.0 }
 0x3e0   : > { %3677 = vst.msk [vmem:[%s11325_s10 + $0x3f8] sm:$0xff] %vm3549_vm2, %v3420_v2  ;;  %v12113_v25 = vpop.f32.mrf.mxu1  ;;  %v5166_v44 = vpop.f32.mrf.mxu0  ;;  %10379 = vmatmul.mubr.msk.bf16.gmra.mxu1 %vm1337_vm1, %v5605_v30 }
 0x3e1   : > { %v5167_v43 = vadd.f32 %v5166_v44, %v11964_v8  ;;  %v5509_v53 = vmax.f32 %v5175_v27, 0.0 }
 0x3e2   : > { %v12117_v12 = vpop.f32.mrf.mxu1  ;;  %v10252_v51 = vpop.f32.mrf.mxu0 }
 0x3e3   : > { %v5507_v4 = vmax.f32 %v5167_v43, 0.0  ;;  %v5607_v48 = vpack.c.bf16 %v5509_v53, %v5508_v60  ;;  %v5188_v8 = vadd.f32 %v10252_v51, %v11968_v45 }
 0x3e4   : > { %v12119_v46 = vpop.f32.mrf.mxu1  ;;  %v5179_v9 = vpop.f32.mrf.mxu0 }
 0x3e5   : > { %v5606_v28 = vpack.c.bf16 %v5507_v4, %v5506_v36  ;;  %v5180_v59 = vadd.f32 %v5179_v9, %v11972_v11  ;;  %v5512_v11 = vmax.f32 %v5188_v8, 0.0 }
 0x3e6   : > { %v12121_v58 = vpop.f32.mrf.mxu1  ;;  %v10253_v55 = vpop.f32.mrf.mxu0 }
 0x3e7   : > { %v5191_v41 = vadd.f32 %v10253_v55, %v11980_v22  ;;  %10382 = vmatprep.mubr.msk.bf16.mxu1 %vm1337_vm1, %v5606_v28  ;;  %v5510_v15 = vmax.f32 %v5180_v59, 0.0 }
 0x3e8   : > { %v12127_v18 = vpop.f32.mrf.mxu1  ;;  %v5182_v40 = vpop.f32.mrf.mxu0  ;;  %10383 = vmatmul.mubr.msk.bf16.gmra.mxu1 %vm1337_vm1, %v5607_v48 }
 0x3e9   : > { %v5183_v50 = vadd.f32 %v5182_v40, %v11986_v54  ;;  %v5513_v0 = vmax.f32 %v5191_v41, 0.0 }
 0x3ea   : > { %v12131_v7 = vpop.f32.mrf.mxu1  ;;  %v10256_v34 = vpop.f32.mrf.mxu0 }
 0x3eb   : > { %v5511_v35 = vmax.f32 %v5183_v50, 0.0  ;;  %v5609_v13 = vpack.c.bf16 %v5513_v0, %v5512_v11  ;;  %v5204_v54 = vadd.f32 %v10256_v34, %v11990_v56 }
 0x3ec   : > { %v12133_v17 = vpop.f32.mrf.mxu1  ;;  %v5195_v22 = vpop.f32.mrf.mxu0 }
 0x3ed   : > { %v5608_v42 = vpack.c.bf16 %v5511_v35, %v5510_v15  ;;  %v5196_v16 = vadd.f32 %v5195_v22, %v11994_v1  ;;  %v5516_v1 = vmax.f32 %v5204_v54, 0.0 }
 0x3ee   : > { %v12135_v45 = vpop.f32.mrf.mxu1  ;;  %v10257_v3 = vpop.f32.mrf.mxu0 }
 0x3ef   : > { %v5207_v19 = vadd.f32 %v10257_v3, %v12002_v57  ;;  %10386 = vmatprep.mubr.msk.bf16.mxu1 %vm1337_vm1, %v5608_v42  ;;  %v5514_v44 = vmax.f32 %v5196_v16, 0.0 }
 0x3f0   : > { %v12141_v30 = vpop.f32.mrf.mxu1  ;;  %v5198_v24 = vpop.f32.mrf.mxu0  ;;  %10387 = vmatmul.mubr.msk.bf16.gmra.mxu1 %vm1337_vm1, %v5609_v13 }
 0x3f1   : > { %v5199_v39 = vadd.f32 %v5198_v24, %v12008_v33  ;;  %v5517_v27 = vmax.f32 %v5207_v19, 0.0 }
 0x3f2   : > { %v12145_v2 = vpop.f32.mrf.mxu1  ;;  %v10260_v31 = vpop.f32.mrf.mxu0 }
 0x3f3   : > { %v5515_v43 = vmax.f32 %v5199_v39, 0.0  ;;  %v5611_v36 = vpack.c.bf16 %v5517_v27, %v5516_v1  ;;  %v5220_v33 = vadd.f32 %v10260_v31, %v12012_v47 }
 0x3f4   : > { %v12147_v53 = vpop.f32.mrf.mxu1  ;;  %v5211_v57 = vpop.f32.mrf.mxu0 }
 0x3f5   : > { %v5610_v51 = vpack.c.bf16 %v5515_v43, %v5514_v44  ;;  %v5212_v60 = vadd.f32 %v5211_v57, %v12016_v52  ;;  %v5520_v52 = vmax.f32 %v5220_v33, 0.0 }
 0x3f6   : > { %v12149_v56 = vpop.f32.mrf.mxu1  ;;  %v10261_v4 = vpop.f32.mrf.mxu0 }
 0x3f7   : > { %v5223_v9 = vadd.f32 %v10261_v4, %v12024_v23  ;;  %10390 = vmatprep.mubr.msk.bf16.mxu1 %vm1337_vm1, %v5610_v51  ;;  %v5518_v40 = vmax.f32 %v5212_v60, 0.0 }
 0x3f8   : > { %v12155_v28 = vpop.f32.mrf.mxu1  ;;  %v5214_v48 = vpop.f32.mrf.mxu0  ;;  %10391 = vmatmul.mubr.msk.bf16.gmra.mxu1 %vm1337_vm1, %v5611_v36 }
 0x3f9   : > { %v5215_v55 = vadd.f32 %v5214_v48, %v12030_v21  ;;  %v5521_v59 = vmax.f32 %v5223_v9, 0.0 }
 0x3fa   : > { %v12159_v41 = vpop.f32.mrf.mxu1  ;;  %v10264_v8 = vpop.f32.mrf.mxu0 }
 0x3fb   : > { %v5519_v50 = vmax.f32 %v5215_v55, 0.0  ;;  %v5613_v15 = vpack.c.bf16 %v5521_v59, %v5520_v52  ;;  %v5236_v21 = vadd.f32 %v10264_v8, %v12034_v61 }
 0x3fc   : > { %v12161_v0 = vpop.f32.mrf.mxu1  ;;  %v5227_v23 = vpop.f32.mrf.mxu0 }
 0x3fd   : > { %v5612_v34 = vpack.c.bf16 %v5519_v50, %v5518_v40  ;;  %v5228_v11 = vadd.f32 %v5227_v23, %v12038_v6  ;;  %v5524_v6 = vmax.f32 %v5236_v21, 0.0 }
 0x3fe   : > { %v12163_v47 = vpop.f32.mrf.mxu1  ;;  %v10265_v35 = vpop.f32.mrf.mxu0 }
 0x3ff   : > { %v5239_v22 = vadd.f32 %v10265_v35, %v12046_v63  ;;  %10394 = vmatprep.mubr.msk.bf16.mxu1 %vm1337_vm1, %v5612_v34  ;;  %v5522_v24 = vmax.f32 %v5228_v11, 0.0  ;;  %v10759_v11 = vld [vmem:[%s12698_s2 + $0xa8] sm:$0xff]  }
 0x400   : > { %v12169_v42 = vpop.f32.mrf.mxu1  ;;  %v5230_v13 = vpop.f32.mrf.mxu0  ;;  %10395 = vmatmul.mubr.msk.bf16.gmra.mxu1 %vm1337_vm1, %v5613_v15  ;;  %10594 = vmatprep.subr.bf16.mxu1 %v10759_v11 }
 0x401   : > { %v5231_v3 = vadd.f32 %v5230_v13, %v12052_v32  ;;  %v5525_v16 = vmax.f32 %v5239_v22, 0.0  ;;  %10595 = vmatpush3.bf16.msra.mxu1 %v10759_v11 }
 0x402   : > { %v12173_v19 = vpop.f32.mrf.mxu1  ;;  %v10268_v54 = vpop.f32.mrf.mxu0 }
 0x403   : > { %v5523_v39 = vmax.f32 %v5231_v3, 0.0  ;;  %v5615_v44 = vpack.c.bf16 %v5525_v16, %v5524_v6  ;;  %v5252_v32 = vadd.f32 %v10268_v54, %v12056_v10 }
 0x404   : > { %v12175_v27 = vpop.f32.mrf.mxu1  ;;  %v5243_v63 = vpop.f32.mrf.mxu0 }
 0x405   : > { %v5614_v31 = vpack.c.bf16 %v5523_v39, %v5522_v24  ;;  %v5244_v1 = vadd.f32 %v5243_v63, %v12060_v20  ;;  %v5528_v20 = vmax.f32 %v5252_v32, 0.0 }
 0x406   : > { %v12177_v61 = vpop.f32.mrf.mxu1  ;;  %v10269_v43 = vpop.f32.mrf.mxu0 }
 0x407   : > { %v5255_v57 = vadd.f32 %v10269_v43, %v12068_v29  ;;  %10398 = vmatprep.mubr.msk.bf16.mxu1 %vm1337_vm1, %v5614_v31  ;;  %v5526_v48 = vmax.f32 %v5244_v1, 0.0 }
 0x408   : > { %v12183_v51 = vpop.f32.mrf.mxu1  ;;  %v5246_v36 = vpop.f32.mrf.mxu0  ;;  %10399 = vmatmul.mubr.msk.bf16.gmra.mxu1 %vm1337_vm1, %v5615_v44 }
 0x409   : > { %v5247_v4 = vadd.f32 %v5246_v36, %v12074_v26  ;;  %v5529_v60 = vmax.f32 %v5255_v57, 0.0 }
 0x40a   : > { %v12187_v9 = vpop.f32.mrf.mxu1  ;;  %v10272_v33 = vpop.f32.mrf.mxu0 }
 0x40b   : > { %v5527_v55 = vmax.f32 %v5247_v4, 0.0  ;;  %v5617_v40 = vpack.c.bf16 %v5529_v60, %v5528_v20  ;;  %v5268_v26 = vadd.f32 %v10272_v33, %v12081_v49 }
 0x40c   : > { %v12189_v59 = vpop.f32.mrf.mxu1  ;;  %v5259_v29 = vpop.f32.mrf.mxu0 }
 0x40d   : > { %v5616_v8 = vpack.c.bf16 %v5527_v55, %v5526_v48  ;;  %v5260_v52 = vadd.f32 %v5259_v29, %v12085_v37  ;;  %v5532_v3 = vmax.f32 %v5268_v26, 0.0 }
 0x40e   : > { %v12191_v10 = vpop.f32.mrf.mxu1  ;;  %v10273_v50 = vpop.f32.mrf.mxu0 }
 0x40f   : > { %v5271_v23 = vadd.f32 %v10273_v50, %v12093_v62  ;;  %10402 = vmatprep.mubr.msk.bf16.mxu1 %vm1337_vm1, %v5616_v8  ;;  %v5530_v62 = vmax.f32 %v5260_v52, 0.0 }
 0x410   : > { %v12197_v34 = vpop.f32.mrf.mxu1  ;;  %v5262_v15 = vpop.f32.mrf.mxu0  ;;  %10403 = vmatmul.mubr.msk.bf16.gmra.mxu1 %vm1337_vm1, %v5617_v40 }
 0x411   : > { %v5263_v35 = vadd.f32 %v5262_v15, %v12097_v5  ;;  %v5533_v22 = vmax.f32 %v5271_v23, 0.0 }
 0x412   : > { %v12204_v21 = vpop.f32.mrf.mxu1  ;;  %v10276_v37 = vpop.f32.mrf.mxu0 }
 0x413   : > { %v5531_v13 = vmax.f32 %v5263_v35, 0.0  ;;  %v5619_v24 = vpack.c.bf16 %v5533_v22, %v5532_v3  ;;  %v5284_v31 = vadd.f32 %v10276_v37, %v12103_v14 }
 0x414   : > { %v12206_v49 = vpop.f32.mrf.mxu1  ;;  %v5275_v16 = vpop.f32.mrf.mxu0 }
 0x415   : > { %v5618_v54 = vpack.c.bf16 %v5531_v13, %v5530_v62  ;;  %v5276_v6 = vadd.f32 %v5275_v16, %v12105_v38  ;;  %v5536_v38 = vmax.f32 %v5284_v31, 0.0 }
 0x416   : > { %v12208_v39 = vpop.f32.mrf.mxu1  ;;  %v10277_v5 = vpop.f32.mrf.mxu0 }
 0x417   : > { %v5287_v63 = vadd.f32 %v10277_v5, %v12113_v25  ;;  %10406 = vmatprep.mubr.msk.bf16.mxu1 %vm1337_vm1, %v5618_v54  ;;  %v5534_v4 = vmax.f32 %v5276_v6, 0.0 }
 0x418   : > { %v12214_v44 = vpop.f32.mrf.mxu1  ;;  %v5278_v43 = vpop.f32.mrf.mxu0  ;;  %10407 = vmatmul.mubr.msk.bf16.gmra.mxu1 %vm1337_vm1, %v5619_v24 }
 0x419   : > { %v5279_v1 = vadd.f32 %v5278_v43, %v12117_v12  ;;  %v5537_v57 = vmax.f32 %v5287_v63, 0.0 }
 0x41a   : > { %v12218_v32 = vpop.f32.mrf.mxu1  ;;  %v10280_v36 = vpop.f32.mrf.mxu0 }
 0x41b   : > { %v5535_v60 = vmax.f32 %v5279_v1, 0.0  ;;  %v5621_v55 = vpack.c.bf16 %v5537_v57, %v5536_v38  ;;  %v5300_v12 = vadd.f32 %v10280_v36, %v12119_v46 }
 0x41c   : > { %v12220_v33 = vpop.f32.mrf.mxu1  ;;  %v5291_v25 = vpop.f32.mrf.mxu0 }
 0x41d   : > { %v5620_v48 = vpack.c.bf16 %v5535_v60, %v5534_v4  ;;  %v5292_v29 = vadd.f32 %v5291_v25, %v12121_v58  ;;  %v5540_v58 = vmax.f32 %v5300_v12, 0.0 }
 0x41e   : > { %v12222_v14 = vpop.f32.mrf.mxu1  ;;  %v10281_v20 = vpop.f32.mrf.mxu0 }
 0x41f   : > { %v5303_v8 = vadd.f32 %v10281_v20, %v12127_v18  ;;  %10410 = vmatprep.mubr.msk.bf16.mxu1 %vm1337_vm1, %v5620_v48  ;;  %v5538_v35 = vmax.f32 %v5292_v29, 0.0 }
 0x420   : > { %v12228_v40 = vpop.f32.mrf.mxu1  ;;  %v5294_v50 = vpop.f32.mrf.mxu0  ;;  %10411 = vmatmul.mubr.msk.bf16.gmra.mxu1 %vm1337_vm1, %v5621_v55 }
 0x421   : > { %v5295_v52 = vadd.f32 %v5294_v50, %v12131_v7  ;;  %v5541_v23 = vmax.f32 %v5303_v8, 0.0 }
 0x422   : > { %v12232_v26 = vpop.f32.mrf.mxu1  ;;  %v10284_v15 = vpop.f32.mrf.mxu0 }
 0x423   : > { %v5539_v11 = vmax.f32 %v5295_v52, 0.0  ;;  %v5623_v62 = vpack.c.bf16 %v5541_v23, %v5540_v58  ;;  %v5316_v7 = vadd.f32 %v10284_v15, %v12133_v17 }
 0x424   : > { %v12234_v22 = vpop.f32.mrf.mxu1  ;;  %v5307_v18 = vpop.f32.mrf.mxu0 }
 0x425   : > { %v5622_v37 = vpack.c.bf16 %v5539_v11, %v5538_v35  ;;  %v5308_v3 = vadd.f32 %v5307_v18, %v12135_v45  ;;  %v5544_v45 = vmax.f32 %v5316_v7, 0.0 }
 0x426   : > { %v12236_v46 = vpop.f32.mrf.mxu1  ;;  %v10285_v13 = vpop.f32.mrf.mxu0 }
 0x427   : > { %v5319_v16 = vadd.f32 %v10285_v13, %v12141_v30  ;;  %10414 = vmatprep.mubr.msk.bf16.mxu1 %vm1337_vm1, %v5622_v37  ;;  %v5542_v43 = vmax.f32 %v5308_v3, 0.0 }
 0x428   : > { %v12242_v54 = vpop.f32.mrf.mxu1  ;;  %v5310_v24 = vpop.f32.mrf.mxu0  ;;  %10415 = vmatmul.mubr.msk.bf16.gmra.mxu1 %vm1337_vm1, %v5623_v62 }
 0x429   : > { %v5311_v5 = vadd.f32 %v5310_v24, %v12145_v2  ;;  %v5545_v6 = vmax.f32 %v5319_v16, 0.0 }
 0x42a   : > { %v12246_v63 = vpop.f32.mrf.mxu1  ;;  %v10288_v31 = vpop.f32.mrf.mxu0 }
 0x42b   : > { %v5543_v1 = vmax.f32 %v5311_v5, 0.0  ;;  %v5625_v4 = vpack.c.bf16 %v5545_v6, %v5544_v45  ;;  %v5332_v2 = vadd.f32 %v10288_v31, %v12147_v53 }
 0x42c   : > { %v12248_v57 = vpop.f32.mrf.mxu1  ;;  %v5323_v30 = vpop.f32.mrf.mxu0 }
 0x42d   : > { %v5624_v36 = vpack.c.bf16 %v5543_v1, %v5542_v43  ;;  %v5324_v38 = vadd.f32 %v5323_v30, %v12149_v56  ;;  %v5548_v52 = vmax.f32 %v5332_v2, 0.0 }
 0x42e   : > { %v12250_v17 = vpop.f32.mrf.mxu1  ;;  %v10289_v60 = vpop.f32.mrf.mxu0 }
 0x42f   : > { %v5335_v25 = vadd.f32 %v10289_v60, %v12155_v28  ;;  %10418 = vmatprep.mubr.msk.bf16.mxu1 %vm1337_vm1, %v5624_v36  ;;  %v5546_v12 = vmax.f32 %v5324_v38, 0.0 }
 0x430   : > { %v5326_v48 = vpop.f32.mrf.mxu0  ;;  %10419 = vmatmul.mubr.msk.bf16.gmra.mxu1 %vm1337_vm1, %v5625_v4  ;;  %v12258_v29 = vpop.f32.mrf.mxu1 }
 0x431   : > { %v5327_v55 = vadd.f32 %v5326_v48, %v12159_v41  ;;  %v5549_v20 = vmax.f32 %v5335_v25, 0.0 }
 0x432   : > { %v10292_v8 = vpop.f32.mrf.mxu0  ;;  %v12260_v28 = vpop.f32.mrf.mxu1 }
 0x433   : > { %v5547_v50 = vmax.f32 %v5327_v55, 0.0  ;;  %v5627_v15 = vpack.c.bf16 %v5549_v20, %v5548_v52  ;;  %v5348_v41 = vadd.f32 %v10292_v8, %v12161_v0 }
 0x434   : > { %v5339_v23 = vpop.f32.mrf.mxu0 }
 0x435   : > { %v5626_v56 = vpack.c.bf16 %v5547_v50, %v5546_v12  ;;  %v5340_v53 = vadd.f32 %v5339_v23, %v12163_v47  ;;  %v5552_v24 = vmax.f32 %v5348_v41, 0.0 }
 0x436   : > { %v10293_v35 = vpop.f32.mrf.mxu0 }
 0x437   : > { %v5351_v11 = vadd.f32 %v10293_v35, %v12169_v42  ;;  %10422 = vmatprep.mubr.msk.bf16.mxu1 %vm1337_vm1, %v5626_v56  ;;  %v5550_v16 = vmax.f32 %v5340_v53, 0.0 }
 0x438   : > { %v5342_v58 = vpop.f32.mrf.mxu0  ;;  %v10328_v18 = vpop.f32.mrf.mxu1  ;;  %10423 = vmatmul.mubr.msk.bf16.gmra.mxu1 %vm1337_vm1, %v5627_v15 }
 0x439   : > { %v5343_v37 = vadd.f32 %v5342_v58, %v12173_v19  ;;  %v5553_v62 = vmax.f32 %v5351_v11, 0.0  ;;  %v6414_v19 = vmax.f32 %v10328_v18, 0.0 }
 0x43a   : > { %v10296_v13 = vpop.f32.mrf.mxu0  ;;  %v5901_v3 = vpop.f32.mrf.mxu1 }
 0x43b   : > { %v5551_v7 = vmax.f32 %v5343_v37, 0.0  ;;  %v5629_v42 = vpack.c.bf16 %v5553_v62, %v5552_v24  ;;  %v6412_v0 = vmax.f32 %v5901_v3, 0.0  ;;  %v5364_v4 = vadd.f32 %v10296_v13, %v12175_v27 }
 0x43c   : > { %v5355_v5 = vpop.f32.mrf.mxu0  ;;  %v10329_v47 = vpop.f32.mrf.mxu1 }
 0x43d   : > { %v5628_v6 = vpack.c.bf16 %v5551_v7, %v5550_v16  ;;  %v6415_v31 = vmax.f32 %v10329_v47, 0.0  ;;  %v5356_v45 = vadd.f32 %v5355_v5, %v12177_v61 }
 0x43e   : > { %v10297_v43 = vpop.f32.mrf.mxu0  ;;  %v5904_v1 = vpop.f32.mrf.mxu1 }
 0x43f   : > { %v5367_v30 = vadd.f32 %v10297_v43, %v12183_v51  ;;  %v6413_v36 = vmax.f32 %v5904_v1, 0.0  ;;  %10426 = vmatprep.mubr.msk.bf16.mxu1 %vm1337_vm1, %v5628_v6  ;;  %v6541_v48 = vpack.c.bf16 %v6415_v31, %v6414_v19  ;;  %v5554_v61 = vmax.f32 %v5356_v45, 0.0 }
 0x440   : > { %v5358_v60 = vpop.f32.mrf.mxu0  ;;  %v10332_v38 = vpop.f32.mrf.mxu1  ;;  %10427 = vmatmul.mubr.msk.bf16.gmra.mxu1 %vm1337_vm1, %v5629_v42  ;;  %v5556_v51 = vmax.f32 %v5364_v4, 0.0 }
 0x441   : > { %v6540_v25 = vpack.c.bf16 %v6413_v36, %v6412_v0  ;;  %v5359_v2 = vadd.f32 %v5358_v60, %v12187_v9  ;;  %v5557_v55 = vmax.f32 %v5367_v30, 0.0  ;;  %v6418_v58 = vmax.f32 %v10332_v38, 0.0 }
 0x442   : > { %v10300_v20 = vpop.f32.mrf.mxu0  ;;  %v5917_v8 = vpop.f32.mrf.mxu1 }
 0x443   : > { %v5555_v12 = vmax.f32 %v5359_v2, 0.0  ;;  %10462 = vmatprep.mubr.msk.bf16.mxu0 %vm1337_vm1, %v6540_v25  ;;  %v5631_v23 = vpack.c.bf16 %v5557_v55, %v5556_v51  ;;  %v6416_v53 = vmax.f32 %v5917_v8, 0.0  ;;  %v5380_v18 = vadd.f32 %v10300_v20, %v12189_v59 }
 0x444   : > { %v5371_v50 = vpop.f32.mrf.mxu0  ;;  %v10333_v52 = vpop.f32.mrf.mxu1  ;;  %10463 = vmatmul.mubr.msk.bf16.vlgmr.msra.gmra.mxu0 %vm1337_vm1, %v6541_v48  ;;  %v10760_v48 = vld [vmem:[%s12698_s2 + $0xa0] sm:$0xff]  }
 0x445   : > { %v5630_v27 = vpack.c.bf16 %v5555_v12, %v5554_v61  ;;  %v6419_v56 = vmax.f32 %v10333_v52, 0.0  ;;  %v5372_v9 = vadd.f32 %v5371_v50, %v12191_v10  ;;  %10596 = vmatprep.subr.bf16.mxu1 %v10760_v48 }
 0x446   : > { %v10301_v15 = vpop.f32.mrf.mxu0  ;;  %v5920_v35 = vpop.f32.mrf.mxu1  ;;  %10597 = vmatpush3.bf16.msra.mxu1 %v10760_v48 }
 0x447   : > { %v5383_v11 = vadd.f32 %v10301_v15, %v12197_v34  ;;  %v6417_v41 = vmax.f32 %v5920_v35, 0.0  ;;  %10430 = vmatprep.mubr.msk.bf16.mxu1 %vm1337_vm1, %v5630_v27  ;;  %v6543_v16 = vpack.c.bf16 %v6419_v56, %v6418_v58  ;;  %v5558_v10 = vmax.f32 %v5372_v9, 0.0 }
 0x448   : > { %v5374_v37 = vpop.f32.mrf.mxu0  ;;  %v10336_v62 = vpop.f32.mrf.mxu1  ;;  %10431 = vmatmul.mubr.msk.bf16.gmra.mxu1 %vm1337_vm1, %v5631_v23  ;;  %v5560_v34 = vmax.f32 %v5380_v18, 0.0 }
 0x449   : > { %v6542_v13 = vpack.c.bf16 %v6417_v41, %v6416_v53  ;;  %v5375_v3 = vadd.f32 %v5374_v37, %v12204_v21  ;;  %v5561_v7 = vmax.f32 %v5383_v11, 0.0  ;;  %v6422_v19 = vmax.f32 %v10336_v62, 0.0 }
 0x44a   : > { %v10304_v24 = vpop.f32.mrf.mxu0  ;;  %v5933_v5 = vpop.f32.mrf.mxu1 }
 0x44b   : > { %v5559_v47 = vmax.f32 %v5375_v3, 0.0  ;;  %10466 = vmatprep.mubr.msk.bf16.mxu0 %vm1337_vm1, %v6542_v13  ;;  %v5633_v31 = vpack.c.bf16 %v5561_v7, %v5560_v34  ;;  %v6420_v45 = vmax.f32 %v5933_v5, 0.0  ;;  %v5396_v4 = vadd.f32 %v10304_v24, %v12206_v49 }
 0x44c   : > { %v5387_v6 = vpop.f32.mrf.mxu0  ;;  %v10337_v42 = vpop.f32.mrf.mxu1  ;;  %10467 = vmatmul.mubr.msk.bf16.gmra.mxu0 %vm1337_vm1, %v6543_v16 }
 0x44d   : > { %v5632_v59 = vpack.c.bf16 %v5559_v47, %v5558_v10  ;;  %v6423_v43 = vmax.f32 %v10337_v42, 0.0  ;;  %v5388_v21 = vadd.f32 %v5387_v6, %v12208_v39  ;;  %v5564_v49 = vmax.f32 %v5396_v4, 0.0 }
 0x44e   : > { %v10305_v1 = vpop.f32.mrf.mxu0  ;;  %v5936_v0 = vpop.f32.mrf.mxu1 }
 0x44f   : > { %v5399_v30 = vadd.f32 %v10305_v1, %v12214_v44  ;;  %v6421_v36 = vmax.f32 %v5936_v0, 0.0  ;;  %10434 = vmatprep.mubr.msk.bf16.mxu1 %vm1337_vm1, %v5632_v59  ;;  %v6545_v39 = vpack.c.bf16 %v6423_v43, %v6422_v19  ;;  %v5562_v8 = vmax.f32 %v5388_v21, 0.0 }
 0x450   : > { %v5390_v60 = vpop.f32.mrf.mxu0  ;;  %v10340_v38 = vpop.f32.mrf.mxu1  ;;  %10435 = vmatmul.mubr.msk.bf16.gmra.mxu1 %vm1337_vm1, %v5633_v31 }
 0x451   : > { %v6544_v25 = vpack.c.bf16 %v6421_v36, %v6420_v45  ;;  %v5391_v2 = vadd.f32 %v5390_v60, %v12218_v32  ;;  %v5565_v55 = vmax.f32 %v5399_v30, 0.0  ;;  %v6426_v9 = vmax.f32 %v10340_v38, 0.0 }
 0x452   : > { %v10308_v44 = vpop.f32.mrf.mxu0  ;;  %v5949_v20 = vpop.f32.mrf.mxu1 }
 0x453   : > { %v5563_v61 = vmax.f32 %v5391_v2, 0.0  ;;  %10470 = vmatprep.mubr.msk.bf16.mxu0 %vm1337_vm1, %v6544_v25  ;;  %v5635_v50 = vpack.c.bf16 %v5565_v55, %v5564_v49  ;;  %v6424_v56 = vmax.f32 %v5949_v20, 0.0  ;;  %v5412_v11 = vadd.f32 %v10308_v44, %v12220_v33 }
 0x454   : > { %v5403_v12 = vpop.f32.mrf.mxu0  ;;  %v10341_v51 = vpop.f32.mrf.mxu1  ;;  %10471 = vmatmul.mubr.msk.bf16.gmra.mxu0 %vm1337_vm1, %v6545_v39 }
 0x455   : > { %v5634_v32 = vpack.c.bf16 %v5563_v61, %v5562_v8  ;;  %v6427_v52 = vmax.f32 %v10341_v51, 0.0  ;;  %v5404_v15 = vadd.f32 %v5403_v12, %v12222_v14 }
 0x456   : > { %v10309_v27 = vpop.f32.mrf.mxu0  ;;  %v5952_v23 = vpop.f32.mrf.mxu1 }
 0x457   : > { %v5415_v35 = vadd.f32 %v10309_v27, %v12228_v40  ;;  %v6425_v53 = vmax.f32 %v5952_v23, 0.0  ;;  %10438 = vmatprep.mubr.msk.bf16.mxu1 %vm1337_vm1, %v5634_v32  ;;  %v6547_v62 = vpack.c.bf16 %v6427_v52, %v6426_v9  ;;  %v5566_v14 = vmax.f32 %v5404_v15, 0.0 }
 0x458   : > { %v5406_v41 = vpop.f32.mrf.mxu0  ;;  %v10344_v58 = vpop.f32.mrf.mxu1  ;;  %10439 = vmatmul.mubr.msk.bf16.gmra.mxu1 %vm1337_vm1, %v5635_v50  ;;  %v5568_v40 = vmax.f32 %v5412_v11, 0.0 }
 0x459   : > { %v6546_v18 = vpack.c.bf16 %v6425_v53, %v6424_v56  ;;  %v5407_v37 = vadd.f32 %v5406_v41, %v12232_v26  ;;  %v5569_v13 = vmax.f32 %v5415_v35, 0.0  ;;  %v6430_v43 = vmax.f32 %v10344_v58, 0.0 }
 0x45a   : > { %v10312_v3 = vpop.f32.mrf.mxu0  ;;  %v5965_v16 = vpop.f32.mrf.mxu1 }
 0x45b   : > { %v5567_v7 = vmax.f32 %v5407_v37, 0.0  ;;  %10474 = vmatprep.mubr.msk.bf16.mxu0 %vm1337_vm1, %v6546_v18  ;;  %v5637_v10 = vpack.c.bf16 %v5569_v13, %v5568_v40  ;;  %v6428_v42 = vmax.f32 %v5965_v16, 0.0  ;;  %v5428_v1 = vadd.f32 %v10312_v3, %v12234_v22 }
 0x45c   : > { %v5419_v24 = vpop.f32.mrf.mxu0  ;;  %v10345_v5 = vpop.f32.mrf.mxu1  ;;  %10475 = vmatmul.mubr.msk.bf16.gmra.mxu0 %vm1337_vm1, %v6547_v62 }
 0x45d   : > { %v5636_v33 = vpack.c.bf16 %v5567_v7, %v5566_v14  ;;  %v6431_v47 = vmax.f32 %v10345_v5, 0.0  ;;  %v5420_v26 = vadd.f32 %v5419_v24, %v12236_v46 }
 0x45e   : > { %v10313_v34 = vpop.f32.mrf.mxu0  ;;  %v5968_v6 = vpop.f32.mrf.mxu1 }
 0x45f   : > { %v5431_v59 = vadd.f32 %v10313_v34, %v12242_v54  ;;  %v6429_v31 = vmax.f32 %v5968_v6, 0.0  ;;  %10442 = vmatprep.mubr.msk.bf16.mxu1 %vm1337_vm1, %v5636_v33  ;;  %v6549_v36 = vpack.c.bf16 %v6431_v47, %v6430_v43  ;;  %v5570_v46 = vmax.f32 %v5420_v26, 0.0 }
 0x460   : > { %v5422_v0 = vpop.f32.mrf.mxu0  ;;  %v10348_v45 = vpop.f32.mrf.mxu1  ;;  %10443 = vmatmul.mubr.msk.bf16.gmra.mxu1 %vm1337_vm1, %v5637_v10  ;;  %v5572_v54 = vmax.f32 %v5428_v1, 0.0 }
 0x461   : > { %v6548_v21 = vpack.c.bf16 %v6429_v31, %v6428_v42  ;;  %v5423_v30 = vadd.f32 %v5422_v0, %v12246_v63  ;;  %v5573_v19 = vmax.f32 %v5431_v59, 0.0  ;;  %v6434_v49 = vmax.f32 %v10348_v45, 0.0 }
 0x462   : > { %v10316_v4 = vpop.f32.mrf.mxu0  ;;  %v5981_v60 = vpop.f32.mrf.mxu1 }
 0x463   : > { %v5571_v38 = vmax.f32 %v5423_v30, 0.0  ;;  %10478 = vmatprep.mubr.msk.bf16.mxu0 %vm1337_vm1, %v6548_v21  ;;  %v5639_v48 = vpack.c.bf16 %v5573_v19, %v5572_v54  ;;  %v6432_v20 = vmax.f32 %v5981_v60, 0.0  ;;  %v5444_v12 = vadd.f32 %v10316_v4, %v12248_v57 }
 0x464   : > { %v5435_v25 = vpop.f32.mrf.mxu0  ;;  %v10349_v2 = vpop.f32.mrf.mxu1  ;;  %10479 = vmatmul.mubr.msk.bf16.gmra.mxu0 %vm1337_vm1, %v6549_v36 }
 0x465   : > { %v5638_v22 = vpack.c.bf16 %v5571_v38, %v5570_v46  ;;  %v6435_v39 = vmax.f32 %v10349_v2, 0.0  ;;  %v5436_v63 = vadd.f32 %v5435_v25, %v12250_v17 }
 0x466   : > { %v10317_v55 = vpop.f32.mrf.mxu0  ;;  %v5984_v44 = vpop.f32.mrf.mxu1 }
 0x467   : > { %v5447_v8 = vadd.f32 %v10317_v55, %v12258_v29  ;;  %v6433_v61 = vmax.f32 %v5984_v44, 0.0  ;;  %10446 = vmatprep.mubr.msk.bf16.mxu1 %vm1337_vm1, %v5638_v22  ;;  %v6551_v27 = vpack.c.bf16 %v6435_v39, %v6434_v49  ;;  %v5574_v15 = vmax.f32 %v5436_v63, 0.0 }
 0x468   : > { %v5438_v51 = vpop.f32.mrf.mxu0  ;;  %v10352_v32 = vpop.f32.mrf.mxu1  ;;  %10447 = vmatmul.mubr.msk.bf16.gmra.mxu1 %vm1337_vm1, %v5639_v48  ;;  %v5576_v29 = vmax.f32 %v5444_v12, 0.0 }
 0x469   : > { %v6550_v50 = vpack.c.bf16 %v6433_v61, %v6432_v20  ;;  %v5439_v52 = vadd.f32 %v5438_v51, %v12260_v28  ;;  %v5577_v23 = vmax.f32 %v5447_v8, 0.0  ;;  %v6438_v28 = vmax.f32 %v10352_v32, 0.0 }
 0x46a   : > { %v5997_v56 = vpop.f32.mrf.mxu1 }
 0x46b   : > { %v5575_v17 = vmax.f32 %v5439_v52, 0.0  ;;  %10482 = vmatprep.mubr.msk.bf16.mxu0 %vm1337_vm1, %v6550_v50  ;;  %v5641_v57 = vpack.c.bf16 %v5577_v23, %v5576_v29  ;;  %v6436_v41 = vmax.f32 %v5997_v56, 0.0 }
 0x46c   : > { %v10353_v35 = vpop.f32.mrf.mxu1  ;;  %10483 = vmatmul.mubr.msk.bf16.gmra.mxu0 %vm1337_vm1, %v6551_v27 }
 0x46d   : > { %v5640_v53 = vpack.c.bf16 %v5575_v17, %v5574_v15  ;;  %v6439_v9 = vmax.f32 %v10353_v35, 0.0 }
 0x46e   : > { %v6000_v11 = vpop.f32.mrf.mxu1 }
 0x46f   : > { %v6437_v58 = vmax.f32 %v6000_v11, 0.0  ;;  %10450 = vmatprep.mubr.msk.bf16.mxu1 %vm1337_vm1, %v5640_v53  ;;  %v6553_v62 = vpack.c.bf16 %v6439_v9, %v6438_v28 }
 0x470   : > { %v10356_v18 = vpop.f32.mrf.mxu1  ;;  %10451 = vmatmul.mubr.msk.bf16.gmra.mxu1 %vm1337_vm1, %v5641_v57 }
 0x471   : > { %v6552_v37 = vpack.c.bf16 %v6437_v58, %v6436_v41  ;;  %v6442_v24 = vmax.f32 %v10356_v18, 0.0 }
 0x472   : > { %v6013_v13 = vpop.f32.mrf.mxu1 }
 0x473   : > { %10486 = vmatprep.mubr.msk.bf16.mxu0 %vm1337_vm1, %v6552_v37  ;;  %v6440_v7 = vmax.f32 %v6013_v13, 0.0 }
 0x474   : > { %v10357_v3 = vpop.f32.mrf.mxu1  ;;  %10487 = vmatmul.mubr.msk.bf16.gmra.mxu0 %vm1337_vm1, %v6553_v62 }
 0x475   : > { %v6443_v16 = vmax.f32 %v10357_v3, 0.0 }
 0x476   : > { %v6016_v14 = vpop.f32.mrf.mxu1 }
 0x477   : > { %v6441_v40 = vmax.f32 %v6016_v14, 0.0  ;;  %v6555_v10 = vpack.c.bf16 %v6443_v16, %v6442_v24 }
 0x478   : > { %v10360_v5 = vpop.f32.mrf.mxu1 }
 0x479   : > { %v6554_v33 = vpack.c.bf16 %v6441_v40, %v6440_v7  ;;  %v6446_v31 = vmax.f32 %v10360_v5, 0.0 }
 0x47a   : > { %v6029_v47 = vpop.f32.mrf.mxu1 }
 0x47b   : > { %10490 = vmatprep.mubr.msk.bf16.mxu0 %vm1337_vm1, %v6554_v33  ;;  %v6444_v26 = vmax.f32 %v6029_v47, 0.0 }
 0x47c   : > { %v10361_v34 = vpop.f32.mrf.mxu1  ;;  %10491 = vmatmul.mubr.msk.bf16.gmra.mxu0 %vm1337_vm1, %v6555_v10 }
 0x47d   : > { %v6447_v6 = vmax.f32 %v10361_v34, 0.0 }
 0x47e   : > { %v6032_v42 = vpop.f32.mrf.mxu1 }
 0x47f   : > { %v6445_v59 = vmax.f32 %v6032_v42, 0.0  ;;  %v6557_v0 = vpack.c.bf16 %v6447_v6, %v6446_v31 }
 0x480   : > { %v10364_v43 = vpop.f32.mrf.mxu1 }
 0x481   : > { %v6556_v1 = vpack.c.bf16 %v6445_v59, %v6444_v26  ;;  %v6450_v60 = vmax.f32 %v10364_v43, 0.0 }
 0x482   : > { %v6045_v45 = vpop.f32.mrf.mxu1 }
 0x483   : > { %10494 = vmatprep.mubr.msk.bf16.mxu0 %vm1337_vm1, %v6556_v1  ;;  %v6448_v19 = vmax.f32 %v6045_v45, 0.0 }
 0x484   : > { %v10365_v21 = vpop.f32.mrf.mxu1  ;;  %10495 = vmatmul.mubr.msk.bf16.gmra.mxu0 %vm1337_vm1, %v6557_v0 }
 0x485   : > { %v6451_v30 = vmax.f32 %v10365_v21, 0.0 }
 0x486   : > { %v6048_v36 = vpop.f32.mrf.mxu1 }
 0x487   : > { %v6449_v4 = vmax.f32 %v6048_v36, 0.0  ;;  %v6559_v54 = vpack.c.bf16 %v6451_v30, %v6450_v60 }
 0x488   : > { %v10368_v46 = vpop.f32.mrf.mxu1 }
 0x489   : > { %v6558_v38 = vpack.c.bf16 %v6449_v4, %v6448_v19  ;;  %v6454_v44 = vmax.f32 %v10368_v46, 0.0 }
 0x48a   : > { %v6061_v25 = vpop.f32.mrf.mxu1 }
 0x48b   : > { %10498 = vmatprep.mubr.msk.bf16.mxu0 %vm1337_vm1, %v6558_v38  ;;  %v6452_v39 = vmax.f32 %v6061_v25, 0.0 }
 0x48c   : > { %v10369_v2 = vpop.f32.mrf.mxu1  ;;  %10499 = vmatmul.mubr.msk.bf16.gmra.mxu0 %vm1337_vm1, %v6559_v54 }
 0x48d   : > { %v6455_v22 = vmax.f32 %v10369_v2, 0.0 }
 0x48e   : > { %v6064_v48 = vpop.f32.mrf.mxu1 }
 0x48f   : > { %v6453_v55 = vmax.f32 %v6064_v48, 0.0  ;;  %v6561_v8 = vpack.c.bf16 %v6455_v22, %v6454_v44 }
 0x490   : > { %v10372_v20 = vpop.f32.mrf.mxu1 }
 0x491   : > { %v6560_v63 = vpack.c.bf16 %v6453_v55, %v6452_v39  ;;  %v6458_v52 = vmax.f32 %v10372_v20, 0.0 }
 0x492   : > { %v6077_v61 = vpop.f32.mrf.mxu1 }
 0x493   : > { %10502 = vmatprep.mubr.msk.bf16.mxu0 %vm1337_vm1, %v6560_v63  ;;  %v6456_v32 = vmax.f32 %v6077_v61, 0.0 }
 0x494   : > { %v10373_v49 = vpop.f32.mrf.mxu1  ;;  %10503 = vmatmul.mubr.msk.bf16.gmra.mxu0 %vm1337_vm1, %v6561_v8 }
 0x495   : > { %v6459_v12 = vmax.f32 %v10373_v49, 0.0 }
 0x496   : > { %v6080_v51 = vpop.f32.mrf.mxu1 }
 0x497   : > { %v6457_v50 = vmax.f32 %v6080_v51, 0.0  ;;  %v6563_v56 = vpack.c.bf16 %v6459_v12, %v6458_v52 }
 0x498   : > { %v10376_v27 = vpop.f32.mrf.mxu1 }
 0x499   : > { %v6562_v23 = vpack.c.bf16 %v6457_v50, %v6456_v32  ;;  %v6462_v9 = vmax.f32 %v10376_v27, 0.0 }
 0x49a   : > { %v6093_v15 = vpop.f32.mrf.mxu1 }
 0x49b   : > { %10506 = vmatprep.mubr.msk.bf16.mxu0 %vm1337_vm1, %v6562_v23  ;;  %v6460_v53 = vmax.f32 %v6093_v15, 0.0 }
 0x49c   : > { %v10377_v17 = vpop.f32.mrf.mxu1  ;;  %10507 = vmatmul.mubr.msk.bf16.gmra.mxu0 %vm1337_vm1, %v6563_v56 }
 0x49d   : > { %v6463_v29 = vmax.f32 %v10377_v17, 0.0 }
 0x49e   : > { %v6096_v35 = vpop.f32.mrf.mxu1 }
 0x49f   : > { %v6461_v57 = vmax.f32 %v6096_v35, 0.0  ;;  %v6565_v58 = vpack.c.bf16 %v6463_v29, %v6462_v9 }
 0x4a0   : > { %v10380_v11 = vpop.f32.mrf.mxu1 }
 0x4a1   : > { %v6564_v41 = vpack.c.bf16 %v6461_v57, %v6460_v53  ;;  %v6466_v16 = vmax.f32 %v10380_v11, 0.0 }
 0x4a2   : > { %v6109_v28 = vpop.f32.mrf.mxu1 }
 0x4a3   : > { %10510 = vmatprep.mubr.msk.bf16.mxu0 %vm1337_vm1, %v6564_v41  ;;  %v6464_v13 = vmax.f32 %v6109_v28, 0.0 }
 0x4a4   : > { %v10381_v18 = vpop.f32.mrf.mxu1  ;;  %10511 = vmatmul.mubr.msk.bf16.gmra.mxu0 %vm1337_vm1, %v6565_v58 }
 0x4a5   : > { %v6467_v37 = vmax.f32 %v10381_v18, 0.0 }
 0x4a6   : > { %v6112_v62 = vpop.f32.mrf.mxu1 }
 0x4a7   : > { %v6465_v3 = vmax.f32 %v6112_v62, 0.0  ;;  %v6567_v40 = vpack.c.bf16 %v6467_v37, %v6466_v16 }
 0x4a8   : > { %v10384_v14 = vpop.f32.mrf.mxu1 }
 0x4a9   : > { %v6566_v7 = vpack.c.bf16 %v6465_v3, %v6464_v13  ;;  %v6470_v6 = vmax.f32 %v10384_v14, 0.0 }
 0x4aa   : > { %v6125_v24 = vpop.f32.mrf.mxu1 }
 0x4ab   : > { %10514 = vmatprep.mubr.msk.bf16.mxu0 %vm1337_vm1, %v6566_v7  ;;  %v6468_v47 = vmax.f32 %v6125_v24, 0.0 }
 0x4ac   : > { %v10385_v5 = vpop.f32.mrf.mxu1  ;;  %10515 = vmatmul.mubr.msk.bf16.gmra.mxu0 %vm1337_vm1, %v6567_v40 }
 0x4ad   : > { %v6471_v33 = vmax.f32 %v10385_v5, 0.0 }
 0x4ae   : > { %v6128_v10 = vpop.f32.mrf.mxu1 }
 0x4af   : > { %v6469_v34 = vmax.f32 %v6128_v10, 0.0  ;;  %v6569_v59 = vpack.c.bf16 %v6471_v33, %v6470_v6 }
 0x4b0   : > { %v10388_v42 = vpop.f32.mrf.mxu1 }
 0x4b1   : > { %v6568_v26 = vpack.c.bf16 %v6469_v34, %v6468_v47  ;;  %v6474_v30 = vmax.f32 %v10388_v42, 0.0 }
 0x4b2   : > { %v6141_v31 = vpop.f32.mrf.mxu1 }
 0x4b3   : > { %10518 = vmatprep.mubr.msk.bf16.mxu0 %vm1337_vm1, %v6568_v26  ;;  %v6472_v45 = vmax.f32 %v6141_v31, 0.0 }
 0x4b4   : > { %v10389_v43 = vpop.f32.mrf.mxu1  ;;  %10519 = vmatmul.mubr.msk.bf16.gmra.mxu0 %vm1337_vm1, %v6569_v59 }
 0x4b5   : > { %v6475_v1 = vmax.f32 %v10389_v43, 0.0 }
 0x4b6   : > { %v6144_v0 = vpop.f32.mrf.mxu1 }
 0x4b7   : > { %v6473_v21 = vmax.f32 %v6144_v0, 0.0  ;;  %v6571_v4 = vpack.c.bf16 %v6475_v1, %v6474_v30 }
 0x4b8   : > { %v10392_v36 = vpop.f32.mrf.mxu1 }
 0x4b9   : > { %v6570_v19 = vpack.c.bf16 %v6473_v21, %v6472_v45  ;;  %v6478_v22 = vmax.f32 %v10392_v36, 0.0 }
 0x4ba   : > { %v6157_v60 = vpop.f32.mrf.mxu1 }
 0x4bb   : > { %10522 = vmatprep.mubr.msk.bf16.mxu0 %vm1337_vm1, %v6570_v19  ;;  %v6476_v25 = vmax.f32 %v6157_v60, 0.0 }
 0x4bc   : > { %v10393_v46 = vpop.f32.mrf.mxu1  ;;  %10523 = vmatmul.mubr.msk.bf16.gmra.mxu0 %vm1337_vm1, %v6571_v4 }
 0x4bd   : > { %v6479_v38 = vmax.f32 %v10393_v46, 0.0 }
 0x4be   : > { %v6160_v54 = vpop.f32.mrf.mxu1 }
 0x4bf   : > { %v6477_v2 = vmax.f32 %v6160_v54, 0.0  ;;  %v6573_v55 = vpack.c.bf16 %v6479_v38, %v6478_v22 }
 0x4c0   : > { %v10396_v48 = vpop.f32.mrf.mxu1 }
 0x4c1   : > { %v6572_v39 = vpack.c.bf16 %v6477_v2, %v6476_v25  ;;  %v6482_v12 = vmax.f32 %v10396_v48, 0.0 }
 0x4c2   : > { %v6173_v44 = vpop.f32.mrf.mxu1 }
 0x4c3   : > { %10526 = vmatprep.mubr.msk.bf16.mxu0 %vm1337_vm1, %v6572_v39  ;;  %v6480_v61 = vmax.f32 %v6173_v44, 0.0 }
 0x4c4   : > { %v10397_v20 = vpop.f32.mrf.mxu1  ;;  %10527 = vmatmul.mubr.msk.bf16.gmra.mxu0 %vm1337_vm1, %v6573_v55 }
 0x4c5   : > { %v6483_v63 = vmax.f32 %v10397_v20, 0.0 }
 0x4c6   : > { %v6176_v8 = vpop.f32.mrf.mxu1 }
 0x4c7   : > { %v6481_v49 = vmax.f32 %v6176_v8, 0.0  ;;  %v6575_v50 = vpack.c.bf16 %v6483_v63, %v6482_v12 }
 0x4c8   : > { %v10400_v51 = vpop.f32.mrf.mxu1 }
 0x4c9   : > { %v6574_v32 = vpack.c.bf16 %v6481_v49, %v6480_v61  ;;  %v6486_v29 = vmax.f32 %v10400_v51, 0.0 }
 0x4ca   : > { %v6189_v52 = vpop.f32.mrf.mxu1 }
 0x4cb   : > { %10530 = vmatprep.mubr.msk.bf16.mxu0 %vm1337_vm1, %v6574_v32  ;;  %v6484_v15 = vmax.f32 %v6189_v52, 0.0 }
 0x4cc   : > { %v10401_v27 = vpop.f32.mrf.mxu1  ;;  %10531 = vmatmul.mubr.msk.bf16.gmra.mxu0 %vm1337_vm1, %v6575_v50 }
 0x4cd   : > { %v6487_v23 = vmax.f32 %v10401_v27, 0.0 }
 0x4ce   : > { %v6192_v56 = vpop.f32.mrf.mxu1 }
 0x4cf   : > { %v6485_v17 = vmax.f32 %v6192_v56, 0.0  ;;  %v6577_v57 = vpack.c.bf16 %v6487_v23, %v6486_v29 }
 0x4d0   : > { %v10404_v35 = vpop.f32.mrf.mxu1 }
 0x4d1   : > { %v6576_v53 = vpack.c.bf16 %v6485_v17, %v6484_v15  ;;  %v6490_v37 = vmax.f32 %v10404_v35, 0.0 }
 0x4d2   : > { %v6205_v9 = vpop.f32.mrf.mxu1 }
 0x4d3   : > { %10534 = vmatprep.mubr.msk.bf16.mxu0 %vm1337_vm1, %v6576_v53  ;;  %v6488_v28 = vmax.f32 %v6205_v9, 0.0 }
 0x4d4   : > { %v10405_v11 = vpop.f32.mrf.mxu1  ;;  %10535 = vmatmul.mubr.msk.bf16.gmra.mxu0 %vm1337_vm1, %v6577_v57 }
 0x4d5   : > { %v6491_v41 = vmax.f32 %v10405_v11, 0.0 }
 0x4d6   : > { %v6208_v58 = vpop.f32.mrf.mxu1 }
 0x4d7   : > { %v6489_v18 = vmax.f32 %v6208_v58, 0.0  ;;  %v6579_v3 = vpack.c.bf16 %v6491_v41, %v6490_v37 }
 0x4d8   : > { %v10408_v62 = vpop.f32.mrf.mxu1 }
 0x4d9   : > { %v6578_v13 = vpack.c.bf16 %v6489_v18, %v6488_v28  ;;  %v6494_v33 = vmax.f32 %v10408_v62, 0.0 }
 0x4da   : > { %v6221_v16 = vpop.f32.mrf.mxu1 }
 0x4db   : > { %10538 = vmatprep.mubr.msk.bf16.mxu0 %vm1337_vm1, %v6578_v13  ;;  %v6492_v24 = vmax.f32 %v6221_v16, 0.0 }
 0x4dc   : > { %v10409_v14 = vpop.f32.mrf.mxu1  ;;  %10539 = vmatmul.mubr.msk.bf16.gmra.mxu0 %vm1337_vm1, %v6579_v3 }
 0x4dd   : > { %v6495_v7 = vmax.f32 %v10409_v14, 0.0 }
 0x4de   : > { %v6224_v40 = vpop.f32.mrf.mxu1 }
 0x4df   : > { %v6493_v5 = vmax.f32 %v6224_v40, 0.0  ;;  %v6581_v34 = vpack.c.bf16 %v6495_v7, %v6494_v33 }
 0x4e0   : > { %v10412_v10 = vpop.f32.mrf.mxu1 }
 0x4e1   : > { %v6580_v47 = vpack.c.bf16 %v6493_v5, %v6492_v24  ;;  %v6498_v1 = vmax.f32 %v10412_v10, 0.0 }
 0x4e2   : > { %v6237_v6 = vpop.f32.mrf.mxu1 }
 0x4e3   : > { %10542 = vmatprep.mubr.msk.bf16.mxu0 %vm1337_vm1, %v6580_v47  ;;  %v6496_v31 = vmax.f32 %v6237_v6, 0.0 }
 0x4e4   : > { %v10413_v42 = vpop.f32.mrf.mxu1  ;;  %10543 = vmatmul.mubr.msk.bf16.gmra.mxu0 %vm1337_vm1, %v6581_v34 }
 0x4e5   : > { %v6499_v26 = vmax.f32 %v10413_v42, 0.0 }
 0x4e6   : > { %v6240_v59 = vpop.f32.mrf.mxu1 }
 0x4e7   : > { %v6497_v43 = vmax.f32 %v6240_v59, 0.0  ;;  %v6583_v21 = vpack.c.bf16 %v6499_v26, %v6498_v1 }
 0x4e8   : > { %v10416_v0 = vpop.f32.mrf.mxu1 }
 0x4e9   : > { %v6582_v45 = vpack.c.bf16 %v6497_v43, %v6496_v31  ;;  %v6502_v38 = vmax.f32 %v10416_v0, 0.0 }
 0x4ea   : > { %v6253_v30 = vpop.f32.mrf.mxu1 }
 0x4eb   : > { %10546 = vmatprep.mubr.msk.bf16.mxu0 %vm1337_vm1, %v6582_v45  ;;  %v6500_v60 = vmax.f32 %v6253_v30, 0.0 }
 0x4ec   : > { %v10417_v36 = vpop.f32.mrf.mxu1  ;;  %10547 = vmatmul.mubr.msk.bf16.gmra.mxu0 %vm1337_vm1, %v6583_v21 }
 0x4ed   : > { %v6503_v19 = vmax.f32 %v10417_v36, 0.0 }
 0x4ee   : > { %v6256_v4 = vpop.f32.mrf.mxu1 }
 0x4ef   : > { %v6501_v46 = vmax.f32 %v6256_v4, 0.0  ;;  %v6585_v2 = vpack.c.bf16 %v6503_v19, %v6502_v38 }
 0x4f0   : > { %v10420_v54 = vpop.f32.mrf.mxu1 }
 0x4f1   : > { %v6584_v25 = vpack.c.bf16 %v6501_v46, %v6500_v60  ;;  %v6506_v63 = vmax.f32 %v10420_v54, 0.0 }
 0x4f2   : > { %v6269_v22 = vpop.f32.mrf.mxu1 }
 0x4f3   : > { %10550 = vmatprep.mubr.msk.bf16.mxu0 %vm1337_vm1, %v6584_v25  ;;  %v6504_v44 = vmax.f32 %v6269_v22, 0.0 }
 0x4f4   : > { %v10421_v48 = vpop.f32.mrf.mxu1  ;;  %10551 = vmatmul.mubr.msk.bf16.gmra.mxu0 %vm1337_vm1, %v6585_v2 }
 0x4f5   : > { %v6507_v39 = vmax.f32 %v10421_v48, 0.0 }
 0x4f6   : > { %v6272_v55 = vpop.f32.mrf.mxu1 }
 0x4f7   : > { %v6505_v20 = vmax.f32 %v6272_v55, 0.0  ;;  %v6587_v49 = vpack.c.bf16 %v6507_v39, %v6506_v63 }
 0x4f8   : > { %v10424_v8 = vpop.f32.mrf.mxu1 }
 0x4f9   : > { %v6586_v61 = vpack.c.bf16 %v6505_v20, %v6504_v44  ;;  %v6510_v23 = vmax.f32 %v10424_v8, 0.0 }
 0x4fa   : > { %v6285_v12 = vpop.f32.mrf.mxu1 }
 0x4fb   : > { %10554 = vmatprep.mubr.msk.bf16.mxu0 %vm1337_vm1, %v6586_v61  ;;  %v6508_v52 = vmax.f32 %v6285_v12, 0.0 }
 0x4fc   : > { %v10425_v51 = vpop.f32.mrf.mxu1  ;;  %10555 = vmatmul.mubr.msk.bf16.gmra.mxu0 %vm1337_vm1, %v6587_v49 }
 0x4fd   : > { %v6511_v32 = vmax.f32 %v10425_v51, 0.0 }
 0x4fe   : > { %v6288_v50 = vpop.f32.mrf.mxu1 }
 0x4ff   : > { %v6509_v27 = vmax.f32 %v6288_v50, 0.0  ;;  %v6589_v17 = vpack.c.bf16 %v6511_v32, %v6510_v23 }
 0x500   : > { %v10428_v56 = vpop.f32.mrf.mxu1 }
 0x501   : > { %v6588_v15 = vpack.c.bf16 %v6509_v27, %v6508_v52  ;;  %v6514_v28 = vmax.f32 %v10428_v56, 0.0 }
 0x502   : > { %v6301_v29 = vpop.f32.mrf.mxu1 }
 0x503   : > { %10558 = vmatprep.mubr.msk.bf16.mxu0 %vm1337_vm1, %v6588_v15  ;;  %v6512_v41 = vmax.f32 %v6301_v29, 0.0 }
 0x504   : > { %v10429_v35 = vpop.f32.mrf.mxu1  ;;  %v10464_v53 = vpop.f32.mrf.mxu0  ;;  %10559 = vmatmul.mubr.msk.bf16.gmra.mxu0 %vm1337_vm1, %v6589_v17 }
 0x505   : > { %v6515_v57 = vmax.f32 %v10429_v35, 0.0  ;;  %v7376_v24 = vmax.f32 %v10464_v53, 0.0 }
 0x506   : > { %v6304_v9 = vpop.f32.mrf.mxu1  ;;  %v6863_v11 = vpop.f32.mrf.mxu0 }
 0x507   : > { %v6513_v58 = vmax.f32 %v6304_v9, 0.0  ;;  %v6591_v13 = vpack.c.bf16 %v6515_v57, %v6514_v28  ;;  %v7374_v7 = vmax.f32 %v6863_v11, 0.0 }
 0x508   : > { %v10432_v18 = vpop.f32.mrf.mxu1  ;;  %v10465_v37 = vpop.f32.mrf.mxu0 }
 0x509   : > { %v6590_v62 = vpack.c.bf16 %v6513_v58, %v6512_v41  ;;  %v7377_v3 = vmax.f32 %v10465_v37, 0.0  ;;  %v6518_v31 = vmax.f32 %v10432_v18, 0.0 }
 0x50a   : > { %v6317_v16 = vpop.f32.mrf.mxu1  ;;  %v6866_v14 = vpop.f32.mrf.mxu0 }
 0x50b   : > { %v7375_v40 = vmax.f32 %v6866_v14, 0.0  ;;  %10562 = vmatprep.mubr.msk.bf16.mxu0 %vm1337_vm1, %v6590_v62  ;;  %v7503_v47 = vpack.c.bf16 %v7377_v3, %v7376_v24  ;;  %v6516_v26 = vmax.f32 %v6317_v16, 0.0 }
 0x50c   : > { %v10433_v5 = vpop.f32.mrf.mxu1  ;;  %v10468_v33 = vpop.f32.mrf.mxu0  ;;  %10563 = vmatmul.mubr.msk.bf16.gmra.mxu0 %vm1337_vm1, %v6591_v13 }
 0x50d   : > { %v7502_v10 = vpack.c.bf16 %v7375_v40, %v7374_v7  ;;  %v6519_v34 = vmax.f32 %v10433_v5, 0.0  ;;  %v7380_v60 = vmax.f32 %v10468_v33, 0.0 }
 0x50e   : > { %v6320_v6 = vpop.f32.mrf.mxu1  ;;  %v6879_v42 = vpop.f32.mrf.mxu0 }
 0x50f   : > { %v6517_v59 = vmax.f32 %v6320_v6, 0.0  ;;  %10598 = vmatprep.mubr.msk.bf16.mxu1 %vm1337_vm1, %v7502_v10  ;;  %v6593_v45 = vpack.c.bf16 %v6519_v34, %v6518_v31  ;;  %v7378_v19 = vmax.f32 %v6879_v42, 0.0 }
 0x510   : > { %v10436_v43 = vpop.f32.mrf.mxu1  ;;  %v10469_v1 = vpop.f32.mrf.mxu0  ;;  %10599 = vmatmul.mubr.msk.bf16.vlgmr.msra.gmra.mxu1 %vm1337_vm1, %v7503_v47 }
 0x511   : > { %v6592_v0 = vpack.c.bf16 %v6517_v59, %v6516_v26  ;;  %v7381_v21 = vmax.f32 %v10469_v1, 0.0  ;;  %v6522_v44 = vmax.f32 %v10436_v43, 0.0 }
 0x512   : > { %v6333_v30 = vpop.f32.mrf.mxu1  ;;  %v6882_v36 = vpop.f32.mrf.mxu0 }
 0x513   : > { %v7379_v4 = vmax.f32 %v6882_v36, 0.0  ;;  %10566 = vmatprep.mubr.msk.bf16.mxu0 %vm1337_vm1, %v6592_v0  ;;  %v7505_v25 = vpack.c.bf16 %v7381_v21, %v7380_v60  ;;  %v6520_v39 = vmax.f32 %v6333_v30, 0.0 }
 0x514   : > { %v10437_v46 = vpop.f32.mrf.mxu1  ;;  %v10472_v38 = vpop.f32.mrf.mxu0  ;;  %10567 = vmatmul.mubr.msk.bf16.gmra.mxu0 %vm1337_vm1, %v6593_v45 }
 0x515   : > { %v7504_v54 = vpack.c.bf16 %v7379_v4, %v7378_v19  ;;  %v6523_v2 = vmax.f32 %v10437_v46, 0.0  ;;  %v7384_v52 = vmax.f32 %v10472_v38, 0.0 }
 0x516   : > { %v6336_v22 = vpop.f32.mrf.mxu1  ;;  %v6895_v48 = vpop.f32.mrf.mxu0 }
 0x517   : > { %v6521_v55 = vmax.f32 %v6336_v22, 0.0  ;;  %10602 = vmatprep.mubr.msk.bf16.mxu1 %vm1337_vm1, %v7504_v54  ;;  %v6595_v61 = vpack.c.bf16 %v6523_v2, %v6522_v44  ;;  %v7382_v32 = vmax.f32 %v6895_v48, 0.0 }
 0x518   : > { %v10440_v20 = vpop.f32.mrf.mxu1  ;;  %v10473_v63 = vpop.f32.mrf.mxu0  ;;  %10603 = vmatmul.mubr.msk.bf16.gmra.mxu1 %vm1337_vm1, %v7505_v25 }
 0x519   : > { %v6594_v8 = vpack.c.bf16 %v6521_v55, %v6520_v39  ;;  %v7385_v49 = vmax.f32 %v10473_v63, 0.0  ;;  %v6526_v9 = vmax.f32 %v10440_v20, 0.0 }
 0x51a   : > { %v6349_v12 = vpop.f32.mrf.mxu1  ;;  %v6898_v51 = vpop.f32.mrf.mxu0 }
 0x51b   : > { %v7383_v50 = vmax.f32 %v6898_v51, 0.0  ;;  %10570 = vmatprep.mubr.msk.bf16.mxu0 %vm1337_vm1, %v6594_v8  ;;  %v7507_v15 = vpack.c.bf16 %v7385_v49, %v7384_v52  ;;  %v6524_v53 = vmax.f32 %v6349_v12, 0.0 }
 0x51c   : > { %v10441_v27 = vpop.f32.mrf.mxu1  ;;  %v10476_v23 = vpop.f32.mrf.mxu0  ;;  %10571 = vmatmul.mubr.msk.bf16.gmra.mxu0 %vm1337_vm1, %v6595_v61 }
 0x51d   : > { %v7506_v56 = vpack.c.bf16 %v7383_v50, %v7382_v32  ;;  %v6527_v17 = vmax.f32 %v10441_v27, 0.0  ;;  %v7388_v16 = vmax.f32 %v10476_v23, 0.0 }
 0x51e   : > { %v6352_v29 = vpop.f32.mrf.mxu1  ;;  %v6911_v35 = vpop.f32.mrf.mxu0 }
 0x51f   : > { %v6525_v57 = vmax.f32 %v6352_v29, 0.0  ;;  %10606 = vmatprep.mubr.msk.bf16.mxu1 %vm1337_vm1, %v7506_v56  ;;  %v6597_v28 = vpack.c.bf16 %v6527_v17, %v6526_v9  ;;  %v7386_v13 = vmax.f32 %v6911_v35, 0.0 }
 0x520   : > { %v10444_v11 = vpop.f32.mrf.mxu1  ;;  %v10477_v41 = vpop.f32.mrf.mxu0  ;;  %10607 = vmatmul.mubr.msk.bf16.gmra.mxu1 %vm1337_vm1, %v7507_v15 }
 0x521   : > { %v6596_v58 = vpack.c.bf16 %v6525_v57, %v6524_v53  ;;  %v7389_v18 = vmax.f32 %v10477_v41, 0.0  ;;  %v6530_v6 = vmax.f32 %v10444_v11, 0.0 }
 0x522   : > { %v6365_v37 = vpop.f32.mrf.mxu1  ;;  %v6914_v62 = vpop.f32.mrf.mxu0 }
 0x523   : > { %v7387_v3 = vmax.f32 %v6914_v62, 0.0  ;;  %10574 = vmatprep.mubr.msk.bf16.mxu0 %vm1337_vm1, %v6596_v58  ;;  %v7509_v24 = vpack.c.bf16 %v7389_v18, %v7388_v16  ;;  %v6528_v47 = vmax.f32 %v6365_v37, 0.0 }
 0x524   : > { %v10445_v14 = vpop.f32.mrf.mxu1  ;;  %v10480_v7 = vpop.f32.mrf.mxu0  ;;  %10575 = vmatmul.mubr.msk.bf16.gmra.mxu0 %vm1337_vm1, %v6597_v28 }
 0x525   : > { %v7508_v40 = vpack.c.bf16 %v7387_v3, %v7386_v13  ;;  %v6531_v5 = vmax.f32 %v10445_v14, 0.0  ;;  %v7392_v30 = vmax.f32 %v10480_v7, 0.0 }
 0x526   : > { %v6368_v33 = vpop.f32.mrf.mxu1  ;;  %v6927_v10 = vpop.f32.mrf.mxu0 }
 0x527   : > { %v6529_v34 = vmax.f32 %v6368_v33, 0.0  ;;  %10610 = vmatprep.mubr.msk.bf16.mxu1 %vm1337_vm1, %v7508_v40  ;;  %v6599_v31 = vpack.c.bf16 %v6531_v5, %v6530_v6  ;;  %v7390_v45 = vmax.f32 %v6927_v10, 0.0 }
 0x528   : > { %v10448_v42 = vpop.f32.mrf.mxu1  ;;  %v10481_v26 = vpop.f32.mrf.mxu0  ;;  %10611 = vmatmul.mubr.msk.bf16.gmra.mxu1 %vm1337_vm1, %v7509_v24 }
 0x529   : > { %v6598_v59 = vpack.c.bf16 %v6529_v34, %v6528_v47  ;;  %v7393_v43 = vmax.f32 %v10481_v26, 0.0  ;;  %v6534_v22 = vmax.f32 %v10448_v42, 0.0 }
 0x52a   : > { %v6381_v1 = vpop.f32.mrf.mxu1  ;;  %v6930_v0 = vpop.f32.mrf.mxu0 }
 0x52b   : > { %v7391_v21 = vmax.f32 %v6930_v0, 0.0  ;;  %10578 = vmatprep.mubr.msk.bf16.mxu0 %vm1337_vm1, %v6598_v59  ;;  %v7511_v60 = vpack.c.bf16 %v7393_v43, %v7392_v30  ;;  %v6532_v25 = vmax.f32 %v6381_v1, 0.0 }
 0x52c   : > { %v10449_v36 = vpop.f32.mrf.mxu1  ;;  %v10484_v19 = vpop.f32.mrf.mxu0  ;;  %10579 = vmatmul.mubr.msk.bf16.gmra.mxu0 %vm1337_vm1, %v6599_v31 }
 0x52d   : > { %v7510_v4 = vpack.c.bf16 %v7391_v21, %v7390_v45  ;;  %v6535_v46 = vmax.f32 %v10449_v36, 0.0  ;;  %v7396_v12 = vmax.f32 %v10484_v19, 0.0 }
 0x52e   : > { %v6384_v38 = vpop.f32.mrf.mxu1  ;;  %v6943_v54 = vpop.f32.mrf.mxu0 }
 0x52f   : > { %v6533_v2 = vmax.f32 %v6384_v38, 0.0  ;;  %10614 = vmatprep.mubr.msk.bf16.mxu1 %vm1337_vm1, %v7510_v4  ;;  %v6601_v44 = vpack.c.bf16 %v6535_v46, %v6534_v22  ;;  %v7394_v61 = vmax.f32 %v6943_v54, 0.0 }
 0x530   : > { %v10452_v48 = vpop.f32.mrf.mxu1  ;;  %v10485_v39 = vpop.f32.mrf.mxu0  ;;  %10615 = vmatmul.mubr.msk.bf16.gmra.mxu1 %vm1337_vm1, %v7511_v60 }
 0x531   : > { %v6600_v55 = vpack.c.bf16 %v6533_v2, %v6532_v25  ;;  %v7397_v20 = vmax.f32 %v10485_v39, 0.0  ;;  %v6538_v29 = vmax.f32 %v10452_v48, 0.0 }
 0x532   : > { %v6397_v63 = vpop.f32.mrf.mxu1  ;;  %v6946_v8 = vpop.f32.mrf.mxu0 }
 0x533   : > { %v7395_v49 = vmax.f32 %v6946_v8, 0.0  ;;  %10582 = vmatprep.mubr.msk.bf16.mxu0 %vm1337_vm1, %v6600_v55  ;;  %v7513_v52 = vpack.c.bf16 %v7397_v20, %v7396_v12  ;;  %v6536_v15 = vmax.f32 %v6397_v63, 0.0 }
 0x534   : > { %v10453_v51 = vpop.f32.mrf.mxu1  ;;  %v10488_v32 = vpop.f32.mrf.mxu0  ;;  %10583 = vmatmul.mubr.msk.bf16.gmra.mxu0 %vm1337_vm1, %v6601_v44 }
 0x535   : > { %v7512_v50 = vpack.c.bf16 %v7395_v49, %v7394_v61  ;;  %v6539_v27 = vmax.f32 %v10453_v51, 0.0  ;;  %v7400_v28 = vmax.f32 %v10488_v32, 0.0 }
 0x536   : > { %v6400_v23 = vpop.f32.mrf.mxu1  ;;  %v6959_v56 = vpop.f32.mrf.mxu0 }
 0x537   : > { %v6537_v17 = vmax.f32 %v6400_v23, 0.0  ;;  %10618 = vmatprep.mubr.msk.bf16.mxu1 %vm1337_vm1, %v7512_v50  ;;  %v6603_v57 = vpack.c.bf16 %v6539_v27, %v6538_v29  ;;  %v7398_v41 = vmax.f32 %v6959_v56, 0.0 }
 0x538   : > { %v10489_v35 = vpop.f32.mrf.mxu0  ;;  %10619 = vmatmul.mubr.msk.bf16.gmra.mxu1 %vm1337_vm1, %v7513_v52 }
 0x539   : > { %v6602_v53 = vpack.c.bf16 %v6537_v17, %v6536_v15  ;;  %v7401_v9 = vmax.f32 %v10489_v35, 0.0 }
 0x53a   : > { %v6962_v11 = vpop.f32.mrf.mxu0 }
 0x53b   : > { %v7399_v58 = vmax.f32 %v6962_v11, 0.0  ;;  %10586 = vmatprep.mubr.msk.bf16.mxu0 %vm1337_vm1, %v6602_v53  ;;  %v7515_v62 = vpack.c.bf16 %v7401_v9, %v7400_v28 }
 0x53c   : > { %v10492_v18 = vpop.f32.mrf.mxu0  ;;  %10587 = vmatmul.mubr.msk.bf16.gmra.mxu0 %vm1337_vm1, %v6603_v57 }
 0x53d   : > { %v7514_v37 = vpack.c.bf16 %v7399_v58, %v7398_v41  ;;  %v7404_v24 = vmax.f32 %v10492_v18, 0.0 }
 0x53e   : > { %v6975_v13 = vpop.f32.mrf.mxu0 }
 0x53f   : > { %10622 = vmatprep.mubr.msk.bf16.mxu1 %vm1337_vm1, %v7514_v37  ;;  %v7402_v7 = vmax.f32 %v6975_v13, 0.0 }
 0x540   : > { %v10493_v3 = vpop.f32.mrf.mxu0  ;;  %10623 = vmatmul.mubr.msk.bf16.gmra.mxu1 %vm1337_vm1, %v7515_v62 }
 0x541   : > { %v7405_v16 = vmax.f32 %v10493_v3, 0.0 }
 0x542   : > { %v6978_v14 = vpop.f32.mrf.mxu0 }
 0x543   : > { %v7403_v40 = vmax.f32 %v6978_v14, 0.0  ;;  %v7517_v10 = vpack.c.bf16 %v7405_v16, %v7404_v24 }
 0x544   : > { %v10496_v5 = vpop.f32.mrf.mxu0 }
 0x545   : > { %v7516_v33 = vpack.c.bf16 %v7403_v40, %v7402_v7  ;;  %v7408_v31 = vmax.f32 %v10496_v5, 0.0 }
 0x546   : > { %v6991_v47 = vpop.f32.mrf.mxu0 }
 0x547   : > { %10626 = vmatprep.mubr.msk.bf16.mxu1 %vm1337_vm1, %v7516_v33  ;;  %v7406_v26 = vmax.f32 %v6991_v47, 0.0 }
 0x548   : > { %v10497_v34 = vpop.f32.mrf.mxu0  ;;  %10627 = vmatmul.mubr.msk.bf16.gmra.mxu1 %vm1337_vm1, %v7517_v10 }
 0x549   : > { %v7409_v6 = vmax.f32 %v10497_v34, 0.0 }
 0x54a   : > { %v6994_v42 = vpop.f32.mrf.mxu0 }
 0x54b   : > { %v7407_v59 = vmax.f32 %v6994_v42, 0.0  ;;  %v7519_v0 = vpack.c.bf16 %v7409_v6, %v7408_v31 }
 0x54c   : > { %v10500_v43 = vpop.f32.mrf.mxu0 }
 0x54d   : > { %v7518_v1 = vpack.c.bf16 %v7407_v59, %v7406_v26  ;;  %v7412_v60 = vmax.f32 %v10500_v43, 0.0 }
 0x54e   : > { %v7007_v45 = vpop.f32.mrf.mxu0 }
 0x54f   : > { %10630 = vmatprep.mubr.msk.bf16.mxu1 %vm1337_vm1, %v7518_v1  ;;  %v7410_v19 = vmax.f32 %v7007_v45, 0.0 }
 0x550   : > { %v10501_v21 = vpop.f32.mrf.mxu0  ;;  %10631 = vmatmul.mubr.msk.bf16.gmra.mxu1 %vm1337_vm1, %v7519_v0 }
 0x551   : > { %v7413_v30 = vmax.f32 %v10501_v21, 0.0 }
 0x552   : > { %v7010_v36 = vpop.f32.mrf.mxu0 }
 0x553   : > { %v7411_v4 = vmax.f32 %v7010_v36, 0.0  ;;  %v7521_v54 = vpack.c.bf16 %v7413_v30, %v7412_v60 }
 0x554   : > { %v10504_v46 = vpop.f32.mrf.mxu0 }
 0x555   : > { %v7520_v38 = vpack.c.bf16 %v7411_v4, %v7410_v19  ;;  %v7416_v44 = vmax.f32 %v10504_v46, 0.0 }
 0x556   : > { %v7023_v25 = vpop.f32.mrf.mxu0 }
 0x557   : > { %10634 = vmatprep.mubr.msk.bf16.mxu1 %vm1337_vm1, %v7520_v38  ;;  %v7414_v39 = vmax.f32 %v7023_v25, 0.0 }
 0x558   : > { %v10505_v2 = vpop.f32.mrf.mxu0  ;;  %10635 = vmatmul.mubr.msk.bf16.gmra.mxu1 %vm1337_vm1, %v7521_v54 }
 0x559   : > { %v7417_v22 = vmax.f32 %v10505_v2, 0.0 }
 0x55a   : > { %v7026_v48 = vpop.f32.mrf.mxu0 }
 0x55b   : > { %v7415_v55 = vmax.f32 %v7026_v48, 0.0  ;;  %v7523_v8 = vpack.c.bf16 %v7417_v22, %v7416_v44 }
 0x55c   : > { %v10508_v20 = vpop.f32.mrf.mxu0 }
 0x55d   : > { %v7522_v63 = vpack.c.bf16 %v7415_v55, %v7414_v39  ;;  %v7420_v52 = vmax.f32 %v10508_v20, 0.0 }
 0x55e   : > { %v7039_v61 = vpop.f32.mrf.mxu0 }
 0x55f   : > { %10638 = vmatprep.mubr.msk.bf16.mxu1 %vm1337_vm1, %v7522_v63  ;;  %v7418_v32 = vmax.f32 %v7039_v61, 0.0 }
 0x560   : > { %v10509_v49 = vpop.f32.mrf.mxu0  ;;  %10639 = vmatmul.mubr.msk.bf16.gmra.mxu1 %vm1337_vm1, %v7523_v8 }
 0x561   : > { %v7421_v12 = vmax.f32 %v10509_v49, 0.0 }
 0x562   : > { %v7042_v51 = vpop.f32.mrf.mxu0 }
 0x563   : > { %v7419_v50 = vmax.f32 %v7042_v51, 0.0  ;;  %v7525_v56 = vpack.c.bf16 %v7421_v12, %v7420_v52 }
 0x564   : > { %v10512_v27 = vpop.f32.mrf.mxu0 }
 0x565   : > { %v7524_v23 = vpack.c.bf16 %v7419_v50, %v7418_v32  ;;  %v7424_v9 = vmax.f32 %v10512_v27, 0.0 }
 0x566   : > { %v7055_v15 = vpop.f32.mrf.mxu0 }
 0x567   : > { %10642 = vmatprep.mubr.msk.bf16.mxu1 %vm1337_vm1, %v7524_v23  ;;  %v7422_v53 = vmax.f32 %v7055_v15, 0.0 }
 0x568   : > { %v10513_v17 = vpop.f32.mrf.mxu0  ;;  %10643 = vmatmul.mubr.msk.bf16.gmra.mxu1 %vm1337_vm1, %v7525_v56 }
 0x569   : > { %v7425_v29 = vmax.f32 %v10513_v17, 0.0 }
 0x56a   : > { %v7058_v35 = vpop.f32.mrf.mxu0 }
 0x56b   : > { %v7423_v57 = vmax.f32 %v7058_v35, 0.0  ;;  %v7527_v58 = vpack.c.bf16 %v7425_v29, %v7424_v9 }
 0x56c   : > { %v10516_v11 = vpop.f32.mrf.mxu0 }
 0x56d   : > { %v7526_v41 = vpack.c.bf16 %v7423_v57, %v7422_v53  ;;  %v7428_v16 = vmax.f32 %v10516_v11, 0.0 }
 0x56e   : > { %v7071_v28 = vpop.f32.mrf.mxu0 }
 0x56f   : > { %10646 = vmatprep.mubr.msk.bf16.mxu1 %vm1337_vm1, %v7526_v41  ;;  %v7426_v13 = vmax.f32 %v7071_v28, 0.0 }
 0x570   : > { %v10517_v18 = vpop.f32.mrf.mxu0  ;;  %10647 = vmatmul.mubr.msk.bf16.gmra.mxu1 %vm1337_vm1, %v7527_v58 }
 0x571   : > { %v7429_v37 = vmax.f32 %v10517_v18, 0.0 }
 0x572   : > { %v7074_v62 = vpop.f32.mrf.mxu0 }
 0x573   : > { %v7427_v3 = vmax.f32 %v7074_v62, 0.0  ;;  %v7529_v40 = vpack.c.bf16 %v7429_v37, %v7428_v16 }
 0x574   : > { %v10520_v14 = vpop.f32.mrf.mxu0 }
 0x575   : > { %v7528_v7 = vpack.c.bf16 %v7427_v3, %v7426_v13  ;;  %v7432_v6 = vmax.f32 %v10520_v14, 0.0 }
 0x576   : > { %v7087_v24 = vpop.f32.mrf.mxu0 }
 0x577   : > { %10650 = vmatprep.mubr.msk.bf16.mxu1 %vm1337_vm1, %v7528_v7  ;;  %v7430_v47 = vmax.f32 %v7087_v24, 0.0 }
 0x578   : > { %v10521_v5 = vpop.f32.mrf.mxu0  ;;  %10651 = vmatmul.mubr.msk.bf16.gmra.mxu1 %vm1337_vm1, %v7529_v40 }
 0x579   : > { %v7433_v33 = vmax.f32 %v10521_v5, 0.0 }
 0x57a   : > { %v7090_v10 = vpop.f32.mrf.mxu0 }
 0x57b   : > { %v7431_v34 = vmax.f32 %v7090_v10, 0.0  ;;  %v7531_v59 = vpack.c.bf16 %v7433_v33, %v7432_v6 }
 0x57c   : > { %v10524_v42 = vpop.f32.mrf.mxu0 }
 0x57d   : > { %v7530_v26 = vpack.c.bf16 %v7431_v34, %v7430_v47  ;;  %v7436_v30 = vmax.f32 %v10524_v42, 0.0 }
 0x57e   : > { %v7103_v31 = vpop.f32.mrf.mxu0 }
 0x57f   : > { %10654 = vmatprep.mubr.msk.bf16.mxu1 %vm1337_vm1, %v7530_v26  ;;  %v7434_v45 = vmax.f32 %v7103_v31, 0.0 }
 0x580   : > { %v10525_v43 = vpop.f32.mrf.mxu0  ;;  %10655 = vmatmul.mubr.msk.bf16.gmra.mxu1 %vm1337_vm1, %v7531_v59 }
 0x581   : > { %v7437_v1 = vmax.f32 %v10525_v43, 0.0 }
 0x582   : > { %v7106_v0 = vpop.f32.mrf.mxu0 }
 0x583   : > { %v7435_v21 = vmax.f32 %v7106_v0, 0.0  ;;  %v7533_v4 = vpack.c.bf16 %v7437_v1, %v7436_v30 }
 0x584   : > { %v10528_v36 = vpop.f32.mrf.mxu0 }
 0x585   : > { %v7532_v19 = vpack.c.bf16 %v7435_v21, %v7434_v45  ;;  %v7440_v22 = vmax.f32 %v10528_v36, 0.0 }
 0x586   : > { %v7119_v60 = vpop.f32.mrf.mxu0 }
 0x587   : > { %10658 = vmatprep.mubr.msk.bf16.mxu1 %vm1337_vm1, %v7532_v19  ;;  %v7438_v25 = vmax.f32 %v7119_v60, 0.0 }
 0x588   : > { %v10529_v46 = vpop.f32.mrf.mxu0  ;;  %10659 = vmatmul.mubr.msk.bf16.gmra.mxu1 %vm1337_vm1, %v7533_v4 }
 0x589   : > { %v7441_v38 = vmax.f32 %v10529_v46, 0.0 }
 0x58a   : > { %v7122_v54 = vpop.f32.mrf.mxu0 }
 0x58b   : > { %v7439_v2 = vmax.f32 %v7122_v54, 0.0  ;;  %v7535_v55 = vpack.c.bf16 %v7441_v38, %v7440_v22 }
 0x58c   : > { %v10532_v48 = vpop.f32.mrf.mxu0 }
 0x58d   : > { %v7534_v39 = vpack.c.bf16 %v7439_v2, %v7438_v25  ;;  %v7444_v12 = vmax.f32 %v10532_v48, 0.0 }
 0x58e   : > { %v7135_v44 = vpop.f32.mrf.mxu0 }
 0x58f   : > { %10662 = vmatprep.mubr.msk.bf16.mxu1 %vm1337_vm1, %v7534_v39  ;;  %v7442_v61 = vmax.f32 %v7135_v44, 0.0 }
 0x590   : > { %v10533_v20 = vpop.f32.mrf.mxu0  ;;  %10663 = vmatmul.mubr.msk.bf16.gmra.mxu1 %vm1337_vm1, %v7535_v55 }
 0x591   : > { %v7445_v63 = vmax.f32 %v10533_v20, 0.0 }
 0x592   : > { %v7138_v8 = vpop.f32.mrf.mxu0 }
 0x593   : > { %v7443_v49 = vmax.f32 %v7138_v8, 0.0  ;;  %v7537_v50 = vpack.c.bf16 %v7445_v63, %v7444_v12 }
 0x594   : > { %v10536_v51 = vpop.f32.mrf.mxu0 }
 0x595   : > { %v7536_v32 = vpack.c.bf16 %v7443_v49, %v7442_v61  ;;  %v7448_v29 = vmax.f32 %v10536_v51, 0.0 }
 0x596   : > { %v7151_v52 = vpop.f32.mrf.mxu0 }
 0x597   : > { %10666 = vmatprep.mubr.msk.bf16.mxu1 %vm1337_vm1, %v7536_v32  ;;  %v7446_v15 = vmax.f32 %v7151_v52, 0.0 }
 0x598   : > { %v10537_v27 = vpop.f32.mrf.mxu0  ;;  %10667 = vmatmul.mubr.msk.bf16.gmra.mxu1 %vm1337_vm1, %v7537_v50 }
 0x599   : > { %v7449_v23 = vmax.f32 %v10537_v27, 0.0 }
 0x59a   : > { %v7154_v56 = vpop.f32.mrf.mxu0 }
 0x59b   : > { %v7447_v17 = vmax.f32 %v7154_v56, 0.0  ;;  %v7539_v57 = vpack.c.bf16 %v7449_v23, %v7448_v29 }
 0x59c   : > { %v10540_v35 = vpop.f32.mrf.mxu0 }
 0x59d   : > { %v7538_v53 = vpack.c.bf16 %v7447_v17, %v7446_v15  ;;  %v7452_v37 = vmax.f32 %v10540_v35, 0.0 }
 0x59e   : > { %v7167_v9 = vpop.f32.mrf.mxu0 }
 0x59f   : > { %10670 = vmatprep.mubr.msk.bf16.mxu1 %vm1337_vm1, %v7538_v53  ;;  %v7450_v28 = vmax.f32 %v7167_v9, 0.0 }
 0x5a0   : > { %v10541_v11 = vpop.f32.mrf.mxu0  ;;  %10671 = vmatmul.mubr.msk.bf16.gmra.mxu1 %vm1337_vm1, %v7539_v57 }
 0x5a1   : > { %v7453_v41 = vmax.f32 %v10541_v11, 0.0 }
 0x5a2   : > { %v7170_v58 = vpop.f32.mrf.mxu0 }
 0x5a3   : > { %v7451_v18 = vmax.f32 %v7170_v58, 0.0  ;;  %v7541_v3 = vpack.c.bf16 %v7453_v41, %v7452_v37 }
 0x5a4   : > { %v10544_v62 = vpop.f32.mrf.mxu0 }
 0x5a5   : > { %v7540_v13 = vpack.c.bf16 %v7451_v18, %v7450_v28  ;;  %v7456_v33 = vmax.f32 %v10544_v62, 0.0 }
 0x5a6   : > { %v7183_v16 = vpop.f32.mrf.mxu0 }
 0x5a7   : > { %10674 = vmatprep.mubr.msk.bf16.mxu1 %vm1337_vm1, %v7540_v13  ;;  %v7454_v24 = vmax.f32 %v7183_v16, 0.0 }
 0x5a8   : > { %v10545_v14 = vpop.f32.mrf.mxu0  ;;  %10675 = vmatmul.mubr.msk.bf16.gmra.mxu1 %vm1337_vm1, %v7541_v3 }
 0x5a9   : > { %v7457_v7 = vmax.f32 %v10545_v14, 0.0 }
 0x5aa   : > { %v7186_v40 = vpop.f32.mrf.mxu0 }
 0x5ab   : > { %v7455_v5 = vmax.f32 %v7186_v40, 0.0  ;;  %v7543_v34 = vpack.c.bf16 %v7457_v7, %v7456_v33 }
 0x5ac   : > { %v10548_v10 = vpop.f32.mrf.mxu0 }
 0x5ad   : > { %v7542_v47 = vpack.c.bf16 %v7455_v5, %v7454_v24  ;;  %v7460_v1 = vmax.f32 %v10548_v10, 0.0 }
 0x5ae   : > { %v7199_v6 = vpop.f32.mrf.mxu0 }
 0x5af   : > { %10678 = vmatprep.mubr.msk.bf16.mxu1 %vm1337_vm1, %v7542_v47  ;;  %v7458_v31 = vmax.f32 %v7199_v6, 0.0 }
 0x5b0   : > { %v10549_v42 = vpop.f32.mrf.mxu0  ;;  %10679 = vmatmul.mubr.msk.bf16.gmra.mxu1 %vm1337_vm1, %v7543_v34 }
 0x5b1   : > { %v7461_v26 = vmax.f32 %v10549_v42, 0.0 }
 0x5b2   : > { %v7202_v59 = vpop.f32.mrf.mxu0 }
 0x5b3   : > { %v7459_v43 = vmax.f32 %v7202_v59, 0.0  ;;  %v7545_v21 = vpack.c.bf16 %v7461_v26, %v7460_v1 }
 0x5b4   : > { %v10552_v0 = vpop.f32.mrf.mxu0 }
 0x5b5   : > { %v7544_v45 = vpack.c.bf16 %v7459_v43, %v7458_v31  ;;  %v7464_v38 = vmax.f32 %v10552_v0, 0.0 }
 0x5b6   : > { %v7215_v30 = vpop.f32.mrf.mxu0 }
 0x5b7   : > { %10682 = vmatprep.mubr.msk.bf16.mxu1 %vm1337_vm1, %v7544_v45  ;;  %v7462_v60 = vmax.f32 %v7215_v30, 0.0 }
 0x5b8   : > { %v10553_v36 = vpop.f32.mrf.mxu0  ;;  %10683 = vmatmul.mubr.msk.bf16.gmra.mxu1 %vm1337_vm1, %v7545_v21 }
 0x5b9   : > { %v7465_v19 = vmax.f32 %v10553_v36, 0.0 }
 0x5ba   : > { %v7218_v4 = vpop.f32.mrf.mxu0 }
 0x5bb   : > { %v7463_v46 = vmax.f32 %v7218_v4, 0.0  ;;  %v7547_v2 = vpack.c.bf16 %v7465_v19, %v7464_v38 }
 0x5bc   : > { %v10556_v54 = vpop.f32.mrf.mxu0 }
 0x5bd   : > { %v7546_v25 = vpack.c.bf16 %v7463_v46, %v7462_v60  ;;  %v7468_v63 = vmax.f32 %v10556_v54, 0.0 }
 0x5be   : > { %v7231_v22 = vpop.f32.mrf.mxu0 }
 0x5bf   : > { %10686 = vmatprep.mubr.msk.bf16.mxu1 %vm1337_vm1, %v7546_v25  ;;  %v7466_v44 = vmax.f32 %v7231_v22, 0.0 }
 0x5c0   : > { %v10557_v48 = vpop.f32.mrf.mxu0  ;;  %10687 = vmatmul.mubr.msk.bf16.gmra.mxu1 %vm1337_vm1, %v7547_v2 }
 0x5c1   : > { %v7469_v39 = vmax.f32 %v10557_v48, 0.0 }
 0x5c2   : > { %v7234_v55 = vpop.f32.mrf.mxu0 }
 0x5c3   : > { %v7467_v20 = vmax.f32 %v7234_v55, 0.0  ;;  %v7549_v49 = vpack.c.bf16 %v7469_v39, %v7468_v63 }
 0x5c4   : > { %v10560_v8 = vpop.f32.mrf.mxu0 }
 0x5c5   : > { %v7548_v61 = vpack.c.bf16 %v7467_v20, %v7466_v44  ;;  %v7472_v23 = vmax.f32 %v10560_v8, 0.0 }
 0x5c6   : > { %v7247_v12 = vpop.f32.mrf.mxu0 }
 0x5c7   : > { %10690 = vmatprep.mubr.msk.bf16.mxu1 %vm1337_vm1, %v7548_v61  ;;  %v7470_v52 = vmax.f32 %v7247_v12, 0.0 }
 0x5c8   : > { %v10561_v51 = vpop.f32.mrf.mxu0  ;;  %10691 = vmatmul.mubr.msk.bf16.gmra.mxu1 %vm1337_vm1, %v7549_v49 }
 0x5c9   : > { %v7473_v32 = vmax.f32 %v10561_v51, 0.0 }
 0x5ca   : > { %v7250_v50 = vpop.f32.mrf.mxu0 }
 0x5cb   : > { %v7471_v27 = vmax.f32 %v7250_v50, 0.0  ;;  %v7551_v17 = vpack.c.bf16 %v7473_v32, %v7472_v23 }
 0x5cc   : > { %v10564_v56 = vpop.f32.mrf.mxu0 }
 0x5cd   : > { %v7550_v15 = vpack.c.bf16 %v7471_v27, %v7470_v52  ;;  %v7476_v28 = vmax.f32 %v10564_v56, 0.0 }
 0x5ce   : > { %v7263_v29 = vpop.f32.mrf.mxu0 }
 0x5cf   : > { %10694 = vmatprep.mubr.msk.bf16.mxu1 %vm1337_vm1, %v7550_v15  ;;  %v7474_v41 = vmax.f32 %v7263_v29, 0.0 }
 0x5d0   : > { %v10565_v35 = vpop.f32.mrf.mxu0  ;;  %v10600_v53 = vpop.f32.mrf.mxu1  ;;  %10695 = vmatmul.mubr.msk.bf16.gmra.mxu1 %vm1337_vm1, %v7551_v17 }
 0x5d1   : > { %8339 = vst.msk [vmem:[%s11325_s10 + $0x10] sm:$0xff] %vm8336_vm3, %v10600_v53  ;;  %v7477_v57 = vmax.f32 %v10565_v35, 0.0 }
 0x5d2   : > { %v7266_v9 = vpop.f32.mrf.mxu0  ;;  %v7825_v11 = vpop.f32.mrf.mxu1 }
 0x5d3   : > { %v7475_v58 = vmax.f32 %v7266_v9, 0.0  ;;  %8337 = vst.msk [vmem:[%s11325_s10] sm:$0xff] %vm8336_vm3, %v7825_v11  ;;  %v7553_v13 = vpack.c.bf16 %v7477_v57, %v7476_v28 }
 0x5d4   : > { %v10568_v18 = vpop.f32.mrf.mxu0  ;;  %v10601_v37 = vpop.f32.mrf.mxu1 }
 0x5d5   : > { %v7552_v62 = vpack.c.bf16 %v7475_v58, %v7474_v41  ;;  %8340 = vst.msk [vmem:[%s11325_s10 + $0x18] sm:$0xff] %vm8336_vm3, %v10601_v37  ;;  %v7480_v47 = vmax.f32 %v10568_v18, 0.0 }
 0x5d6   : > { %v7279_v3 = vpop.f32.mrf.mxu0  ;;  %v7828_v16 = vpop.f32.mrf.mxu1 }
 0x5d7   : > { %8338 = vst.msk [vmem:[%s11325_s10 + $0x8] sm:$0xff] %vm8336_vm3, %v7828_v16  ;;  %10698 = vmatprep.mubr.msk.bf16.mxu1 %vm1337_vm1, %v7552_v62  ;;  %v7478_v33 = vmax.f32 %v7279_v3, 0.0 }
 0x5d8   : > { %v10569_v14 = vpop.f32.mrf.mxu0  ;;  %v10604_v7 = vpop.f32.mrf.mxu1  ;;  %10699 = vmatmul.mubr.msk.bf16.gmra.mxu1 %vm1337_vm1, %v7553_v13 }
 0x5d9   : > { %8343 = vst.msk [vmem:[%s11325_s10 + $0x30] sm:$0xff] %vm8336_vm3, %v10604_v7  ;;  %v7481_v40 = vmax.f32 %v10569_v14, 0.0 }
 0x5da   : > { %v7282_v24 = vpop.f32.mrf.mxu0  ;;  %v7841_v5 = vpop.f32.mrf.mxu1 }
 0x5db   : > { %v7479_v10 = vmax.f32 %v7282_v24, 0.0  ;;  %8341 = vst.msk [vmem:[%s11325_s10 + $0x20] sm:$0xff] %vm8336_vm3, %v7841_v5  ;;  %v7555_v26 = vpack.c.bf16 %v7481_v40, %v7480_v47 }
 0x5dc   : > { %v10572_v34 = vpop.f32.mrf.mxu0  ;;  %v10605_v6 = vpop.f32.mrf.mxu1 }
 0x5dd   : > { %v7554_v42 = vpack.c.bf16 %v7479_v10, %v7478_v33  ;;  %8344 = vst.msk [vmem:[%s11325_s10 + $0x38] sm:$0xff] %vm8336_vm3, %v10605_v6  ;;  %v7484_v19 = vmax.f32 %v10572_v34, 0.0 }
 0x5de   : > { %v7295_v59 = vpop.f32.mrf.mxu0  ;;  %v7844_v31 = vpop.f32.mrf.mxu1 }
 0x5df   : > { %8342 = vst.msk [vmem:[%s11325_s10 + $0x28] sm:$0xff] %vm8336_vm3, %v7844_v31  ;;  %10702 = vmatprep.mubr.msk.bf16.mxu1 %vm1337_vm1, %v7554_v42  ;;  %v7482_v30 = vmax.f32 %v7295_v59, 0.0 }
 0x5e0   : > { %v10573_v43 = vpop.f32.mrf.mxu0  ;;  %v10608_v1 = vpop.f32.mrf.mxu1  ;;  %10703 = vmatmul.mubr.msk.bf16.gmra.mxu1 %vm1337_vm1, %v7555_v26 }
 0x5e1   : > { %8347 = vst.msk [vmem:[%s11325_s10 + $0x50] sm:$0xff] %vm8336_vm3, %v10608_v1  ;;  %v7485_v0 = vmax.f32 %v10573_v43, 0.0 }
 0x5e2   : > { %v7298_v45 = vpop.f32.mrf.mxu0  ;;  %v7857_v21 = vpop.f32.mrf.mxu1 }
 0x5e3   : > { %v7483_v36 = vmax.f32 %v7298_v45, 0.0  ;;  %8345 = vst.msk [vmem:[%s11325_s10 + $0x40] sm:$0xff] %vm8336_vm3, %v7857_v21  ;;  %v7557_v38 = vpack.c.bf16 %v7485_v0, %v7484_v19 }
 0x5e4   : > { %v10576_v4 = vpop.f32.mrf.mxu0  ;;  %v10609_v60 = vpop.f32.mrf.mxu1 }
 0x5e5   : > { %v7556_v46 = vpack.c.bf16 %v7483_v36, %v7482_v30  ;;  %8348 = vst.msk [vmem:[%s11325_s10 + $0x58] sm:$0xff] %vm8336_vm3, %v10609_v60  ;;  %v7488_v63 = vmax.f32 %v10576_v4, 0.0 }
 0x5e6   : > { %v7311_v54 = vpop.f32.mrf.mxu0  ;;  %v7860_v25 = vpop.f32.mrf.mxu1 }
 0x5e7   : > { %8346 = vst.msk [vmem:[%s11325_s10 + $0x48] sm:$0xff] %vm8336_vm3, %v7860_v25  ;;  %10706 = vmatprep.mubr.msk.bf16.mxu1 %vm1337_vm1, %v7556_v46  ;;  %v7486_v44 = vmax.f32 %v7311_v54, 0.0 }
 0x5e8   : > { %v10577_v2 = vpop.f32.mrf.mxu0  ;;  %v10612_v22 = vpop.f32.mrf.mxu1  ;;  %10707 = vmatmul.mubr.msk.bf16.gmra.mxu1 %vm1337_vm1, %v7557_v38 }
 0x5e9   : > { %8351 = vst.msk [vmem:[%s11325_s10 + $0x70] sm:$0xff] %vm8336_vm3, %v10612_v22  ;;  %v7489_v48 = vmax.f32 %v10577_v2, 0.0 }
 0x5ea   : > { %v7314_v39 = vpop.f32.mrf.mxu0  ;;  %v7873_v55 = vpop.f32.mrf.mxu1 }
 0x5eb   : > { %v7487_v20 = vmax.f32 %v7314_v39, 0.0  ;;  %8349 = vst.msk [vmem:[%s11325_s10 + $0x60] sm:$0xff] %vm8336_vm3, %v7873_v55  ;;  %v7559_v12 = vpack.c.bf16 %v7489_v48, %v7488_v63 }
 0x5ec   : > { %v10580_v8 = vpop.f32.mrf.mxu0  ;;  %v10613_v61 = vpop.f32.mrf.mxu1 }
 0x5ed   : > { %v7558_v49 = vpack.c.bf16 %v7487_v20, %v7486_v44  ;;  %8352 = vst.msk [vmem:[%s11325_s10 + $0x78] sm:$0xff] %vm8336_vm3, %v10613_v61  ;;  %v7492_v29 = vmax.f32 %v10580_v8, 0.0 }
 0x5ee   : > { %v7327_v51 = vpop.f32.mrf.mxu0  ;;  %v7876_v32 = vpop.f32.mrf.mxu1 }
 0x5ef   : > { %8350 = vst.msk [vmem:[%s11325_s10 + $0x68] sm:$0xff] %vm8336_vm3, %v7876_v32  ;;  %10710 = vmatprep.mubr.msk.bf16.mxu1 %vm1337_vm1, %v7558_v49  ;;  %v7490_v15 = vmax.f32 %v7327_v51, 0.0 }
 0x5f0   : > { %v10581_v50 = vpop.f32.mrf.mxu0  ;;  %v10616_v52 = vpop.f32.mrf.mxu1  ;;  %10711 = vmatmul.mubr.msk.bf16.gmra.mxu1 %vm1337_vm1, %v7559_v12 }
 0x5f1   : > { %8355 = vst.msk [vmem:[%s11325_s10 + $0x90] sm:$0xff] %vm8336_vm3, %v10616_v52  ;;  %v7493_v27 = vmax.f32 %v10581_v50, 0.0 }
 0x5f2   : > { %v7330_v23 = vpop.f32.mrf.mxu0  ;;  %v7889_v56 = vpop.f32.mrf.mxu1 }
 0x5f3   : > { %v7491_v17 = vmax.f32 %v7330_v23, 0.0  ;;  %8353 = vst.msk [vmem:[%s11325_s10 + $0x80] sm:$0xff] %vm8336_vm3, %v7889_v56  ;;  %v7561_v9 = vpack.c.bf16 %v7493_v27, %v7492_v29 }
 0x5f4   : > { %v10584_v35 = vpop.f32.mrf.mxu0  ;;  %v10617_v53 = vpop.f32.mrf.mxu1 }
 0x5f5   : > { %v7560_v57 = vpack.c.bf16 %v7491_v17, %v7490_v15  ;;  %8356 = vst.msk [vmem:[%s11325_s10 + $0x98] sm:$0xff] %vm8336_vm3, %v10617_v53  ;;  %v7496_v16 = vmax.f32 %v10584_v35, 0.0 }
 0x5f6   : > { %v7343_v11 = vpop.f32.mrf.mxu0  ;;  %v7892_v41 = vpop.f32.mrf.mxu1 }
 0x5f7   : > { %8354 = vst.msk [vmem:[%s11325_s10 + $0x88] sm:$0xff] %vm8336_vm3, %v7892_v41  ;;  %10714 = vmatprep.mubr.msk.bf16.mxu1 %vm1337_vm1, %v7560_v57  ;;  %v7494_v13 = vmax.f32 %v7343_v11, 0.0 }
 0x5f8   : > { %v10585_v58 = vpop.f32.mrf.mxu0  ;;  %v10620_v28 = vpop.f32.mrf.mxu1  ;;  %10715 = vmatmul.mubr.msk.bf16.gmra.mxu1 %vm1337_vm1, %v7561_v9 }
 0x5f9   : > { %8359 = vst.msk [vmem:[%s11325_s10 + $0xb0] sm:$0xff] %vm8336_vm3, %v10620_v28  ;;  %v7497_v18 = vmax.f32 %v10585_v58, 0.0 }
 0x5fa   : > { %v7346_v37 = vpop.f32.mrf.mxu0  ;;  %v7905_v62 = vpop.f32.mrf.mxu1 }
 0x5fb   : > { %v7495_v3 = vmax.f32 %v7346_v37, 0.0  ;;  %8357 = vst.msk [vmem:[%s11325_s10 + $0xa0] sm:$0xff] %vm8336_vm3, %v7905_v62  ;;  %v7563_v24 = vpack.c.bf16 %v7497_v18, %v7496_v16 }
 0x5fc   : > { %v10588_v14 = vpop.f32.mrf.mxu0  ;;  %v10621_v7 = vpop.f32.mrf.mxu1 }
 0x5fd   : > { %v7562_v40 = vpack.c.bf16 %v7495_v3, %v7494_v13  ;;  %8360 = vst.msk [vmem:[%s11325_s10 + $0xb8] sm:$0xff] %vm8336_vm3, %v10621_v7  ;;  %v7500_v31 = vmax.f32 %v10588_v14, 0.0 }
 0x5fe   : > { %v7359_v5 = vpop.f32.mrf.mxu0  ;;  %v7908_v33 = vpop.f32.mrf.mxu1 }
 0x5ff   : > { %8358 = vst.msk [vmem:[%s11325_s10 + $0xa8] sm:$0xff] %vm8336_vm3, %v7908_v33  ;;  %10718 = vmatprep.mubr.msk.bf16.mxu1 %vm1337_vm1, %v7562_v40  ;;  %v7498_v26 = vmax.f32 %v7359_v5, 0.0 }
 0x600   : > { %v10589_v10 = vpop.f32.mrf.mxu0  ;;  %v10624_v47 = vpop.f32.mrf.mxu1  ;;  %10719 = vmatmul.mubr.msk.bf16.gmra.mxu1 %vm1337_vm1, %v7563_v24 }
 0x601   : > { %8363 = vst.msk [vmem:[%s11325_s10 + $0xd0] sm:$0xff] %vm8336_vm3, %v10624_v47  ;;  %v7501_v34 = vmax.f32 %v10589_v10, 0.0 }
 0x602   : > { %v7362_v6 = vpop.f32.mrf.mxu0  ;;  %v7921_v42 = vpop.f32.mrf.mxu1 }
 0x603   : > { %v7499_v59 = vmax.f32 %v7362_v6, 0.0  ;;  %8361 = vst.msk [vmem:[%s11325_s10 + $0xc0] sm:$0xff] %vm8336_vm3, %v7921_v42  ;;  %v7565_v0 = vpack.c.bf16 %v7501_v34, %v7500_v31 }
 0x604   : > { %v10625_v43 = vpop.f32.mrf.mxu1 }
 0x605   : > { %v7564_v1 = vpack.c.bf16 %v7499_v59, %v7498_v26  ;;  %8364 = vst.msk [vmem:[%s11325_s10 + $0xd8] sm:$0xff] %vm8336_vm3, %v10625_v43 }
 0x606   : > { %v7924_v45 = vpop.f32.mrf.mxu1 }
 0x607   : > { %8362 = vst.msk [vmem:[%s11325_s10 + $0xc8] sm:$0xff] %vm8336_vm3, %v7924_v45  ;;  %10722 = vmatprep.mubr.msk.bf16.mxu1 %vm1337_vm1, %v7564_v1 }
 0x608   : > { %v10628_v21 = vpop.f32.mrf.mxu1  ;;  %10723 = vmatmul.mubr.msk.bf16.gmra.mxu1 %vm1337_vm1, %v7565_v0 }
 0x609   : > { %8367 = vst.msk [vmem:[%s11325_s10 + $0xf0] sm:$0xff] %vm8336_vm3, %v10628_v21 }
 0x60a   : > { %v7937_v30 = vpop.f32.mrf.mxu1 }
 0x60b   : > { %8365 = vst.msk [vmem:[%s11325_s10 + $0xe0] sm:$0xff] %vm8336_vm3, %v7937_v30 }
 0x60c   : > { %v10629_v36 = vpop.f32.mrf.mxu1 }
 0x60d   : > { %8368 = vst.msk [vmem:[%s11325_s10 + $0xf8] sm:$0xff] %vm8336_vm3, %v10629_v36 }
 0x60e   : > { %v7940_v19 = vpop.f32.mrf.mxu1 }
 0x60f   : > { %8366 = vst.msk [vmem:[%s11325_s10 + $0xe8] sm:$0xff] %vm8336_vm3, %v7940_v19 }
 0x610   : > { %v10632_v4 = vpop.f32.mrf.mxu1 }
 0x611   : > { %8371 = vst.msk [vmem:[%s11325_s10 + $0x110] sm:$0xff] %vm8336_vm3, %v10632_v4 }
 0x612   : > { %v7953_v60 = vpop.f32.mrf.mxu1 }
 0x613   : > { %8369 = vst.msk [vmem:[%s11325_s10 + $0x100] sm:$0xff] %vm8336_vm3, %v7953_v60 }
 0x614   : > { %v10633_v46 = vpop.f32.mrf.mxu1 }
 0x615   : > { %8372 = vst.msk [vmem:[%s11325_s10 + $0x118] sm:$0xff] %vm8336_vm3, %v10633_v46 }
 0x616   : > { %v7956_v38 = vpop.f32.mrf.mxu1 }
 0x617   : > { %8370 = vst.msk [vmem:[%s11325_s10 + $0x108] sm:$0xff] %vm8336_vm3, %v7956_v38 }
 0x618   : > { %v10636_v54 = vpop.f32.mrf.mxu1 }
 0x619   : > { %8375 = vst.msk [vmem:[%s11325_s10 + $0x130] sm:$0xff] %vm8336_vm3, %v10636_v54 }
 0x61a   : > { %v7969_v25 = vpop.f32.mrf.mxu1 }
 0x61b   : > { %8373 = vst.msk [vmem:[%s11325_s10 + $0x120] sm:$0xff] %vm8336_vm3, %v7969_v25 }
 0x61c   : > { %v10637_v2 = vpop.f32.mrf.mxu1 }
 0x61d   : > { %8376 = vst.msk [vmem:[%s11325_s10 + $0x138] sm:$0xff] %vm8336_vm3, %v10637_v2 }
 0x61e   : > { %v7972_v22 = vpop.f32.mrf.mxu1 }
 0x61f   : > { %8374 = vst.msk [vmem:[%s11325_s10 + $0x128] sm:$0xff] %vm8336_vm3, %v7972_v22 }
 0x620   : > { %v10640_v48 = vpop.f32.mrf.mxu1 }
 0x621   : > { %8379 = vst.msk [vmem:[%s11325_s10 + $0x150] sm:$0xff] %vm8336_vm3, %v10640_v48 }
 0x622   : > { %v7985_v39 = vpop.f32.mrf.mxu1 }
 0x623   : > { %8377 = vst.msk [vmem:[%s11325_s10 + $0x140] sm:$0xff] %vm8336_vm3, %v7985_v39 }
 0x624   : > { %v10641_v55 = vpop.f32.mrf.mxu1 }
 0x625   : > { %8380 = vst.msk [vmem:[%s11325_s10 + $0x158] sm:$0xff] %vm8336_vm3, %v10641_v55 }
 0x626   : > { %v7988_v44 = vpop.f32.mrf.mxu1 }
 0x627   : > { %8378 = vst.msk [vmem:[%s11325_s10 + $0x148] sm:$0xff] %vm8336_vm3, %v7988_v44 }
 0x628   : > { %v10644_v20 = vpop.f32.mrf.mxu1 }
 0x629   : > { %8383 = vst.msk [vmem:[%s11325_s10 + $0x170] sm:$0xff] %vm8336_vm3, %v10644_v20 }
 0x62a   : > { %v8001_v63 = vpop.f32.mrf.mxu1 }
 0x62b   : > { %8381 = vst.msk [vmem:[%s11325_s10 + $0x160] sm:$0xff] %vm8336_vm3, %v8001_v63 }
 0x62c   : > { %v10645_v8 = vpop.f32.mrf.mxu1 }
 0x62d   : > { %8384 = vst.msk [vmem:[%s11325_s10 + $0x178] sm:$0xff] %vm8336_vm3, %v10645_v8 }
 0x62e   : > { %v8004_v61 = vpop.f32.mrf.mxu1 }
 0x62f   : > { %8382 = vst.msk [vmem:[%s11325_s10 + $0x168] sm:$0xff] %vm8336_vm3, %v8004_v61 }
 0x630   : > { %v10648_v49 = vpop.f32.mrf.mxu1 }
 0x631   : > { %8387 = vst.msk [vmem:[%s11325_s10 + $0x190] sm:$0xff] %vm8336_vm3, %v10648_v49 }
 0x632   : > { %v8017_v12 = vpop.f32.mrf.mxu1 }
 0x633   : > { %8385 = vst.msk [vmem:[%s11325_s10 + $0x180] sm:$0xff] %vm8336_vm3, %v8017_v12 }
 0x634   : > { %v10649_v51 = vpop.f32.mrf.mxu1 }
 0x635   : > { %8388 = vst.msk [vmem:[%s11325_s10 + $0x198] sm:$0xff] %vm8336_vm3, %v10649_v51 }
 0x636   : > { %v8020_v32 = vpop.f32.mrf.mxu1 }
 0x637   : > { %8386 = vst.msk [vmem:[%s11325_s10 + $0x188] sm:$0xff] %vm8336_vm3, %v8020_v32 }
 0x638   : > { %v10652_v50 = vpop.f32.mrf.mxu1 }
 0x639   : > { %8391 = vst.msk [vmem:[%s11325_s10 + $0x1b0] sm:$0xff] %vm8336_vm3, %v10652_v50 }
 0x63a   : > { %v8033_v52 = vpop.f32.mrf.mxu1 }
 0x63b   : > { %8389 = vst.msk [vmem:[%s11325_s10 + $0x1a0] sm:$0xff] %vm8336_vm3, %v8033_v52 }
 0x63c   : > { %v10653_v27 = vpop.f32.mrf.mxu1 }
 0x63d   : > { %8392 = vst.msk [vmem:[%s11325_s10 + $0x1b8] sm:$0xff] %vm8336_vm3, %v10653_v27 }
 0x63e   : > { %v8036_v23 = vpop.f32.mrf.mxu1 }
 0x63f   : > { %8390 = vst.msk [vmem:[%s11325_s10 + $0x1a8] sm:$0xff] %vm8336_vm3, %v8036_v23 }
 0x640   : > { %v10656_v56 = vpop.f32.mrf.mxu1 }
 0x641   : > { %8395 = vst.msk [vmem:[%s11325_s10 + $0x1d0] sm:$0xff] %vm8336_vm3, %v10656_v56 }
 0x642   : > { %v8049_v15 = vpop.f32.mrf.mxu1 }
 0x643   : > { %8393 = vst.msk [vmem:[%s11325_s10 + $0x1c0] sm:$0xff] %vm8336_vm3, %v8049_v15 }
 0x644   : > { %v10657_v17 = vpop.f32.mrf.mxu1 }
 0x645   : > { %8396 = vst.msk [vmem:[%s11325_s10 + $0x1d8] sm:$0xff] %vm8336_vm3, %v10657_v17 }
 0x646   : > { %v8052_v29 = vpop.f32.mrf.mxu1 }
 0x647   : > { %8394 = vst.msk [vmem:[%s11325_s10 + $0x1c8] sm:$0xff] %vm8336_vm3, %v8052_v29 }
 0x648   : > { %v10660_v35 = vpop.f32.mrf.mxu1 }
 0x649   : > { %8399 = vst.msk [vmem:[%s11325_s10 + $0x1f0] sm:$0xff] %vm8336_vm3, %v10660_v35 }
 0x64a   : > { %v8065_v53 = vpop.f32.mrf.mxu1 }
 0x64b   : > { %8397 = vst.msk [vmem:[%s11325_s10 + $0x1e0] sm:$0xff] %vm8336_vm3, %v8065_v53 }
 0x64c   : > { %v10661_v57 = vpop.f32.mrf.mxu1 }
 0x64d   : > { %8400 = vst.msk [vmem:[%s11325_s10 + $0x1f8] sm:$0xff] %vm8336_vm3, %v10661_v57 }
 0x64e   : > { %v8068_v9 = vpop.f32.mrf.mxu1 }
 0x64f   : > { %8398 = vst.msk [vmem:[%s11325_s10 + $0x1e8] sm:$0xff] %vm8336_vm3, %v8068_v9 }
 0x650   : > { %v10664_v11 = vpop.f32.mrf.mxu1 }
 0x651   : > { %8403 = vst.msk [vmem:[%s11325_s10 + $0x210] sm:$0xff] %vm8336_vm3, %v10664_v11 }
 0x652   : > { %v8081_v41 = vpop.f32.mrf.mxu1 }
 0x653   : > { %8401 = vst.msk [vmem:[%s11325_s10 + $0x200] sm:$0xff] %vm8336_vm3, %v8081_v41 }
 0x654   : > { %v10665_v58 = vpop.f32.mrf.mxu1 }
 0x655   : > { %8404 = vst.msk [vmem:[%s11325_s10 + $0x218] sm:$0xff] %vm8336_vm3, %v10665_v58 }
 0x656   : > { %v8084_v28 = vpop.f32.mrf.mxu1 }
 0x657   : > { %8402 = vst.msk [vmem:[%s11325_s10 + $0x208] sm:$0xff] %vm8336_vm3, %v8084_v28 }
 0x658   : > { %v10668_v18 = vpop.f32.mrf.mxu1 }
 0x659   : > { %8407 = vst.msk [vmem:[%s11325_s10 + $0x230] sm:$0xff] %vm8336_vm3, %v10668_v18 }
 0x65a   : > { %v8097_v37 = vpop.f32.mrf.mxu1 }
 0x65b   : > { %8405 = vst.msk [vmem:[%s11325_s10 + $0x220] sm:$0xff] %vm8336_vm3, %v8097_v37 }
 0x65c   : > { %v10669_v62 = vpop.f32.mrf.mxu1 }
 0x65d   : > { %8408 = vst.msk [vmem:[%s11325_s10 + $0x238] sm:$0xff] %vm8336_vm3, %v10669_v62 }
 0x65e   : > { %v8100_v13 = vpop.f32.mrf.mxu1 }
 0x65f   : > { %8406 = vst.msk [vmem:[%s11325_s10 + $0x228] sm:$0xff] %vm8336_vm3, %v8100_v13 }
 0x660   : > { %v10672_v3 = vpop.f32.mrf.mxu1 }
 0x661   : > { %8411 = vst.msk [vmem:[%s11325_s10 + $0x250] sm:$0xff] %vm8336_vm3, %v10672_v3 }
 0x662   : > { %v8113_v16 = vpop.f32.mrf.mxu1 }
 0x663   : > { %8409 = vst.msk [vmem:[%s11325_s10 + $0x240] sm:$0xff] %vm8336_vm3, %v8113_v16 }
 0x664   : > { %v10673_v14 = vpop.f32.mrf.mxu1 }
 0x665   : > { %8412 = vst.msk [vmem:[%s11325_s10 + $0x258] sm:$0xff] %vm8336_vm3, %v10673_v14 }
 0x666   : > { %v8116_v7 = vpop.f32.mrf.mxu1 }
 0x667   : > { %8410 = vst.msk [vmem:[%s11325_s10 + $0x248] sm:$0xff] %vm8336_vm3, %v8116_v7 }
 0x668   : > { %v10676_v40 = vpop.f32.mrf.mxu1 }
 0x669   : > { %8415 = vst.msk [vmem:[%s11325_s10 + $0x270] sm:$0xff] %vm8336_vm3, %v10676_v40 }
 0x66a   : > { %v8129_v24 = vpop.f32.mrf.mxu1 }
 0x66b   : > { %8413 = vst.msk [vmem:[%s11325_s10 + $0x260] sm:$0xff] %vm8336_vm3, %v8129_v24 }
 0x66c   : > { %v10677_v5 = vpop.f32.mrf.mxu1 }
 0x66d   : > { %8416 = vst.msk [vmem:[%s11325_s10 + $0x278] sm:$0xff] %vm8336_vm3, %v10677_v5 }
 0x66e   : > { %v8132_v33 = vpop.f32.mrf.mxu1 }
 0x66f   : > { %8414 = vst.msk [vmem:[%s11325_s10 + $0x268] sm:$0xff] %vm8336_vm3, %v8132_v33 }
 0x670   : > { %v10680_v10 = vpop.f32.mrf.mxu1 }
 0x671   : > { %8419 = vst.msk [vmem:[%s11325_s10 + $0x290] sm:$0xff] %vm8336_vm3, %v10680_v10 }
 0x672   : > { %v8145_v47 = vpop.f32.mrf.mxu1 }
 0x673   : > { %8417 = vst.msk [vmem:[%s11325_s10 + $0x280] sm:$0xff] %vm8336_vm3, %v8145_v47 }
 0x674   : > { %v10681_v34 = vpop.f32.mrf.mxu1 }
 0x675   : > { %8420 = vst.msk [vmem:[%s11325_s10 + $0x298] sm:$0xff] %vm8336_vm3, %v10681_v34 }
 0x676   : > { %v8148_v6 = vpop.f32.mrf.mxu1 }
 0x677   : > { %8418 = vst.msk [vmem:[%s11325_s10 + $0x288] sm:$0xff] %vm8336_vm3, %v8148_v6 }
 0x678   : > { %v10684_v42 = vpop.f32.mrf.mxu1 }
 0x679   : > { %8423 = vst.msk [vmem:[%s11325_s10 + $0x2b0] sm:$0xff] %vm8336_vm3, %v10684_v42 }
 0x67a   : > { %v8161_v26 = vpop.f32.mrf.mxu1 }
 0x67b   : > { %8421 = vst.msk [vmem:[%s11325_s10 + $0x2a0] sm:$0xff] %vm8336_vm3, %v8161_v26 }
 0x67c   : > { %v10685_v59 = vpop.f32.mrf.mxu1 }
 0x67d   : > { %8424 = vst.msk [vmem:[%s11325_s10 + $0x2b8] sm:$0xff] %vm8336_vm3, %v10685_v59 }
 0x67e   : > { %v8164_v31 = vpop.f32.mrf.mxu1 }
 0x67f   : > { %8422 = vst.msk [vmem:[%s11325_s10 + $0x2a8] sm:$0xff] %vm8336_vm3, %v8164_v31 }
 0x680   : > { %v10688_v43 = vpop.f32.mrf.mxu1 }
 0x681   : > { %8427 = vst.msk [vmem:[%s11325_s10 + $0x2d0] sm:$0xff] %vm8336_vm3, %v10688_v43 }
 0x682   : > { %v8177_v1 = vpop.f32.mrf.mxu1 }
 0x683   : > { %8425 = vst.msk [vmem:[%s11325_s10 + $0x2c0] sm:$0xff] %vm8336_vm3, %v8177_v1 }
 0x684   : > { %v10689_v0 = vpop.f32.mrf.mxu1 }
 0x685   : > { %8428 = vst.msk [vmem:[%s11325_s10 + $0x2d8] sm:$0xff] %vm8336_vm3, %v10689_v0 }
 0x686   : > { %v8180_v45 = vpop.f32.mrf.mxu1 }
 0x687   : > { %8426 = vst.msk [vmem:[%s11325_s10 + $0x2c8] sm:$0xff] %vm8336_vm3, %v8180_v45 }
 0x688   : > { %v10692_v21 = vpop.f32.mrf.mxu1 }
 0x689   : > { %8431 = vst.msk [vmem:[%s11325_s10 + $0x2f0] sm:$0xff] %vm8336_vm3, %v10692_v21 }
 0x68a   : > { %v8193_v30 = vpop.f32.mrf.mxu1 }
 0x68b   : > { %8429 = vst.msk [vmem:[%s11325_s10 + $0x2e0] sm:$0xff] %vm8336_vm3, %v8193_v30 }
 0x68c   : > { %v10693_v36 = vpop.f32.mrf.mxu1 }
 0x68d   : > { %8432 = vst.msk [vmem:[%s11325_s10 + $0x2f8] sm:$0xff] %vm8336_vm3, %v10693_v36 }
 0x68e   : > { %v8196_v19 = vpop.f32.mrf.mxu1 }
 0x68f   : > { %8430 = vst.msk [vmem:[%s11325_s10 + $0x2e8] sm:$0xff] %vm8336_vm3, %v8196_v19 }
 0x690   : > { %v10696_v4 = vpop.f32.mrf.mxu1 }
 0x691   : > { %8435 = vst.msk [vmem:[%s11325_s10 + $0x310] sm:$0xff] %vm8336_vm3, %v10696_v4 }
 0x692   : > { %v8209_v60 = vpop.f32.mrf.mxu1 }
 0x693   : > { %8433 = vst.msk [vmem:[%s11325_s10 + $0x300] sm:$0xff] %vm8336_vm3, %v8209_v60 }
 0x694   : > { %v10697_v46 = vpop.f32.mrf.mxu1 }
 0x695   : > { %8436 = vst.msk [vmem:[%s11325_s10 + $0x318] sm:$0xff] %vm8336_vm3, %v10697_v46 }
 0x696   : > { %v8212_v38 = vpop.f32.mrf.mxu1 }
 0x697   : > { %8434 = vst.msk [vmem:[%s11325_s10 + $0x308] sm:$0xff] %vm8336_vm3, %v8212_v38 }
 0x698   : > { %v10700_v54 = vpop.f32.mrf.mxu1 }
 0x699   : > { %8439 = vst.msk [vmem:[%s11325_s10 + $0x330] sm:$0xff] %vm8336_vm3, %v10700_v54 }
 0x69a   : > { %v8225_v25 = vpop.f32.mrf.mxu1 }
 0x69b   : > { %8437 = vst.msk [vmem:[%s11325_s10 + $0x320] sm:$0xff] %vm8336_vm3, %v8225_v25 }
 0x69c   : > { %v10701_v2 = vpop.f32.mrf.mxu1 }
 0x69d   : > { %8440 = vst.msk [vmem:[%s11325_s10 + $0x338] sm:$0xff] %vm8336_vm3, %v10701_v2 }
 0x69e   : > { %v8228_v22 = vpop.f32.mrf.mxu1 }
 0x69f   : > { %8438 = vst.msk [vmem:[%s11325_s10 + $0x328] sm:$0xff] %vm8336_vm3, %v8228_v22 }
 0x6a0   : > { %v10704_v48 = vpop.f32.mrf.mxu1 }
 0x6a1   : > { %8443 = vst.msk [vmem:[%s11325_s10 + $0x350] sm:$0xff] %vm8336_vm3, %v10704_v48 }
 0x6a2   : > { %v8241_v39 = vpop.f32.mrf.mxu1 }
 0x6a3   : > { %8441 = vst.msk [vmem:[%s11325_s10 + $0x340] sm:$0xff] %vm8336_vm3, %v8241_v39 }
 0x6a4   : > { %v10705_v55 = vpop.f32.mrf.mxu1 }
 0x6a5   : > { %8444 = vst.msk [vmem:[%s11325_s10 + $0x358] sm:$0xff] %vm8336_vm3, %v10705_v55 }
 0x6a6   : > { %v8244_v44 = vpop.f32.mrf.mxu1 }
 0x6a7   : > { %8442 = vst.msk [vmem:[%s11325_s10 + $0x348] sm:$0xff] %vm8336_vm3, %v8244_v44 }
 0x6a8   : > { %v10708_v20 = vpop.f32.mrf.mxu1 }
 0x6a9   : > { %8447 = vst.msk [vmem:[%s11325_s10 + $0x370] sm:$0xff] %vm8336_vm3, %v10708_v20 }
 0x6aa   : > { %v8257_v63 = vpop.f32.mrf.mxu1 }
 0x6ab   : > { %8445 = vst.msk [vmem:[%s11325_s10 + $0x360] sm:$0xff] %vm8336_vm3, %v8257_v63 }
 0x6ac   : > { %v10709_v8 = vpop.f32.mrf.mxu1 }
 0x6ad   : > { %8448 = vst.msk [vmem:[%s11325_s10 + $0x378] sm:$0xff] %vm8336_vm3, %v10709_v8 }
 0x6ae   : > { %v8260_v61 = vpop.f32.mrf.mxu1 }
 0x6af   : > { %8446 = vst.msk [vmem:[%s11325_s10 + $0x368] sm:$0xff] %vm8336_vm3, %v8260_v61 }
 0x6b0   : > { %v10712_v49 = vpop.f32.mrf.mxu1 }
 0x6b1   : > { %8451 = vst.msk [vmem:[%s11325_s10 + $0x390] sm:$0xff] %vm8336_vm3, %v10712_v49 }
 0x6b2   : > { %v8273_v12 = vpop.f32.mrf.mxu1 }
 0x6b3   : > { %8449 = vst.msk [vmem:[%s11325_s10 + $0x380] sm:$0xff] %vm8336_vm3, %v8273_v12 }
 0x6b4   : > { %v10713_v51 = vpop.f32.mrf.mxu1 }
 0x6b5   : > { %8452 = vst.msk [vmem:[%s11325_s10 + $0x398] sm:$0xff] %vm8336_vm3, %v10713_v51 }
 0x6b6   : > { %v8276_v32 = vpop.f32.mrf.mxu1 }
 0x6b7   : > { %8450 = vst.msk [vmem:[%s11325_s10 + $0x388] sm:$0xff] %vm8336_vm3, %v8276_v32 }
 0x6b8   : > { %v10716_v50 = vpop.f32.mrf.mxu1 }
 0x6b9   : > { %8455 = vst.msk [vmem:[%s11325_s10 + $0x3b0] sm:$0xff] %vm8336_vm3, %v10716_v50 }
 0x6ba   : > { %v8289_v52 = vpop.f32.mrf.mxu1 }
 0x6bb   : > { %8453 = vst.msk [vmem:[%s11325_s10 + $0x3a0] sm:$0xff] %vm8336_vm3, %v8289_v52 }
 0x6bc   : > { %v10717_v27 = vpop.f32.mrf.mxu1 }
 0x6bd   : > { %8456 = vst.msk [vmem:[%s11325_s10 + $0x3b8] sm:$0xff] %vm8336_vm3, %v10717_v27 }
 0x6be   : > { %v8292_v23 = vpop.f32.mrf.mxu1 }
 0x6bf   : > { %8454 = vst.msk [vmem:[%s11325_s10 + $0x3a8] sm:$0xff] %vm8336_vm3, %v8292_v23 }
 0x6c0   : > { %v10720_v56 = vpop.f32.mrf.mxu1 }
 0x6c1   : > { %8459 = vst.msk [vmem:[%s11325_s10 + $0x3d0] sm:$0xff] %vm8336_vm3, %v10720_v56 }
 0x6c2   : > { %v8305_v15 = vpop.f32.mrf.mxu1 }
 0x6c3   : > { %8457 = vst.msk [vmem:[%s11325_s10 + $0x3c0] sm:$0xff] %vm8336_vm3, %v8305_v15 }
 0x6c4   : > { %v10721_v17 = vpop.f32.mrf.mxu1 }
 0x6c5   : > { %8460 = vst.msk [vmem:[%s11325_s10 + $0x3d8] sm:$0xff] %vm8336_vm3, %v10721_v17 }
 0x6c6   : > { %v8308_v29 = vpop.f32.mrf.mxu1 }
 0x6c7   : > { %8458 = vst.msk [vmem:[%s11325_s10 + $0x3c8] sm:$0xff] %vm8336_vm3, %v8308_v29 }
 0x6c8   : > { %v10724_v35 = vpop.f32.mrf.mxu1 }
 0x6c9   : > { %8463 = vst.msk [vmem:[%s11325_s10 + $0x3f0] sm:$0xff] %vm8336_vm3, %v10724_v35 }
 0x6ca   : > { %v8321_v53 = vpop.f32.mrf.mxu1 }
 0x6cb   : > { %8461 = vst.msk [vmem:[%s11325_s10 + $0x3e0] sm:$0xff] %vm8336_vm3, %v8321_v53 }
 0x6cc   : > { %v10725_v57 = vpop.f32.mrf.mxu1 }
 0x6cd   : > { %8464 = vst.msk [vmem:[%s11325_s10 + $0x3f8] sm:$0xff] %vm8336_vm3, %v10725_v57 }
 0x6ce   : > { %v8324_v9 = vpop.f32.mrf.mxu1 }
 0x6cf   : > { %8462 = vst.msk [vmem:[%s11325_s10 + $0x3e8] sm:$0xff] %vm8336_vm3, %v8324_v9 }
 0x6d0 PF: > { %s13_s12 = sadd.s32 1, %s10767_s12  }
 0x6d1   : > { %p10_p4 = scmp.ge.s32.totalorder %s13_s12, 6  }
 0x6d3   :  { %12 = sbr.rel (!%p10_p4) target bundleno = 1 (0x1), region = 68 }

</bundles_post_ra>
